<compile_context>
chip_gen: v7x
topology: tpu7x:2x2x1
jax: 0.10.0
libtpu: 0.0.40
codegen_flags: <defaults>
</compile_context>

<pallas_src>
import math
import numpy as np
import jax
import jax.numpy as jnp
from jax.experimental import pallas as pl
from jax.experimental.pallas import tpu as pltpu
from jax.scipy.special import erf as _erf_ref

# ----------------------------- config (matches the module) --------------------
B = 2
IN_CHANNELS = 4
H = W = 16
PH = PW = 8                            # patch_size
CHANNEL_PARTITION = (1, 1, 1, 1)       # default: (1,) * in_channels
EMBED_DIM = 32
DEPTH = 2
NUM_HEADS = 4
MLP_RATIO = 4.0
HEAD_DIM = EMBED_DIM // NUM_HEADS
MLP_HIDDEN = int(EMBED_DIM * MLP_RATIO)
GH, GW = H // PH, W // PW
P_PER_GROUP = GH * GW
NUM_GROUPS = len(CHANNEL_PARTITION)
NUM_PATCHES = NUM_GROUPS * P_PER_GROUP          # 16
K_GROUP = [cg * PH * PW for cg in CHANNEL_PARTITION]
K_TOTAL = sum(K_GROUP)                          # 256
BN = B * NUM_PATCHES                            # 32 tokens (batch folded)
BH = B * NUM_HEADS                              # 8  (batch, head) pairs
EPS = 1e-6
ATTN_SCALE = HEAD_DIM ** -0.5

# f32 slab layout: [pos-embed + conv-bias rows (BN)] [8 rows / layer] [norm_w, norm_b]
FV_LANES = max(MLP_HIDDEN, 3 * EMBED_DIM)       # 128
FV_ROWS_PER_LAYER = 8

_ERF_A1, _ERF_A2, _ERF_A3, _ERF_A4, _ERF_A5 = (
    0.254829592, -0.284496736, 1.421413741, -1.453152027, 1.061405429)
_ERF_P = 0.3275911
_INV_SQRT2 = 1.0 / math.sqrt(2.0)


# ------------------------------ in-kernel helpers ------------------------------
def _layernorm(z, w, b):
    # one-pass form: both reductions depend only on z (shorter dependency chain)
    mu = jnp.mean(z, axis=-1, keepdims=True)
    var = jnp.mean(z * z, axis=-1, keepdims=True) - mu * mu
    return (z - mu) * jax.lax.rsqrt(var + EPS) * w + b


def _gelu_exact(x):
    # nn.GELU (erf form); erf via Abramowitz-Stegun 7.1.26 (|err| < 1.5e-7),
    # built only from exp + basic VPU arithmetic so it lowers everywhere.
    z = x * _INV_SQRT2
    a = jnp.maximum(z, -z)
    t = 1.0 / (1.0 + _ERF_P * a)
    poly = t * (_ERF_A1 + t * (_ERF_A2 + t * (_ERF_A3 + t * (_ERF_A4 + t * _ERF_A5))))
    erf_abs = 1.0 - poly * jnp.exp(-(a * a))
    erf = jnp.where(z < 0.0, -erf_abs, erf_abs)
    return 0.5 * x * (1.0 + erf)


# ------------------------------ fused kernel -----------------------------------
def encoder_kernel(patch_ref, wa_ref, wqkv_ref, w1_ref, wo_ref, fv_ref, o_ref):
    D, N, NH, HD = EMBED_DIM, NUM_PATCHES, NUM_HEADS, HEAD_DIM

    # patch embed: one block-diagonal matmul covers every channel group;
    # conv bias + sinusoid pos-embed are pre-folded into the f32 slab rows.
    x = jnp.dot(patch_ref[...], wa_ref[0:K_TOTAL, :],
                preferred_element_type=jnp.float32)               # (BN, D) f32
    x = x + fv_ref[0:BN, 0:D]

    for l in range(DEPTH):                                        # statically unrolled
        fb = BN + l * FV_ROWS_PER_LAYER
        w2_lo = K_TOTAL + l * MLP_HIDDEN

        # ---------------- attention ----------------
        h = _layernorm(x, fv_ref[fb:fb + 1, 0:D], fv_ref[fb + 1:fb + 2, 0:D])
        qkv = jnp.dot(h.astype(jnp.bfloat16), wqkv_ref[l],
                      preferred_element_type=jnp.float32)         # fused QKV (BN, 3D)
        qkv = (qkv + fv_ref[fb + 2:fb + 3, 0:3 * D]).astype(jnp.bfloat16)

        def heads(col0):   # (BN, 3D) -> (B*NH, N, HD) via static slices + leading stack
            return jnp.stack(
                [qkv[b * N:(b + 1) * N, col0 + hh * HD:col0 + (hh + 1) * HD]
                 for b in range(B) for hh in range(NH)], axis=0)

        q, k, v = heads(0), heads(D), heads(2 * D)
        s = jnp.einsum('bqd,bkd->bqk', q, k,
                       preferred_element_type=jnp.float32)        # scale folded into Wq
        mx = jnp.max(s, axis=-1, keepdims=True)
        e = jnp.exp(s - mx)
        att = e * pl.reciprocal(jnp.sum(e, axis=-1, keepdims=True), approx=True)
        oh = jnp.einsum('bqk,bkd->bqd', att.astype(jnp.bfloat16), v,
                        preferred_element_type=jnp.float32)       # (B*NH, N, HD)

        # head-concat folded into the projection: batched matmul against the
        # head-sliced proj rows, then a tiny per-batch sum over heads.
        ph = jnp.einsum('bnk,bkd->bnd', oh.astype(jnp.bfloat16), wo_ref[l],
                        preferred_element_type=jnp.float32)       # (B*NH, N, D)
        proj = jnp.concatenate(
            [jnp.sum(ph[b * NH:(b + 1) * NH], axis=0) for b in range(B)], axis=0)
        x = x + proj + fv_ref[fb + 3:fb + 4, 0:D]

        # ---------------- MLP ----------------
        h2 = _layernorm(x, fv_ref[fb + 4:fb + 5, 0:D], fv_ref[fb + 5:fb + 6, 0:D])
        h2 = jnp.dot(h2.astype(jnp.bfloat16), w1_ref[l],
                     preferred_element_type=jnp.float32) + fv_ref[fb + 6:fb + 7, 0:MLP_HIDDEN]
        h2 = _gelu_exact(h2)
        h2 = jnp.dot(h2.astype(jnp.bfloat16), wa_ref[w2_lo:w2_lo + MLP_HIDDEN, :],
                     preferred_element_type=jnp.float32)
        x = x + h2 + fv_ref[fb + 7:fb + 8, 0:D]

    nb = BN + DEPTH * FV_ROWS_PER_LAYER
    o_ref[...] = _layernorm(x, fv_ref[nb:nb + 1, 0:D], fv_ref[nb + 1:nb + 2, 0:D])


def encoder_call(patches, params):
    # No grid: one kernel invocation, every operand is a whole-array VMEM block.
    def vmem():
        return pl.BlockSpec(memory_space=pltpu.MemorySpace.VMEM)
    return pl.pallas_call(
        encoder_kernel,
        out_shape=jax.ShapeDtypeStruct((BN, EMBED_DIM), jnp.float32),
        in_specs=[vmem() for _ in range(6)],
        out_specs=vmem(),
    )(patches, params["wa"], params["wqkv"], params["w1"], params["wo"], params["fvec"])


# ------------------------------ wrapper glue -----------------------------------
def extract_patches_blockdiag(x):
    """NCHW -> (B, NUM_PATCHES, K_TOTAL): each token's K slice placed at its
    channel-group offset (block-diagonal layout), flatten order (c, kh, kw)."""
    cols, ch, off = [], 0, 0
    for g, cg in enumerate(CHANNEL_PARTITION):
        kg = K_GROUP[g]
        xg = x[:, ch:ch + cg]
        ch += cg
        pg = (xg.reshape(B, cg, GH, PH, GW, PW)
                .transpose(0, 2, 4, 1, 3, 5)
                .reshape(B, P_PER_GROUP, kg))
        cols.append(jnp.pad(pg, ((0, 0), (0, 0), (off, K_TOTAL - off - kg))))
        off += kg
    return jnp.concatenate(cols, axis=1)           # (B, NUM_PATCHES, K_TOTAL)


def channel_mae_encoder_forward(x, params):
    """x: [B, C, H, W] (NCHW). Returns [B, NUM_PATCHES, EMBED_DIM]."""
    # mask=None -> all-False mask -> x[~mask] keeps every token.
    # TODO(synk): boolean token gather (x[~mask]) for non-trivial masks is
    # data-dependent shape selection and is not implemented in the kernel path.
    patches = extract_patches_blockdiag(x).reshape(BN, K_TOTAL).astype(jnp.bfloat16)
    out = encoder_call(patches, params)            # (BN, D) f32
    return out.reshape(B, NUM_PATCHES, EMBED_DIM)  # head = nn.Identity()


# ------------------------------ parameter setup --------------------------------
def _xavier_uniform(key, fan_in, fan_out):
    a = math.sqrt(6.0 / (fan_in + fan_out))
    return jax.random.uniform(key, (fan_in, fan_out), jnp.float32, -a, a)


def _sinusoid_table(n_pos, d):
    pos = np.arange(n_pos)[:, None].astype(np.float64)
    j = np.arange(d)[None, :]
    angle = pos / np.power(10000.0, 2.0 * (j // 2) / d)
    table = np.zeros((n_pos, d), dtype=np.float64)
    table[:, 0::2] = np.sin(angle[:, 0::2])
    table[:, 1::2] = np.cos(angle[:, 1::2])
    return jnp.asarray(table, dtype=jnp.float32)


def init_params(key):
    D, NH, HD, DH, N = EMBED_DIM, NUM_HEADS, HEAD_DIM, MLP_HIDDEN, NUM_PATCHES

    # --- patch embedding (torch Conv2d default init), one group per partition --
    pe_rows, bias_rows = [], []
    for g, cg in enumerate(CHANNEL_PARTITION):
        key, kw, kb = jax.random.split(key, 3)
        kg = K_GROUP[g]
        bnd = 1.0 / math.sqrt(kg)
        w = jax.random.uniform(kw, (D, cg, PH, PW), jnp.float32, -bnd, bnd)
        pe_rows.append(w.reshape(D, kg).T)                         # (K_g, D), x @ W layout
        b_g = jax.random.uniform(kb, (D,), jnp.float32, -bnd, bnd)
        bias_rows.append(jnp.broadcast_to(b_g, (P_PER_GROUP, D)))
    pe_w = jnp.concatenate(pe_rows, axis=0)                        # (K_TOTAL, D)
    # conv bias + sinusoid pos-embed folded into per-token rows, tiled over batch
    posbias = _sinusoid_table(N, D) + jnp.concatenate(bias_rows, axis=0)
    posbias = jnp.tile(posbias, (B, 1))                            # (BN, D)

    wa_rows = [pe_w]                    # bf16 slab: patch-embed rows + per-layer fc2 rows
    wqkv_l, w1_l, wo_l = [], [], []
    fv_rows = [jnp.pad(posbias, ((0, 0), (0, FV_LANES - D)))]

    def fv_row(v):
        return jnp.pad(v.astype(jnp.float32), (0, FV_LANES - v.shape[0]))[None, :]

    for _ in range(DEPTH):
        key, k1, k2, k3, k4 = jax.random.split(key, 5)
        wqkv = _xavier_uniform(k1, D, 3 * D)                       # fused QKV, x @ W layout
        wqkv = wqkv.at[:, 0:D].multiply(ATTN_SCALE)                # fold attn scale into Wq
        qkv_b = jnp.zeros((3 * D,), jnp.float32)
        qkv_b = qkv_b.at[0:D].multiply(ATTN_SCALE)                 # (zero; kept for generality)
        wo = _xavier_uniform(k2, D, D)                             # proj, x @ W layout
        wo_heads = jnp.tile(wo.reshape(NH, HD, D), (B, 1, 1))      # (B*NH, HD, D), head-sliced
        w1 = _xavier_uniform(k3, D, DH)
        w2 = _xavier_uniform(k4, DH, D)

        wqkv_l.append(wqkv)
        w1_l.append(w1)
        wo_l.append(wo_heads)
        wa_rows.append(w2)

        fv_rows += [fv_row(jnp.ones((D,))), fv_row(jnp.zeros((D,))),    # ln1 w, b
                    fv_row(qkv_b),                                       # fused qkv bias
                    fv_row(jnp.zeros((D,))),                             # proj bias
                    fv_row(jnp.ones((D,))), fv_row(jnp.zeros((D,))),     # ln2 w, b
                    fv_row(jnp.zeros((DH,))),                            # fc1 bias
                    fv_row(jnp.zeros((D,)))]                             # fc2 bias
    fv_rows += [fv_row(jnp.ones((D,))), fv_row(jnp.zeros((D,)))]          # final LayerNorm

    return {
        "wa":   jnp.concatenate(wa_rows, axis=0).astype(jnp.bfloat16),    # (256+128*DEPTH, 32)
        "wqkv": jnp.stack(wqkv_l, 0).astype(jnp.bfloat16),                # (DEPTH, 32, 96)
        "w1":   jnp.stack(w1_l, 0).astype(jnp.bfloat16),                  # (DEPTH, 32, 128)
        "wo":   jnp.stack(wo_l, 0).astype(jnp.bfloat16),                  # (DEPTH, B*NH, 8, 32)
        "fvec": jnp.concatenate(fv_rows, axis=0).astype(jnp.float32),     # (BN+8*DEPTH+2, 128)
    }


# ------------------------------ pure-JAX reference ------------------------------
def encoder_reference(x, params):
    """f32 reference of the torch forward (exact softmax / erf GELU)."""
    D, NH, HD = EMBED_DIM, NUM_HEADS, HEAD_DIM
    wa = params["wa"].astype(jnp.float32)
    wqkv = params["wqkv"].astype(jnp.float32)
    w1 = params["w1"].astype(jnp.float32)
    wo = params["wo"].astype(jnp.float32)
    fv = params["fvec"]

    def ln(z, wrow, brow):
        mu = z.mean(-1, keepdims=True)
        var = ((z - mu) ** 2).mean(-1, keepdims=True)
        return (z - mu) / jnp.sqrt(var + EPS) * wrow + brow

    patches = extract_patches_blockdiag(x).reshape(BN, K_TOTAL)
    xx = patches @ wa[0:K_TOTAL] + fv[0:BN, 0:D]
    for l in range(DEPTH):
        fb = BN + l * FV_ROWS_PER_LAYER
        t = ln(xx, fv[fb, 0:D], fv[fb + 1, 0:D])
        qkv = t @ wqkv[l] + fv[fb + 2, 0:3 * D]
        outs = []
        for b in range(B):
            rows = slice(b * NUM_PATCHES, (b + 1) * NUM_PATCHES)
            per_b = []
            for hh in range(NH):
                q = qkv[rows, hh * HD:(hh + 1) * HD]
                k = qkv[rows, D + hh * HD:D + (hh + 1) * HD]
                v = qkv[rows, 2 * D + hh * HD:2 * D + (hh + 1) * HD]
                a = jax.nn.softmax(q @ k.T, axis=-1)     # scale already folded into Wq
                per_b.append(a @ v)
            outs.append(jnp.concatenate(per_b, axis=-1))
        att_out = jnp.concatenate(outs, axis=0)
        wo_l = wo[l, 0:NH].reshape(D, D)
        xx = xx + att_out @ wo_l + fv[fb + 3, 0:D]
        t2 = ln(xx, fv[fb + 4, 0:D], fv[fb + 5, 0:D])
        t2 = t2 @ w1[l] + fv[fb + 6, 0:MLP_HIDDEN]
        t2 = 0.5 * t2 * (1.0 + _erf_ref(t2 * _INV_SQRT2))
        t2 = t2 @ wa[K_TOTAL + l * MLP_HIDDEN:K_TOTAL + (l + 1) * MLP_HIDDEN]
        xx = xx + t2 + fv[fb + 7, 0:D]
    nb = BN + DEPTH * FV_ROWS_PER_LAYER
    out = ln(xx, fv[nb, 0:D], fv[nb + 1, 0:D])
    return out.reshape(B, NUM_PATCHES, EMBED_DIM)


# ------------------------------ main --------------------------------------------
if __name__ == "__main__":
    key = jax.random.PRNGKey(0)
    key, kx, kp = jax.random.split(key, 3)
    x = jax.random.normal(kx, (B, IN_CHANNELS, H, W), jnp.float32)
    params = init_params(kp)

    fwd = jax.jit(channel_mae_encoder_forward)
    out = jax.block_until_ready(fwd(x, params))
    assert out.shape == (B, NUM_PATCHES, EMBED_DIM), out.shape
    assert bool(jnp.all(jnp.isfinite(out)))

    # loose tolerance: kernel uses bf16 matmul operands / approx softmax recip
    ref = encoder_reference(x, params)
    max_err = float(jnp.max(jnp.abs(out - ref)))
    assert max_err < 0.15, f"kernel/reference mismatch: max abs err = {max_err}"

    print("KERNEL_OK")
</pallas_src>

<mosaic_0001>
module attributes {stable_mosaic.version = 11 : i64} {
  func.func @encoder_kernel(%arg0: memref<32x256xbf16, #tpu.memory_space<vmem>>, %arg1: memref<512x32xbf16, #tpu.memory_space<vmem>>, %arg2: memref<2x32x96xbf16, #tpu.memory_space<vmem>>, %arg3: memref<2x32x128xbf16, #tpu.memory_space<vmem>>, %arg4: memref<2x8x8x32xbf16, #tpu.memory_space<vmem>>, %arg5: memref<50x128xf32, #tpu.memory_space<vmem>>, %arg6: memref<32x32xf32, #tpu.memory_space<vmem>>) attributes {dimension_semantics = [], scalar_prefetch = 0 : i64, scratch_operands = 0 : i64, tpu.core_type = #tpu.core_type<tc>} {
    %c0 = arith.constant 0 : index
    %c0_0 = arith.constant 0 : index
    %0 = vector.load %arg0[%c0, %c0_0] : memref<32x256xbf16, #tpu.memory_space<vmem>>, vector<32x256xbf16>
    %c0_1 = arith.constant 0 : index
    %c0_2 = arith.constant 0 : index
    %1 = vector.load %arg1[%c0_1, %c0_2] : memref<512x32xbf16, #tpu.memory_space<vmem>>, vector<256x32xbf16>
    %cst = arith.constant dense<0.000000e+00> : vector<32x32xf32>
    %2 = tpu.matmul %0, %1, %cst {dimension_numbers = #tpu.dot_dimension_numbers<[1], [0], [0], [1], [0, 0, 1, 1], [], []>} : vector<32x256xbf16>, vector<256x32xbf16>, vector<32x32xf32> -> vector<32x32xf32>
    %c0_3 = arith.constant 0 : index
    %c0_4 = arith.constant 0 : index
    %3 = vector.load %arg5[%c0_3, %c0_4] : memref<50x128xf32, #tpu.memory_space<vmem>>, vector<32x32xf32>
    %4 = arith.addf %2, %3 : vector<32x32xf32>
    %c32 = arith.constant 32 : index
    %c0_5 = arith.constant 0 : index
    %5 = vector.load %arg5[%c32, %c0_5] : memref<50x128xf32, #tpu.memory_space<vmem>>, vector<1x32xf32>
    %c33 = arith.constant 33 : index
    %c0_6 = arith.constant 0 : index
    %6 = vector.load %arg5[%c33, %c0_6] : memref<50x128xf32, #tpu.memory_space<vmem>>, vector<1x32xf32>
    %cst_7 = arith.constant dense<0.000000e+00> : vector<32xf32>
    %7 = vector.multi_reduction <add>, %4, %cst_7 [1] : vector<32x32xf32> to vector<32xf32>
    %8 = vector.shape_cast %7 : vector<32xf32> to vector<32x1xf32>
    %cst_8 = arith.constant 3.200000e+01 : f32
    %9 = vector.broadcast %cst_8 : f32 to vector<32x1xf32>
    %10 = arith.divf %8, %9 : vector<32x1xf32>
    %11 = arith.mulf %4, %4 : vector<32x32xf32>
    %cst_9 = arith.constant dense<0.000000e+00> : vector<32xf32>
    %12 = vector.multi_reduction <add>, %11, %cst_9 [1] : vector<32x32xf32> to vector<32xf32>
    %13 = vector.shape_cast %12 : vector<32xf32> to vector<32x1xf32>
    %cst_10 = arith.constant 3.200000e+01 : f32
    %14 = vector.broadcast %cst_10 : f32 to vector<32x1xf32>
    %15 = arith.divf %13, %14 : vector<32x1xf32>
    %16 = arith.mulf %10, %10 : vector<32x1xf32>
    %17 = arith.subf %15, %16 : vector<32x1xf32>
    %18 = vector.broadcast %10 : vector<32x1xf32> to vector<32x32xf32>
    %19 = arith.subf %4, %18 : vector<32x32xf32>
    %cst_11 = arith.constant 9.99999997E-7 : f32
    %20 = vector.broadcast %cst_11 : f32 to vector<32x1xf32>
    %21 = arith.addf %17, %20 : vector<32x1xf32>
    %22 = math.rsqrt %21 : vector<32x1xf32>
    %23 = vector.broadcast %22 : vector<32x1xf32> to vector<32x32xf32>
    %24 = arith.mulf %19, %23 : vector<32x32xf32>
    %25 = vector.broadcast %5 : vector<1x32xf32> to vector<32x32xf32>
    %26 = arith.mulf %24, %25 : vector<32x32xf32>
    %27 = vector.broadcast %6 : vector<1x32xf32> to vector<32x32xf32>
    %28 = arith.addf %26, %27 : vector<32x32xf32>
    %29 = arith.truncf %28 : vector<32x32xf32> to vector<32x32xbf16>
    %c0_12 = arith.constant 0 : index
    %c0_13 = arith.constant 0 : index
    %c0_14 = arith.constant 0 : index
    %30 = vector.load %arg2[%c0_12, %c0_13, %c0_14] : memref<2x32x96xbf16, #tpu.memory_space<vmem>>, vector<1x32x96xbf16>
    %31 = vector.shape_cast %30 : vector<1x32x96xbf16> to vector<32x96xbf16>
    %cst_15 = arith.constant dense<0.000000e+00> : vector<32x96xf32>
    %32 = tpu.matmul %29, %31, %cst_15 {dimension_numbers = #tpu.dot_dimension_numbers<[1], [0], [0], [1], [0, 0, 1, 1], [], []>} : vector<32x32xbf16>, vector<32x96xbf16>, vector<32x96xf32> -> vector<32x96xf32>
    %c34 = arith.constant 34 : index
    %c0_16 = arith.constant 0 : index
    %33 = vector.load %arg5[%c34, %c0_16] : memref<50x128xf32, #tpu.memory_space<vmem>>, vector<1x96xf32>
    %34 = vector.broadcast %33 : vector<1x96xf32> to vector<32x96xf32>
    %35 = arith.addf %32, %34 : vector<32x96xf32>
    %36 = arith.truncf %35 : vector<32x96xf32> to vector<32x96xbf16>
    %37 = vector.extract_strided_slice %36 {offsets = [0, 0], sizes = [16, 8], strides = [1, 1]} : vector<32x96xbf16> to vector<16x8xbf16>
    %38 = vector.extract_strided_slice %36 {offsets = [0, 8], sizes = [16, 8], strides = [1, 1]} : vector<32x96xbf16> to vector<16x8xbf16>
    %39 = vector.extract_strided_slice %36 {offsets = [0, 16], sizes = [16, 8], strides = [1, 1]} : vector<32x96xbf16> to vector<16x8xbf16>
    %40 = vector.extract_strided_slice %36 {offsets = [0, 24], sizes = [16, 8], strides = [1, 1]} : vector<32x96xbf16> to vector<16x8xbf16>
    %41 = vector.extract_strided_slice %36 {offsets = [16, 0], sizes = [16, 8], strides = [1, 1]} : vector<32x96xbf16> to vector<16x8xbf16>
    %42 = vector.extract_strided_slice %36 {offsets = [16, 8], sizes = [16, 8], strides = [1, 1]} : vector<32x96xbf16> to vector<16x8xbf16>
    %43 = vector.extract_strided_slice %36 {offsets = [16, 16], sizes = [16, 8], strides = [1, 1]} : vector<32x96xbf16> to vector<16x8xbf16>
    %44 = vector.extract_strided_slice %36 {offsets = [16, 24], sizes = [16, 8], strides = [1, 1]} : vector<32x96xbf16> to vector<16x8xbf16>
    %45 = vector.shape_cast %37 : vector<16x8xbf16> to vector<1x16x8xbf16>
    %46 = vector.shape_cast %38 : vector<16x8xbf16> to vector<1x16x8xbf16>
    %47 = vector.shape_cast %39 : vector<16x8xbf16> to vector<1x16x8xbf16>
    %48 = vector.shape_cast %40 : vector<16x8xbf16> to vector<1x16x8xbf16>
    %49 = vector.shape_cast %41 : vector<16x8xbf16> to vector<1x16x8xbf16>
    %50 = vector.shape_cast %42 : vector<16x8xbf16> to vector<1x16x8xbf16>
    %51 = vector.shape_cast %43 : vector<16x8xbf16> to vector<1x16x8xbf16>
    %52 = vector.shape_cast %44 : vector<16x8xbf16> to vector<1x16x8xbf16>
    %53 = tpu.concatenate %45, %46, %47, %48, %49, %50, %51, %52 in 0 : vector<1x16x8xbf16>, vector<1x16x8xbf16>, vector<1x16x8xbf16>, vector<1x16x8xbf16>, vector<1x16x8xbf16>, vector<1x16x8xbf16>, vector<1x16x8xbf16>, vector<1x16x8xbf16> -> vector<8x16x8xbf16>
    %54 = vector.extract_strided_slice %36 {offsets = [0, 32], sizes = [16, 8], strides = [1, 1]} : vector<32x96xbf16> to vector<16x8xbf16>
    %55 = vector.extract_strided_slice %36 {offsets = [0, 40], sizes = [16, 8], strides = [1, 1]} : vector<32x96xbf16> to vector<16x8xbf16>
    %56 = vector.extract_strided_slice %36 {offsets = [0, 48], sizes = [16, 8], strides = [1, 1]} : vector<32x96xbf16> to vector<16x8xbf16>
    %57 = vector.extract_strided_slice %36 {offsets = [0, 56], sizes = [16, 8], strides = [1, 1]} : vector<32x96xbf16> to vector<16x8xbf16>
    %58 = vector.extract_strided_slice %36 {offsets = [16, 32], sizes = [16, 8], strides = [1, 1]} : vector<32x96xbf16> to vector<16x8xbf16>
    %59 = vector.extract_strided_slice %36 {offsets = [16, 40], sizes = [16, 8], strides = [1, 1]} : vector<32x96xbf16> to vector<16x8xbf16>
    %60 = vector.extract_strided_slice %36 {offsets = [16, 48], sizes = [16, 8], strides = [1, 1]} : vector<32x96xbf16> to vector<16x8xbf16>
    %61 = vector.extract_strided_slice %36 {offsets = [16, 56], sizes = [16, 8], strides = [1, 1]} : vector<32x96xbf16> to vector<16x8xbf16>
    %62 = vector.shape_cast %54 : vector<16x8xbf16> to vector<1x16x8xbf16>
    %63 = vector.shape_cast %55 : vector<16x8xbf16> to vector<1x16x8xbf16>
    %64 = vector.shape_cast %56 : vector<16x8xbf16> to vector<1x16x8xbf16>
    %65 = vector.shape_cast %57 : vector<16x8xbf16> to vector<1x16x8xbf16>
    %66 = vector.shape_cast %58 : vector<16x8xbf16> to vector<1x16x8xbf16>
    %67 = vector.shape_cast %59 : vector<16x8xbf16> to vector<1x16x8xbf16>
    %68 = vector.shape_cast %60 : vector<16x8xbf16> to vector<1x16x8xbf16>
    %69 = vector.shape_cast %61 : vector<16x8xbf16> to vector<1x16x8xbf16>
    %70 = tpu.concatenate %62, %63, %64, %65, %66, %67, %68, %69 in 0 : vector<1x16x8xbf16>, vector<1x16x8xbf16>, vector<1x16x8xbf16>, vector<1x16x8xbf16>, vector<1x16x8xbf16>, vector<1x16x8xbf16>, vector<1x16x8xbf16>, vector<1x16x8xbf16> -> vector<8x16x8xbf16>
    %71 = vector.extract_strided_slice %36 {offsets = [0, 64], sizes = [16, 8], strides = [1, 1]} : vector<32x96xbf16> to vector<16x8xbf16>
    %72 = vector.extract_strided_slice %36 {offsets = [0, 72], sizes = [16, 8], strides = [1, 1]} : vector<32x96xbf16> to vector<16x8xbf16>
    %73 = vector.extract_strided_slice %36 {offsets = [0, 80], sizes = [16, 8], strides = [1, 1]} : vector<32x96xbf16> to vector<16x8xbf16>
    %74 = vector.extract_strided_slice %36 {offsets = [0, 88], sizes = [16, 8], strides = [1, 1]} : vector<32x96xbf16> to vector<16x8xbf16>
    %75 = vector.extract_strided_slice %36 {offsets = [16, 64], sizes = [16, 8], strides = [1, 1]} : vector<32x96xbf16> to vector<16x8xbf16>
    %76 = vector.extract_strided_slice %36 {offsets = [16, 72], sizes = [16, 8], strides = [1, 1]} : vector<32x96xbf16> to vector<16x8xbf16>
    %77 = vector.extract_strided_slice %36 {offsets = [16, 80], sizes = [16, 8], strides = [1, 1]} : vector<32x96xbf16> to vector<16x8xbf16>
    %78 = vector.extract_strided_slice %36 {offsets = [16, 88], sizes = [16, 8], strides = [1, 1]} : vector<32x96xbf16> to vector<16x8xbf16>
    %79 = vector.shape_cast %71 : vector<16x8xbf16> to vector<1x16x8xbf16>
    %80 = vector.shape_cast %72 : vector<16x8xbf16> to vector<1x16x8xbf16>
    %81 = vector.shape_cast %73 : vector<16x8xbf16> to vector<1x16x8xbf16>
    %82 = vector.shape_cast %74 : vector<16x8xbf16> to vector<1x16x8xbf16>
    %83 = vector.shape_cast %75 : vector<16x8xbf16> to vector<1x16x8xbf16>
    %84 = vector.shape_cast %76 : vector<16x8xbf16> to vector<1x16x8xbf16>
    %85 = vector.shape_cast %77 : vector<16x8xbf16> to vector<1x16x8xbf16>
    %86 = vector.shape_cast %78 : vector<16x8xbf16> to vector<1x16x8xbf16>
    %87 = tpu.concatenate %79, %80, %81, %82, %83, %84, %85, %86 in 0 : vector<1x16x8xbf16>, vector<1x16x8xbf16>, vector<1x16x8xbf16>, vector<1x16x8xbf16>, vector<1x16x8xbf16>, vector<1x16x8xbf16>, vector<1x16x8xbf16>, vector<1x16x8xbf16> -> vector<8x16x8xbf16>
    "tpu.trace_start"() <{level = 10 : i32, message = "bqd,bkd->bqk"}> : () -> ()
    %cst_17 = arith.constant dense<0.000000e+00> : vector<8x16x16xf32>
    %88 = tpu.matmul %53, %70, %cst_17 {dimension_numbers = #tpu.dot_dimension_numbers<[2], [2], [1], [1], [0, 0, 0, 1, 1, 1], [0], [0]>} : vector<8x16x8xbf16>, vector<8x16x8xbf16>, vector<8x16x16xf32> -> vector<8x16x16xf32>
    "tpu.trace_stop"() : () -> ()
    %cst_18 = arith.constant dense<0xFF800000> : vector<8x16xf32>
    %89 = vector.multi_reduction <maximumf>, %88, %cst_18 [2] : vector<8x16x16xf32> to vector<8x16xf32>
    %90 = vector.shape_cast %89 : vector<8x16xf32> to vector<8x16x1xf32>
    %91 = vector.broadcast %90 : vector<8x16x1xf32> to vector<8x16x16xf32>
    %92 = arith.subf %88, %91 : vector<8x16x16xf32>
    %93 = math.exp %92 : vector<8x16x16xf32>
    %cst_19 = arith.constant dense<0.000000e+00> : vector<8x16xf32>
    %94 = vector.multi_reduction <add>, %93, %cst_19 [2] : vector<8x16x16xf32> to vector<8x16xf32>
    %95 = vector.shape_cast %94 : vector<8x16xf32> to vector<8x16x1xf32>
    %96 = tpu.reciprocal %95 {approx = true} : vector<8x16x1xf32> -> vector<8x16x1xf32>
    %97 = vector.broadcast %96 : vector<8x16x1xf32> to vector<8x16x16xf32>
    %98 = arith.mulf %93, %97 : vector<8x16x16xf32>
    %99 = arith.truncf %98 : vector<8x16x16xf32> to vector<8x16x16xbf16>
    "tpu.trace_start"() <{level = 10 : i32, message = "bqk,bkd->bqd"}> : () -> ()
    %cst_20 = arith.constant dense<0.000000e+00> : vector<8x16x8xf32>
    %100 = tpu.matmul %99, %87, %cst_20 {dimension_numbers = #tpu.dot_dimension_numbers<[2], [1], [1], [2], [0, 0, 0, 1, 1, 2], [0], [0]>} : vector<8x16x16xbf16>, vector<8x16x8xbf16>, vector<8x16x8xf32> -> vector<8x16x8xf32>
    "tpu.trace_stop"() : () -> ()
    %101 = arith.truncf %100 : vector<8x16x8xf32> to vector<8x16x8xbf16>
    %c0_21 = arith.constant 0 : index
    %c0_22 = arith.constant 0 : index
    %c0_23 = arith.constant 0 : index
    %c0_24 = arith.constant 0 : index
    %102 = vector.load %arg4[%c0_21, %c0_22, %c0_23, %c0_24] : memref<2x8x8x32xbf16, #tpu.memory_space<vmem>>, vector<1x8x8x32xbf16>
    %103 = vector.shape_cast %102 : vector<1x8x8x32xbf16> to vector<8x8x32xbf16>
    "tpu.trace_start"() <{level = 10 : i32, message = "bnk,bkd->bnd"}> : () -> ()
    %cst_25 = arith.constant dense<0.000000e+00> : vector<8x16x32xf32>
    %104 = tpu.matmul %101, %103, %cst_25 {dimension_numbers = #tpu.dot_dimension_numbers<[2], [1], [1], [2], [0, 0, 0, 1, 1, 2], [0], [0]>} : vector<8x16x8xbf16>, vector<8x8x32xbf16>, vector<8x16x32xf32> -> vector<8x16x32xf32>
    "tpu.trace_stop"() : () -> ()
    %105 = vector.extract_strided_slice %104 {offsets = [0, 0, 0], sizes = [4, 16, 32], strides = [1, 1, 1]} : vector<8x16x32xf32> to vector<4x16x32xf32>
    %cst_26 = arith.constant dense<0.000000e+00> : vector<16x32xf32>
    %106 = vector.multi_reduction <add>, %105, %cst_26 [0] : vector<4x16x32xf32> to vector<16x32xf32>
    %107 = vector.extract_strided_slice %104 {offsets = [4, 0, 0], sizes = [4, 16, 32], strides = [1, 1, 1]} : vector<8x16x32xf32> to vector<4x16x32xf32>
    %cst_27 = arith.constant dense<0.000000e+00> : vector<16x32xf32>
    %108 = vector.multi_reduction <add>, %107, %cst_27 [0] : vector<4x16x32xf32> to vector<16x32xf32>
    %109 = tpu.concatenate %106, %108 in 0 : vector<16x32xf32>, vector<16x32xf32> -> vector<32x32xf32>
    %110 = arith.addf %4, %109 : vector<32x32xf32>
    %c35 = arith.constant 35 : index
    %c0_28 = arith.constant 0 : index
    %111 = vector.load %arg5[%c35, %c0_28] : memref<50x128xf32, #tpu.memory_space<vmem>>, vector<1x32xf32>
    %112 = vector.broadcast %111 : vector<1x32xf32> to vector<32x32xf32>
    %113 = arith.addf %110, %112 : vector<32x32xf32>
    %c36 = arith.constant 36 : index
    %c0_29 = arith.constant 0 : index
    %114 = vector.load %arg5[%c36, %c0_29] : memref<50x128xf32, #tpu.memory_space<vmem>>, vector<1x32xf32>
    %c37 = arith.constant 37 : index
    %c0_30 = arith.constant 0 : index
    %115 = vector.load %arg5[%c37, %c0_30] : memref<50x128xf32, #tpu.memory_space<vmem>>, vector<1x32xf32>
    %cst_31 = arith.constant dense<0.000000e+00> : vector<32xf32>
    %116 = vector.multi_reduction <add>, %113, %cst_31 [1] : vector<32x32xf32> to vector<32xf32>
    %117 = vector.shape_cast %116 : vector<32xf32> to vector<32x1xf32>
    %cst_32 = arith.constant 3.200000e+01 : f32
    %118 = vector.broadcast %cst_32 : f32 to vector<32x1xf32>
    %119 = arith.divf %117, %118 : vector<32x1xf32>
    %120 = arith.mulf %113, %113 : vector<32x32xf32>
    %cst_33 = arith.constant dense<0.000000e+00> : vector<32xf32>
    %121 = vector.multi_reduction <add>, %120, %cst_33 [1] : vector<32x32xf32> to vector<32xf32>
    %122 = vector.shape_cast %121 : vector<32xf32> to vector<32x1xf32>
    %cst_34 = arith.constant 3.200000e+01 : f32
    %123 = vector.broadcast %cst_34 : f32 to vector<32x1xf32>
    %124 = arith.divf %122, %123 : vector<32x1xf32>
    %125 = arith.mulf %119, %119 : vector<32x1xf32>
    %126 = arith.subf %124, %125 : vector<32x1xf32>
    %127 = vector.broadcast %119 : vector<32x1xf32> to vector<32x32xf32>
    %128 = arith.subf %113, %127 : vector<32x32xf32>
    %cst_35 = arith.constant 9.99999997E-7 : f32
    %129 = vector.broadcast %cst_35 : f32 to vector<32x1xf32>
    %130 = arith.addf %126, %129 : vector<32x1xf32>
    %131 = math.rsqrt %130 : vector<32x1xf32>
    %132 = vector.broadcast %131 : vector<32x1xf32> to vector<32x32xf32>
    %133 = arith.mulf %128, %132 : vector<32x32xf32>
    %134 = vector.broadcast %114 : vector<1x32xf32> to vector<32x32xf32>
    %135 = arith.mulf %133, %134 : vector<32x32xf32>
    %136 = vector.broadcast %115 : vector<1x32xf32> to vector<32x32xf32>
    %137 = arith.addf %135, %136 : vector<32x32xf32>
    %138 = arith.truncf %137 : vector<32x32xf32> to vector<32x32xbf16>
    %c0_36 = arith.constant 0 : index
    %c0_37 = arith.constant 0 : index
    %c0_38 = arith.constant 0 : index
    %139 = vector.load %arg3[%c0_36, %c0_37, %c0_38] : memref<2x32x128xbf16, #tpu.memory_space<vmem>>, vector<1x32x128xbf16>
    %140 = vector.shape_cast %139 : vector<1x32x128xbf16> to vector<32x128xbf16>
    %cst_39 = arith.constant dense<0.000000e+00> : vector<32x128xf32>
    %141 = tpu.matmul %138, %140, %cst_39 {dimension_numbers = #tpu.dot_dimension_numbers<[1], [0], [0], [1], [0, 0, 1, 1], [], []>} : vector<32x32xbf16>, vector<32x128xbf16>, vector<32x128xf32> -> vector<32x128xf32>
    %c38 = arith.constant 38 : index
    %c0_40 = arith.constant 0 : index
    %142 = vector.load %arg5[%c38, %c0_40] : memref<50x128xf32, #tpu.memory_space<vmem>>, vector<1x128xf32>
    %143 = vector.broadcast %142 : vector<1x128xf32> to vector<32x128xf32>
    %144 = arith.addf %141, %143 : vector<32x128xf32>
    %cst_41 = arith.constant 0.707106769 : f32
    %145 = vector.broadcast %cst_41 : f32 to vector<32x128xf32>
    %146 = arith.mulf %144, %145 : vector<32x128xf32>
    %cst_42 = arith.constant 0.000000e+00 : f32
    %147 = vector.broadcast %cst_42 : f32 to vector<32x128xf32>
    %148 = arith.subf %147, %146 : vector<32x128xf32>
    %149 = arith.maximumf %146, %148 : vector<32x128xf32>
    %cst_43 = arith.constant 0.327591091 : f32
    %150 = vector.broadcast %cst_43 : f32 to vector<32x128xf32>
    %151 = arith.mulf %150, %149 : vector<32x128xf32>
    %cst_44 = arith.constant 1.000000e+00 : f32
    %152 = vector.broadcast %cst_44 : f32 to vector<32x128xf32>
    %153 = arith.addf %152, %151 : vector<32x128xf32>
    %cst_45 = arith.constant 1.000000e+00 : f32
    %154 = vector.broadcast %cst_45 : f32 to vector<32x128xf32>
    %155 = arith.divf %154, %153 : vector<32x128xf32>
    %cst_46 = arith.constant 1.06140542 : f32
    %156 = vector.broadcast %cst_46 : f32 to vector<32x128xf32>
    %157 = arith.mulf %155, %156 : vector<32x128xf32>
    %cst_47 = arith.constant -1.45315206 : f32
    %158 = vector.broadcast %cst_47 : f32 to vector<32x128xf32>
    %159 = arith.addf %158, %157 : vector<32x128xf32>
    %160 = arith.mulf %155, %159 : vector<32x128xf32>
    %cst_48 = arith.constant 1.42141378 : f32
    %161 = vector.broadcast %cst_48 : f32 to vector<32x128xf32>
    %162 = arith.addf %161, %160 : vector<32x128xf32>
    %163 = arith.mulf %155, %162 : vector<32x128xf32>
    %cst_49 = arith.constant -0.284496725 : f32
    %164 = vector.broadcast %cst_49 : f32 to vector<32x128xf32>
    %165 = arith.addf %164, %163 : vector<32x128xf32>
    %166 = arith.mulf %155, %165 : vector<32x128xf32>
    %cst_50 = arith.constant 0.254829586 : f32
    %167 = vector.broadcast %cst_50 : f32 to vector<32x128xf32>
    %168 = arith.addf %167, %166 : vector<32x128xf32>
    %169 = arith.mulf %155, %168 : vector<32x128xf32>
    %170 = arith.mulf %149, %149 : vector<32x128xf32>
    %cst_51 = arith.constant 0.000000e+00 : f32
    %171 = vector.broadcast %cst_51 : f32 to vector<32x128xf32>
    %172 = arith.subf %171, %170 : vector<32x128xf32>
    %173 = math.exp %172 : vector<32x128xf32>
    %174 = arith.mulf %169, %173 : vector<32x128xf32>
    %cst_52 = arith.constant 1.000000e+00 : f32
    %175 = vector.broadcast %cst_52 : f32 to vector<32x128xf32>
    %176 = arith.subf %175, %174 : vector<32x128xf32>
    %cst_53 = arith.constant 0.000000e+00 : f32
    %177 = vector.broadcast %cst_53 : f32 to vector<32x128xf32>
    %178 = arith.cmpf olt, %146, %177 : vector<32x128xf32>
    %cst_54 = arith.constant 0.000000e+00 : f32
    %179 = vector.broadcast %cst_54 : f32 to vector<32x128xf32>
    %180 = arith.subf %179, %176 : vector<32x128xf32>
    %181 = arith.select %178, %180, %176 : vector<32x128xi1>, vector<32x128xf32>
    %cst_55 = arith.constant 5.000000e-01 : f32
    %182 = vector.broadcast %cst_55 : f32 to vector<32x128xf32>
    %183 = arith.mulf %182, %144 : vector<32x128xf32>
    %cst_56 = arith.constant 1.000000e+00 : f32
    %184 = vector.broadcast %cst_56 : f32 to vector<32x128xf32>
    %185 = arith.addf %184, %181 : vector<32x128xf32>
    %186 = arith.mulf %183, %185 : vector<32x128xf32>
    %187 = arith.truncf %186 : vector<32x128xf32> to vector<32x128xbf16>
    %c256 = arith.constant 256 : index
    %c0_57 = arith.constant 0 : index
    %188 = vector.load %arg1[%c256, %c0_57] : memref<512x32xbf16, #tpu.memory_space<vmem>>, vector<128x32xbf16>
    %cst_58 = arith.constant dense<0.000000e+00> : vector<32x32xf32>
    %189 = tpu.matmul %187, %188, %cst_58 {dimension_numbers = #tpu.dot_dimension_numbers<[1], [0], [0], [1], [0, 0, 1, 1], [], []>} : vector<32x128xbf16>, vector<128x32xbf16>, vector<32x32xf32> -> vector<32x32xf32>
    %190 = arith.addf %113, %189 : vector<32x32xf32>
    %c39 = arith.constant 39 : index
    %c0_59 = arith.constant 0 : index
    %191 = vector.load %arg5[%c39, %c0_59] : memref<50x128xf32, #tpu.memory_space<vmem>>, vector<1x32xf32>
    %192 = vector.broadcast %191 : vector<1x32xf32> to vector<32x32xf32>
    %193 = arith.addf %190, %192 : vector<32x32xf32>
    %c40 = arith.constant 40 : index
    %c0_60 = arith.constant 0 : index
    %194 = vector.load %arg5[%c40, %c0_60] : memref<50x128xf32, #tpu.memory_space<vmem>>, vector<1x32xf32>
    %c41 = arith.constant 41 : index
    %c0_61 = arith.constant 0 : index
    %195 = vector.load %arg5[%c41, %c0_61] : memref<50x128xf32, #tpu.memory_space<vmem>>, vector<1x32xf32>
    %cst_62 = arith.constant dense<0.000000e+00> : vector<32xf32>
    %196 = vector.multi_reduction <add>, %193, %cst_62 [1] : vector<32x32xf32> to vector<32xf32>
    %197 = vector.shape_cast %196 : vector<32xf32> to vector<32x1xf32>
    %cst_63 = arith.constant 3.200000e+01 : f32
    %198 = vector.broadcast %cst_63 : f32 to vector<32x1xf32>
    %199 = arith.divf %197, %198 : vector<32x1xf32>
    %200 = arith.mulf %193, %193 : vector<32x32xf32>
    %cst_64 = arith.constant dense<0.000000e+00> : vector<32xf32>
    %201 = vector.multi_reduction <add>, %200, %cst_64 [1] : vector<32x32xf32> to vector<32xf32>
    %202 = vector.shape_cast %201 : vector<32xf32> to vector<32x1xf32>
    %cst_65 = arith.constant 3.200000e+01 : f32
    %203 = vector.broadcast %cst_65 : f32 to vector<32x1xf32>
    %204 = arith.divf %202, %203 : vector<32x1xf32>
    %205 = arith.mulf %199, %199 : vector<32x1xf32>
    %206 = arith.subf %204, %205 : vector<32x1xf32>
    %207 = vector.broadcast %199 : vector<32x1xf32> to vector<32x32xf32>
    %208 = arith.subf %193, %207 : vector<32x32xf32>
    %cst_66 = arith.constant 9.99999997E-7 : f32
    %209 = vector.broadcast %cst_66 : f32 to vector<32x1xf32>
    %210 = arith.addf %206, %209 : vector<32x1xf32>
    %211 = math.rsqrt %210 : vector<32x1xf32>
    %212 = vector.broadcast %211 : vector<32x1xf32> to vector<32x32xf32>
    %213 = arith.mulf %208, %212 : vector<32x32xf32>
    %214 = vector.broadcast %194 : vector<1x32xf32> to vector<32x32xf32>
    %215 = arith.mulf %213, %214 : vector<32x32xf32>
    %216 = vector.broadcast %195 : vector<1x32xf32> to vector<32x32xf32>
    %217 = arith.addf %215, %216 : vector<32x32xf32>
    %218 = arith.truncf %217 : vector<32x32xf32> to vector<32x32xbf16>
    %c1 = arith.constant 1 : index
    %c0_67 = arith.constant 0 : index
    %c0_68 = arith.constant 0 : index
    %219 = vector.load %arg2[%c1, %c0_67, %c0_68] : memref<2x32x96xbf16, #tpu.memory_space<vmem>>, vector<1x32x96xbf16>
    %220 = vector.shape_cast %219 : vector<1x32x96xbf16> to vector<32x96xbf16>
    %cst_69 = arith.constant dense<0.000000e+00> : vector<32x96xf32>
    %221 = tpu.matmul %218, %220, %cst_69 {dimension_numbers = #tpu.dot_dimension_numbers<[1], [0], [0], [1], [0, 0, 1, 1], [], []>} : vector<32x32xbf16>, vector<32x96xbf16>, vector<32x96xf32> -> vector<32x96xf32>
    %c42 = arith.constant 42 : index
    %c0_70 = arith.constant 0 : index
    %222 = vector.load %arg5[%c42, %c0_70] : memref<50x128xf32, #tpu.memory_space<vmem>>, vector<1x96xf32>
    %223 = vector.broadcast %222 : vector<1x96xf32> to vector<32x96xf32>
    %224 = arith.addf %221, %223 : vector<32x96xf32>
    %225 = arith.truncf %224 : vector<32x96xf32> to vector<32x96xbf16>
    %226 = vector.extract_strided_slice %225 {offsets = [0, 0], sizes = [16, 8], strides = [1, 1]} : vector<32x96xbf16> to vector<16x8xbf16>
    %227 = vector.extract_strided_slice %225 {offsets = [0, 8], sizes = [16, 8], strides = [1, 1]} : vector<32x96xbf16> to vector<16x8xbf16>
    %228 = vector.extract_strided_slice %225 {offsets = [0, 16], sizes = [16, 8], strides = [1, 1]} : vector<32x96xbf16> to vector<16x8xbf16>
    %229 = vector.extract_strided_slice %225 {offsets = [0, 24], sizes = [16, 8], strides = [1, 1]} : vector<32x96xbf16> to vector<16x8xbf16>
    %230 = vector.extract_strided_slice %225 {offsets = [16, 0], sizes = [16, 8], strides = [1, 1]} : vector<32x96xbf16> to vector<16x8xbf16>
    %231 = vector.extract_strided_slice %225 {offsets = [16, 8], sizes = [16, 8], strides = [1, 1]} : vector<32x96xbf16> to vector<16x8xbf16>
    %232 = vector.extract_strided_slice %225 {offsets = [16, 16], sizes = [16, 8], strides = [1, 1]} : vector<32x96xbf16> to vector<16x8xbf16>
    %233 = vector.extract_strided_slice %225 {offsets = [16, 24], sizes = [16, 8], strides = [1, 1]} : vector<32x96xbf16> to vector<16x8xbf16>
    %234 = vector.shape_cast %226 : vector<16x8xbf16> to vector<1x16x8xbf16>
    %235 = vector.shape_cast %227 : vector<16x8xbf16> to vector<1x16x8xbf16>
    %236 = vector.shape_cast %228 : vector<16x8xbf16> to vector<1x16x8xbf16>
    %237 = vector.shape_cast %229 : vector<16x8xbf16> to vector<1x16x8xbf16>
    %238 = vector.shape_cast %230 : vector<16x8xbf16> to vector<1x16x8xbf16>
    %239 = vector.shape_cast %231 : vector<16x8xbf16> to vector<1x16x8xbf16>
    %240 = vector.shape_cast %232 : vector<16x8xbf16> to vector<1x16x8xbf16>
    %241 = vector.shape_cast %233 : vector<16x8xbf16> to vector<1x16x8xbf16>
    %242 = tpu.concatenate %234, %235, %236, %237, %238, %239, %240, %241 in 0 : vector<1x16x8xbf16>, vector<1x16x8xbf16>, vector<1x16x8xbf16>, vector<1x16x8xbf16>, vector<1x16x8xbf16>, vector<1x16x8xbf16>, vector<1x16x8xbf16>, vector<1x16x8xbf16> -> vector<8x16x8xbf16>
    %243 = vector.extract_strided_slice %225 {offsets = [0, 32], sizes = [16, 8], strides = [1, 1]} : vector<32x96xbf16> to vector<16x8xbf16>
    %244 = vector.extract_strided_slice %225 {offsets = [0, 40], sizes = [16, 8], strides = [1, 1]} : vector<32x96xbf16> to vector<16x8xbf16>
    %245 = vector.extract_strided_slice %225 {offsets = [0, 48], sizes = [16, 8], strides = [1, 1]} : vector<32x96xbf16> to vector<16x8xbf16>
    %246 = vector.extract_strided_slice %225 {offsets = [0, 56], sizes = [16, 8], strides = [1, 1]} : vector<32x96xbf16> to vector<16x8xbf16>
    %247 = vector.extract_strided_slice %225 {offsets = [16, 32], sizes = [16, 8], strides = [1, 1]} : vector<32x96xbf16> to vector<16x8xbf16>
    %248 = vector.extract_strided_slice %225 {offsets = [16, 40], sizes = [16, 8], strides = [1, 1]} : vector<32x96xbf16> to vector<16x8xbf16>
    %249 = vector.extract_strided_slice %225 {offsets = [16, 48], sizes = [16, 8], strides = [1, 1]} : vector<32x96xbf16> to vector<16x8xbf16>
    %250 = vector.extract_strided_slice %225 {offsets = [16, 56], sizes = [16, 8], strides = [1, 1]} : vector<32x96xbf16> to vector<16x8xbf16>
    %251 = vector.shape_cast %243 : vector<16x8xbf16> to vector<1x16x8xbf16>
    %252 = vector.shape_cast %244 : vector<16x8xbf16> to vector<1x16x8xbf16>
    %253 = vector.shape_cast %245 : vector<16x8xbf16> to vector<1x16x8xbf16>
    %254 = vector.shape_cast %246 : vector<16x8xbf16> to vector<1x16x8xbf16>
    %255 = vector.shape_cast %247 : vector<16x8xbf16> to vector<1x16x8xbf16>
    %256 = vector.shape_cast %248 : vector<16x8xbf16> to vector<1x16x8xbf16>
    %257 = vector.shape_cast %249 : vector<16x8xbf16> to vector<1x16x8xbf16>
    %258 = vector.shape_cast %250 : vector<16x8xbf16> to vector<1x16x8xbf16>
    %259 = tpu.concatenate %251, %252, %253, %254, %255, %256, %257, %258 in 0 : vector<1x16x8xbf16>, vector<1x16x8xbf16>, vector<1x16x8xbf16>, vector<1x16x8xbf16>, vector<1x16x8xbf16>, vector<1x16x8xbf16>, vector<1x16x8xbf16>, vector<1x16x8xbf16> -> vector<8x16x8xbf16>
    %260 = vector.extract_strided_slice %225 {offsets = [0, 64], sizes = [16, 8], strides = [1, 1]} : vector<32x96xbf16> to vector<16x8xbf16>
    %261 = vector.extract_strided_slice %225 {offsets = [0, 72], sizes = [16, 8], strides = [1, 1]} : vector<32x96xbf16> to vector<16x8xbf16>
    %262 = vector.extract_strided_slice %225 {offsets = [0, 80], sizes = [16, 8], strides = [1, 1]} : vector<32x96xbf16> to vector<16x8xbf16>
    %263 = vector.extract_strided_slice %225 {offsets = [0, 88], sizes = [16, 8], strides = [1, 1]} : vector<32x96xbf16> to vector<16x8xbf16>
    %264 = vector.extract_strided_slice %225 {offsets = [16, 64], sizes = [16, 8], strides = [1, 1]} : vector<32x96xbf16> to vector<16x8xbf16>
    %265 = vector.extract_strided_slice %225 {offsets = [16, 72], sizes = [16, 8], strides = [1, 1]} : vector<32x96xbf16> to vector<16x8xbf16>
    %266 = vector.extract_strided_slice %225 {offsets = [16, 80], sizes = [16, 8], strides = [1, 1]} : vector<32x96xbf16> to vector<16x8xbf16>
    %267 = vector.extract_strided_slice %225 {offsets = [16, 88], sizes = [16, 8], strides = [1, 1]} : vector<32x96xbf16> to vector<16x8xbf16>
    %268 = vector.shape_cast %260 : vector<16x8xbf16> to vector<1x16x8xbf16>
    %269 = vector.shape_cast %261 : vector<16x8xbf16> to vector<1x16x8xbf16>
    %270 = vector.shape_cast %262 : vector<16x8xbf16> to vector<1x16x8xbf16>
    %271 = vector.shape_cast %263 : vector<16x8xbf16> to vector<1x16x8xbf16>
    %272 = vector.shape_cast %264 : vector<16x8xbf16> to vector<1x16x8xbf16>
    %273 = vector.shape_cast %265 : vector<16x8xbf16> to vector<1x16x8xbf16>
    %274 = vector.shape_cast %266 : vector<16x8xbf16> to vector<1x16x8xbf16>
    %275 = vector.shape_cast %267 : vector<16x8xbf16> to vector<1x16x8xbf16>
    %276 = tpu.concatenate %268, %269, %270, %271, %272, %273, %274, %275 in 0 : vector<1x16x8xbf16>, vector<1x16x8xbf16>, vector<1x16x8xbf16>, vector<1x16x8xbf16>, vector<1x16x8xbf16>, vector<1x16x8xbf16>, vector<1x16x8xbf16>, vector<1x16x8xbf16> -> vector<8x16x8xbf16>
    "tpu.trace_start"() <{level = 10 : i32, message = "bqd,bkd->bqk"}> : () -> ()
    %cst_71 = arith.constant dense<0.000000e+00> : vector<8x16x16xf32>
    %277 = tpu.matmul %242, %259, %cst_71 {dimension_numbers = #tpu.dot_dimension_numbers<[2], [2], [1], [1], [0, 0, 0, 1, 1, 1], [0], [0]>} : vector<8x16x8xbf16>, vector<8x16x8xbf16>, vector<8x16x16xf32> -> vector<8x16x16xf32>
    "tpu.trace_stop"() : () -> ()
    %cst_72 = arith.constant dense<0xFF800000> : vector<8x16xf32>
    %278 = vector.multi_reduction <maximumf>, %277, %cst_72 [2] : vector<8x16x16xf32> to vector<8x16xf32>
    %279 = vector.shape_cast %278 : vector<8x16xf32> to vector<8x16x1xf32>
    %280 = vector.broadcast %279 : vector<8x16x1xf32> to vector<8x16x16xf32>
    %281 = arith.subf %277, %280 : vector<8x16x16xf32>
    %282 = math.exp %281 : vector<8x16x16xf32>
    %cst_73 = arith.constant dense<0.000000e+00> : vector<8x16xf32>
    %283 = vector.multi_reduction <add>, %282, %cst_73 [2] : vector<8x16x16xf32> to vector<8x16xf32>
    %284 = vector.shape_cast %283 : vector<8x16xf32> to vector<8x16x1xf32>
    %285 = tpu.reciprocal %284 {approx = true} : vector<8x16x1xf32> -> vector<8x16x1xf32>
    %286 = vector.broadcast %285 : vector<8x16x1xf32> to vector<8x16x16xf32>
    %287 = arith.mulf %282, %286 : vector<8x16x16xf32>
    %288 = arith.truncf %287 : vector<8x16x16xf32> to vector<8x16x16xbf16>
    "tpu.trace_start"() <{level = 10 : i32, message = "bqk,bkd->bqd"}> : () -> ()
    %cst_74 = arith.constant dense<0.000000e+00> : vector<8x16x8xf32>
    %289 = tpu.matmul %288, %276, %cst_74 {dimension_numbers = #tpu.dot_dimension_numbers<[2], [1], [1], [2], [0, 0, 0, 1, 1, 2], [0], [0]>} : vector<8x16x16xbf16>, vector<8x16x8xbf16>, vector<8x16x8xf32> -> vector<8x16x8xf32>
    "tpu.trace_stop"() : () -> ()
    %290 = arith.truncf %289 : vector<8x16x8xf32> to vector<8x16x8xbf16>
    %c1_75 = arith.constant 1 : index
    %c0_76 = arith.constant 0 : index
    %c0_77 = arith.constant 0 : index
    %c0_78 = arith.constant 0 : index
    %291 = vector.load %arg4[%c1_75, %c0_76, %c0_77, %c0_78] : memref<2x8x8x32xbf16, #tpu.memory_space<vmem>>, vector<1x8x8x32xbf16>
    %292 = vector.shape_cast %291 : vector<1x8x8x32xbf16> to vector<8x8x32xbf16>
    "tpu.trace_start"() <{level = 10 : i32, message = "bnk,bkd->bnd"}> : () -> ()
    %cst_79 = arith.constant dense<0.000000e+00> : vector<8x16x32xf32>
    %293 = tpu.matmul %290, %292, %cst_79 {dimension_numbers = #tpu.dot_dimension_numbers<[2], [1], [1], [2], [0, 0, 0, 1, 1, 2], [0], [0]>} : vector<8x16x8xbf16>, vector<8x8x32xbf16>, vector<8x16x32xf32> -> vector<8x16x32xf32>
    "tpu.trace_stop"() : () -> ()
    %294 = vector.extract_strided_slice %293 {offsets = [0, 0, 0], sizes = [4, 16, 32], strides = [1, 1, 1]} : vector<8x16x32xf32> to vector<4x16x32xf32>
    %cst_80 = arith.constant dense<0.000000e+00> : vector<16x32xf32>
    %295 = vector.multi_reduction <add>, %294, %cst_80 [0] : vector<4x16x32xf32> to vector<16x32xf32>
    %296 = vector.extract_strided_slice %293 {offsets = [4, 0, 0], sizes = [4, 16, 32], strides = [1, 1, 1]} : vector<8x16x32xf32> to vector<4x16x32xf32>
    %cst_81 = arith.constant dense<0.000000e+00> : vector<16x32xf32>
    %297 = vector.multi_reduction <add>, %296, %cst_81 [0] : vector<4x16x32xf32> to vector<16x32xf32>
    %298 = tpu.concatenate %295, %297 in 0 : vector<16x32xf32>, vector<16x32xf32> -> vector<32x32xf32>
    %299 = arith.addf %193, %298 : vector<32x32xf32>
    %c43 = arith.constant 43 : index
    %c0_82 = arith.constant 0 : index
    %300 = vector.load %arg5[%c43, %c0_82] : memref<50x128xf32, #tpu.memory_space<vmem>>, vector<1x32xf32>
    %301 = vector.broadcast %300 : vector<1x32xf32> to vector<32x32xf32>
    %302 = arith.addf %299, %301 : vector<32x32xf32>
    %c44 = arith.constant 44 : index
    %c0_83 = arith.constant 0 : index
    %303 = vector.load %arg5[%c44, %c0_83] : memref<50x128xf32, #tpu.memory_space<vmem>>, vector<1x32xf32>
    %c45 = arith.constant 45 : index
    %c0_84 = arith.constant 0 : index
    %304 = vector.load %arg5[%c45, %c0_84] : memref<50x128xf32, #tpu.memory_space<vmem>>, vector<1x32xf32>
    %cst_85 = arith.constant dense<0.000000e+00> : vector<32xf32>
    %305 = vector.multi_reduction <add>, %302, %cst_85 [1] : vector<32x32xf32> to vector<32xf32>
    %306 = vector.shape_cast %305 : vector<32xf32> to vector<32x1xf32>
    %cst_86 = arith.constant 3.200000e+01 : f32
    %307 = vector.broadcast %cst_86 : f32 to vector<32x1xf32>
    %308 = arith.divf %306, %307 : vector<32x1xf32>
    %309 = arith.mulf %302, %302 : vector<32x32xf32>
    %cst_87 = arith.constant dense<0.000000e+00> : vector<32xf32>
    %310 = vector.multi_reduction <add>, %309, %cst_87 [1] : vector<32x32xf32> to vector<32xf32>
    %311 = vector.shape_cast %310 : vector<32xf32> to vector<32x1xf32>
    %cst_88 = arith.constant 3.200000e+01 : f32
    %312 = vector.broadcast %cst_88 : f32 to vector<32x1xf32>
    %313 = arith.divf %311, %312 : vector<32x1xf32>
    %314 = arith.mulf %308, %308 : vector<32x1xf32>
    %315 = arith.subf %313, %314 : vector<32x1xf32>
    %316 = vector.broadcast %308 : vector<32x1xf32> to vector<32x32xf32>
    %317 = arith.subf %302, %316 : vector<32x32xf32>
    %cst_89 = arith.constant 9.99999997E-7 : f32
    %318 = vector.broadcast %cst_89 : f32 to vector<32x1xf32>
    %319 = arith.addf %315, %318 : vector<32x1xf32>
    %320 = math.rsqrt %319 : vector<32x1xf32>
    %321 = vector.broadcast %320 : vector<32x1xf32> to vector<32x32xf32>
    %322 = arith.mulf %317, %321 : vector<32x32xf32>
    %323 = vector.broadcast %303 : vector<1x32xf32> to vector<32x32xf32>
    %324 = arith.mulf %322, %323 : vector<32x32xf32>
    %325 = vector.broadcast %304 : vector<1x32xf32> to vector<32x32xf32>
    %326 = arith.addf %324, %325 : vector<32x32xf32>
    %327 = arith.truncf %326 : vector<32x32xf32> to vector<32x32xbf16>
    %c1_90 = arith.constant 1 : index
    %c0_91 = arith.constant 0 : index
    %c0_92 = arith.constant 0 : index
    %328 = vector.load %arg3[%c1_90, %c0_91, %c0_92] : memref<2x32x128xbf16, #tpu.memory_space<vmem>>, vector<1x32x128xbf16>
    %329 = vector.shape_cast %328 : vector<1x32x128xbf16> to vector<32x128xbf16>
    %cst_93 = arith.constant dense<0.000000e+00> : vector<32x128xf32>
    %330 = tpu.matmul %327, %329, %cst_93 {dimension_numbers = #tpu.dot_dimension_numbers<[1], [0], [0], [1], [0, 0, 1, 1], [], []>} : vector<32x32xbf16>, vector<32x128xbf16>, vector<32x128xf32> -> vector<32x128xf32>
    %c46 = arith.constant 46 : index
    %c0_94 = arith.constant 0 : index
    %331 = vector.load %arg5[%c46, %c0_94] : memref<50x128xf32, #tpu.memory_space<vmem>>, vector<1x128xf32>
    %332 = vector.broadcast %331 : vector<1x128xf32> to vector<32x128xf32>
    %333 = arith.addf %330, %332 : vector<32x128xf32>
    %cst_95 = arith.constant 0.707106769 : f32
    %334 = vector.broadcast %cst_95 : f32 to vector<32x128xf32>
    %335 = arith.mulf %333, %334 : vector<32x128xf32>
    %cst_96 = arith.constant 0.000000e+00 : f32
    %336 = vector.broadcast %cst_96 : f32 to vector<32x128xf32>
    %337 = arith.subf %336, %335 : vector<32x128xf32>
    %338 = arith.maximumf %335, %337 : vector<32x128xf32>
    %cst_97 = arith.constant 0.327591091 : f32
    %339 = vector.broadcast %cst_97 : f32 to vector<32x128xf32>
    %340 = arith.mulf %339, %338 : vector<32x128xf32>
    %cst_98 = arith.constant 1.000000e+00 : f32
    %341 = vector.broadcast %cst_98 : f32 to vector<32x128xf32>
    %342 = arith.addf %341, %340 : vector<32x128xf32>
    %cst_99 = arith.constant 1.000000e+00 : f32
    %343 = vector.broadcast %cst_99 : f32 to vector<32x128xf32>
    %344 = arith.divf %343, %342 : vector<32x128xf32>
    %cst_100 = arith.constant 1.06140542 : f32
    %345 = vector.broadcast %cst_100 : f32 to vector<32x128xf32>
    %346 = arith.mulf %344, %345 : vector<32x128xf32>
    %cst_101 = arith.constant -1.45315206 : f32
    %347 = vector.broadcast %cst_101 : f32 to vector<32x128xf32>
    %348 = arith.addf %347, %346 : vector<32x128xf32>
    %349 = arith.mulf %344, %348 : vector<32x128xf32>
    %cst_102 = arith.constant 1.42141378 : f32
    %350 = vector.broadcast %cst_102 : f32 to vector<32x128xf32>
    %351 = arith.addf %350, %349 : vector<32x128xf32>
    %352 = arith.mulf %344, %351 : vector<32x128xf32>
    %cst_103 = arith.constant -0.284496725 : f32
    %353 = vector.broadcast %cst_103 : f32 to vector<32x128xf32>
    %354 = arith.addf %353, %352 : vector<32x128xf32>
    %355 = arith.mulf %344, %354 : vector<32x128xf32>
    %cst_104 = arith.constant 0.254829586 : f32
    %356 = vector.broadcast %cst_104 : f32 to vector<32x128xf32>
    %357 = arith.addf %356, %355 : vector<32x128xf32>
    %358 = arith.mulf %344, %357 : vector<32x128xf32>
    %359 = arith.mulf %338, %338 : vector<32x128xf32>
    %cst_105 = arith.constant 0.000000e+00 : f32
    %360 = vector.broadcast %cst_105 : f32 to vector<32x128xf32>
    %361 = arith.subf %360, %359 : vector<32x128xf32>
    %362 = math.exp %361 : vector<32x128xf32>
    %363 = arith.mulf %358, %362 : vector<32x128xf32>
    %cst_106 = arith.constant 1.000000e+00 : f32
    %364 = vector.broadcast %cst_106 : f32 to vector<32x128xf32>
    %365 = arith.subf %364, %363 : vector<32x128xf32>
    %cst_107 = arith.constant 0.000000e+00 : f32
    %366 = vector.broadcast %cst_107 : f32 to vector<32x128xf32>
    %367 = arith.cmpf olt, %335, %366 : vector<32x128xf32>
    %cst_108 = arith.constant 0.000000e+00 : f32
    %368 = vector.broadcast %cst_108 : f32 to vector<32x128xf32>
    %369 = arith.subf %368, %365 : vector<32x128xf32>
    %370 = arith.select %367, %369, %365 : vector<32x128xi1>, vector<32x128xf32>
    %cst_109 = arith.constant 5.000000e-01 : f32
    %371 = vector.broadcast %cst_109 : f32 to vector<32x128xf32>
    %372 = arith.mulf %371, %333 : vector<32x128xf32>
    %cst_110 = arith.constant 1.000000e+00 : f32
    %373 = vector.broadcast %cst_110 : f32 to vector<32x128xf32>
    %374 = arith.addf %373, %370 : vector<32x128xf32>
    %375 = arith.mulf %372, %374 : vector<32x128xf32>
    %376 = arith.truncf %375 : vector<32x128xf32> to vector<32x128xbf16>
    %c384 = arith.constant 384 : index
    %c0_111 = arith.constant 0 : index
    %377 = vector.load %arg1[%c384, %c0_111] : memref<512x32xbf16, #tpu.memory_space<vmem>>, vector<128x32xbf16>
    %cst_112 = arith.constant dense<0.000000e+00> : vector<32x32xf32>
    %378 = tpu.matmul %376, %377, %cst_112 {dimension_numbers = #tpu.dot_dimension_numbers<[1], [0], [0], [1], [0, 0, 1, 1], [], []>} : vector<32x128xbf16>, vector<128x32xbf16>, vector<32x32xf32> -> vector<32x32xf32>
    %379 = arith.addf %302, %378 : vector<32x32xf32>
    %c47 = arith.constant 47 : index
    %c0_113 = arith.constant 0 : index
    %380 = vector.load %arg5[%c47, %c0_113] : memref<50x128xf32, #tpu.memory_space<vmem>>, vector<1x32xf32>
    %381 = vector.broadcast %380 : vector<1x32xf32> to vector<32x32xf32>
    %382 = arith.addf %379, %381 : vector<32x32xf32>
    %c48 = arith.constant 48 : index
    %c0_114 = arith.constant 0 : index
    %383 = vector.load %arg5[%c48, %c0_114] : memref<50x128xf32, #tpu.memory_space<vmem>>, vector<1x32xf32>
    %c49 = arith.constant 49 : index
    %c0_115 = arith.constant 0 : index
    %384 = vector.load %arg5[%c49, %c0_115] : memref<50x128xf32, #tpu.memory_space<vmem>>, vector<1x32xf32>
    %cst_116 = arith.constant dense<0.000000e+00> : vector<32xf32>
    %385 = vector.multi_reduction <add>, %382, %cst_116 [1] : vector<32x32xf32> to vector<32xf32>
    %386 = vector.shape_cast %385 : vector<32xf32> to vector<32x1xf32>
    %cst_117 = arith.constant 3.200000e+01 : f32
    %387 = vector.broadcast %cst_117 : f32 to vector<32x1xf32>
    %388 = arith.divf %386, %387 : vector<32x1xf32>
    %389 = arith.mulf %382, %382 : vector<32x32xf32>
    %cst_118 = arith.constant dense<0.000000e+00> : vector<32xf32>
    %390 = vector.multi_reduction <add>, %389, %cst_118 [1] : vector<32x32xf32> to vector<32xf32>
    %391 = vector.shape_cast %390 : vector<32xf32> to vector<32x1xf32>
    %cst_119 = arith.constant 3.200000e+01 : f32
    %392 = vector.broadcast %cst_119 : f32 to vector<32x1xf32>
    %393 = arith.divf %391, %392 : vector<32x1xf32>
    %394 = arith.mulf %388, %388 : vector<32x1xf32>
    %395 = arith.subf %393, %394 : vector<32x1xf32>
    %396 = vector.broadcast %388 : vector<32x1xf32> to vector<32x32xf32>
    %397 = arith.subf %382, %396 : vector<32x32xf32>
    %cst_120 = arith.constant 9.99999997E-7 : f32
    %398 = vector.broadcast %cst_120 : f32 to vector<32x1xf32>
    %399 = arith.addf %395, %398 : vector<32x1xf32>
    %400 = math.rsqrt %399 : vector<32x1xf32>
    %401 = vector.broadcast %400 : vector<32x1xf32> to vector<32x32xf32>
    %402 = arith.mulf %397, %401 : vector<32x32xf32>
    %403 = vector.broadcast %383 : vector<1x32xf32> to vector<32x32xf32>
    %404 = arith.mulf %402, %403 : vector<32x32xf32>
    %405 = vector.broadcast %384 : vector<1x32xf32> to vector<32x32xf32>
    %406 = arith.addf %404, %405 : vector<32x32xf32>
    %c0_121 = arith.constant 0 : index
    %c0_122 = arith.constant 0 : index
    %407 = vector.load %arg6[%c0_121, %c0_122] : memref<32x32xf32, #tpu.memory_space<vmem>>, vector<32x32xf32>
    tpu.vector_store %arg6[%c0_121, %c0_122], %406 {strides = array<i32>} : memref<32x32xf32, #tpu.memory_space<vmem>>, vector<32x32xf32>,
    return
  }
}

</mosaic_0001>

<bundles_post_ra>
// kernel: channel_mae_encoder_forward.1
= control target key start
LH: loop header
LB: loop body
LE: loop exit
PB: predicated region body
PF: predicated region fallthrough
CT: control target
= control target key end

     0   :  { %s6439_s0 = inlined_call_operand.vmem [shape: bf16[32,256], index: 0, kind: input, shape index: {}]   ;;  %s6440_s1 = inlined_call_operand.vmem [shape: bf16[512,32], index: 1, kind: input, shape index: {}]   ;;  %s6441_s2 = inlined_call_operand.vmem [shape: bf16[2,32,96], index: 2, kind: input, shape index: {}]   ;;  %s6442_s3 = inlined_call_operand.vmem [shape: bf16[2,32,128], index: 3, kind: input, shape index: {}]   ;;  %s6443_s4 = inlined_call_operand.vmem [shape: bf16[2,8,8,32], index: 4, kind: input, shape index: {}]   ;;  %s6444_s5 = inlined_call_operand.vmem [shape: f32[50,128], index: 5, kind: input, shape index: {}]   ;;  %s6445_s6 = inlined_call_operand.hbm [shape: f32[32,32], index: 6, kind: output, shape index: {}]  }
   0x1   :  { %v4906_v0 = vld [vmem:[%s6440_s1 + $0x40] sm:$0xff]   ;;  %v4908_v2 = vld [vmem:[%s6440_s1 + $0x48] sm:$0xff]   ;;  %v4910_v4 = vld [vmem:[%s6440_s1 + $0x50] sm:$0xff]  }
   0x2   :  { %v4907_v1 = vld [vmem:[%s6440_s1] sm:$0xff]   ;;  %4376 = vmatprep.subr.bf16.mxu0 %v4906_v0  ;;  %v4909_v3 = vld [vmem:[%s6440_s1 + $0x8] sm:$0xff]   ;;  %v4911_v5 = vld [vmem:[%s6440_s1 + $0x10] sm:$0xff]  }
   0x3   :  { %4377 = vmatpush3.bf16.msra.mxu0 %v4907_v1  ;;  %v4912_v6 = vld [vmem:[%s6440_s1 + $0x58] sm:$0xff]   ;;  %v4914_v8 = vld [vmem:[%s6440_s1 + $0x60] sm:$0xff]   ;;  %v4916_v10 = vld [vmem:[%s6440_s1 + $0x68] sm:$0xff]  }
   0x4   :  { %4378 = vmatprep.subr.bf16.mxu0 %v4908_v2  ;;  %v4913_v7 = vld [vmem:[%s6440_s1 + $0x18] sm:$0xff]   ;;  %v4915_v9 = vld [vmem:[%s6440_s1 + $0x20] sm:$0xff]   ;;  %v4917_v12 = vld [vmem:[%s6440_s1 + $0x28] sm:$0xff]  }
   0x5   :  { %v4924_v11 = vld [vmem:[%s6439_s0 + $0x4] ss:$8 sps:$4 sm:$0xff]   ;;  %v4918_v13 = vld [vmem:[%s6440_s1 + $0x70] sm:$0xff]   ;;  %v4920_v15 = vld [vmem:[%s6440_s1 + $0x78] sm:$0xff]  }
   0x6   :  { %213 = vmatprep.mubr.bf16.mxu0 %v4924_v11  ;;  %v4919_v14 = vld [vmem:[%s6440_s1 + $0x30] sm:$0xff]   ;;  %v4921_v16 = vld [vmem:[%s6440_s1 + $0x38] sm:$0xff]   ;;  %v4922_v17 = vld [vmem:[%s6439_s0] ss:$8 sps:$4 sm:$0xff]  }
   0x7   :  { %4379 = vmatpush3.bf16.msra.mxu0 %v4909_v3  ;;  %v4925_v18 = vld [vmem:[%s6439_s0 + $0x14] ss:$8 sps:$4 sm:$0xff]  }
   0x8   :  { %4380 = vmatprep.subr.bf16.mxu0 %v4910_v4 }
   0xb   :  { %4381 = vmatpush3.bf16.msra.mxu0 %v4911_v5 }
   0xc   :  { %4382 = vmatprep.subr.bf16.mxu0 %v4912_v6 }
   0xf   :  { %4383 = vmatpush3.bf16.msra.mxu0 %v4913_v7 }
  0x10   :  { %4384 = vmatprep.subr.bf16.mxu0 %v4914_v8 }
  0x13   :  { %4385 = vmatpush3.bf16.msra.mxu0 %v4915_v9 }
  0x14   :  { %4386 = vmatprep.subr.bf16.mxu0 %v4916_v10 }
  0x17   :  { %4387 = vmatpush3.bf16.msra.mxu0 %v4917_v12 }
  0x18   :  { %4388 = vmatprep.subr.bf16.mxu0 %v4918_v13 }
  0x1b   :  { %4389 = vmatpush3.bf16.msra.mxu0 %v4919_v14 }
  0x1c   :  { %4390 = vmatprep.subr.bf16.mxu0 %v4920_v15 }
  0x1f   :  { %4391 = vmatpush3.bf16.msra.mxu0 %v4921_v16 }
  0x22   :  { %214 = vmatmul.mubr.bf16.vlgmr.msra.gmra.mrb[0].mxu0 %v4922_v17 }
  0x23   :  { %11 = vsyncpa [#allocation3], 0  ;;  %221 = vmatprep.mubr.bf16.mxu0 %v4925_v18  ;;  %v4927_v19 = vld [vmem:[%s6439_s0 + $0x10] ss:$8 sps:$4 sm:$0xff]   ;;  %v61_v21 = vld [vmem:[%s6444_s5] sm:$0xff]  ;;  %vm232_vm0 = vcmask 261120  }
  0x24   :  { %v62_v25 = vld [vmem:[%s6444_s5 + $0x8] sm:$0xff]  ;;  %v63_v33 = vld [vmem:[%s6444_s5 + $0x10] sm:$0xff]  ;;  %v64_v40 = vld [vmem:[%s6444_s5 + $0x18] sm:$0xff]  ;;  %s5177_s30 = smov 112   ;;  %s5178_s7 = smov 120   ;;  %vm5179_vm1 = vmmov 0  }
  0x25   :  { %v4928_v52 = vld [vmem:[%s6441_s2] sm:$0xff]   ;;  %v4929_v53 = vld [vmem:[%s6441_s2 + $0x8] sm:$0xff]   ;;  %s5180_s8 = smov 104   ;;  %s5181_s9 = smov 96   ;;  %vm406_vm2 = vcmask 64512   ;;  %vm797_vm3 = vcmask 130048  }
  0x26   :  { %4536 = vmatprep.subr.bf16.mxu0 %v4928_v52  ;;  %s5182_s10 = smov 64   ;;  %vm1377_vm4 = vcmask 1043456  }
  0x27   :  { %4537 = vmatpush3.bf16.msra.mxu0 %v4928_v52 }
  0x28   :  { %4538 = vmatprep.subr.bf16.mxu0 %v4929_v53 }
  0x2a   :  { %222 = vmatmul.mubr.bf16.gmra.mrb[4].mxu0 %v4927_v19 }
  0x2b   :  { %4539 = vmatpush3.bf16.msra.mxu0 %v4929_v53  ;;  %v5176_v53 = vmov 0.0  }
  0x2c   :  { %4544 = vmatprep.subr.bf16.mxu1 %v5176_v53  ;;  %4568 = vmatprep.subr.bf16.mxu0 %v5176_v53 }
  0x2d   :  { %4546 = vmatprep.mubr.msk.bf16.mxu1 %vm5179_vm1, %v5176_v53 }
  0xf5   :  { %v4392_v20 = vpop.f32.mrb[0].mxu0 }
  0xf6   :  { %v4393_v22 = vpop.f32.mrb[1].mxu0 }
  0xf7   :  { %v4394_v23 = vadd.f32 %v4393_v22, %v4392_v20  ;;  %v4395_v24 = vpop.f32.mrb[2].mxu0  ;;  %v4262_v20 = vld [vmem:[%s6444_s5 + $0x20] ss:$0 sm:$0xff] }
  0xf8   :  { %v4396_v26 = vpop.f32.mrb[3].mxu0 }
  0xf9   :  { %v5287_v27 = vadd.f32 %v4394_v23, %v61_v21  ;;  %v4397_v28 = vadd.f32 %v4396_v26, %v4395_v24  ;;  %v4263_v26 = vld [vmem:[%s6444_s5 + $0x21] ss:$0 sm:$0xff] }
  0xfb   :  { %v5289_v29 = vadd.f32 %v4397_v28, %v62_v25  ;;  %v233_v30 = vsel %vm232_vm0, %v5287_v27, 0.0  ;;  %v250_v39 = vmul.f32 %v5287_v27, %v5287_v27 }
  0xfc   :  { %234 = vadd.xlane.f32.xlu0 %v233_v30 }
  0xfd   :  { %v4398_v31 = vpop.f32.mrb[4].mxu0  ;;  %v251_v32 = vmul.f32 %v5289_v29, %v5289_v29  ;;  %v236_v38 = vsel %vm232_vm0, %v5289_v29, 0.0  ;;  %v254_v46 = vsel %vm232_vm0, %v250_v39, 0.0 }
  0xfe   :  { %v4399_v34 = vpop.f32.mrb[5].mxu0 }
  0xff   :  { %v4400_v35 = vadd.f32 %v4399_v34, %v4398_v31  ;;  %v4401_v36 = vpop.f32.mrb[6].mxu0  ;;  %v257_v37 = vsel %vm232_vm0, %v251_v32, 0.0 }
 0x100   :  { %v4402_v41 = vpop.f32.mrb[7].mxu0  ;;  %258 = vadd.xlane.f32.xlu1 %v257_v37  ;;  %237 = vadd.xlane.f32.xlu0 %v236_v38 }
 0x101   :  { %v5306_v42 = vadd.f32 %v4400_v35, %v63_v33  ;;  %v4403_v43 = vadd.f32 %v4402_v41, %v4401_v36 }
 0x103   :  { %v5308_v44 = vadd.f32 %v4403_v43, %v64_v40  ;;  %v239_v45 = vsel %vm232_vm0, %v5306_v42, 0.0  ;;  %v252_v47 = vmul.f32 %v5306_v42, %v5306_v42 }
 0x104   :  { %240 = vadd.xlane.f32.xlu1 %v239_v45  ;;  %255 = vadd.xlane.f32.xlu0 %v254_v46 }
 0x105   :  { %v242_v48 = vsel %vm232_vm0, %v5308_v44, 0.0  ;;  %v260_v49 = vsel %vm232_vm0, %v252_v47, 0.0  ;;  %v253_v50 = vmul.f32 %v5308_v44, %v5308_v44  ;;  %v4264_v47 = vld [vmem:[%s6444_s5 + $0x22] ss:$0 sm:$0xff] }
 0x107   :  { %v263_v51 = vsel %vm232_vm0, %v253_v50, 0.0 }
 0x108   :  { %243 = vadd.xlane.f32.xlu1 %v242_v48  ;;  %261 = vadd.xlane.f32.xlu0 %v260_v49 }
 0x10c   :  { %264 = vadd.xlane.f32.xlu1 %v263_v51 }
 0x189   :  { %v235_v54 = vpop.xlane.xlu0 %234 }
 0x18a   :  { %v246_v57 = vmul.f32 0.03125, %v235_v54 }
 0x18c   :  { %v270_v63 = vmul.f32 %v246_v57, %v246_v57  ;;  %v278_v21 = vsub.f32 %v5287_v27, %v246_v57 }
 0x18d   :  { %v259_v55 = vpop.xlane.xlu1 %258  ;;  %v238_v56 = vpop.xlane.xlu0 %237 }
 0x18e   :  { %v247_v58 = vmul.f32 0.03125, %v238_v56  ;;  %v267_v59 = vmul.f32 0.03125, %v259_v55 }
 0x190   :  { %v271_v60 = vmul.f32 %v247_v58, %v247_v58  ;;  %v279_v18 = vsub.f32 %v5289_v29, %v247_v58 }
 0x191   :  { %v241_v61 = vpop.xlane.xlu1 %240  ;;  %v256_v62 = vpop.xlane.xlu0 %255 }
 0x192   :  { %v275_v0 = vsub.f32 %v267_v59, %v271_v60  ;;  %v248_v1 = vmul.f32 0.03125, %v241_v61  ;;  %v266_v2 = vmul.f32 0.03125, %v256_v62 }
 0x194   :  { %v283_v3 = vadd.f32 1e-06, %v275_v0  ;;  %v274_v4 = vsub.f32 %v266_v2, %v270_v63  ;;  %v272_v5 = vmul.f32 %v248_v1, %v248_v1  ;;  %v280_v28 = vsub.f32 %v5306_v42, %v248_v1 }
 0x195   :  { %v244_v6 = vpop.xlane.xlu1 %243  ;;  %v262_v7 = vpop.xlane.xlu0 %261 }
 0x196   :  { %4952 = vrsqrt.f32 %v283_v3  ;;  %v282_v8 = vadd.f32 1e-06, %v274_v4  ;;  %v249_v9 = vmul.f32 0.03125, %v244_v6  ;;  %v268_v10 = vmul.f32 0.03125, %v262_v7 }
 0x198   :  { %4954 = vrsqrt.f32 %v282_v8  ;;  %v276_v11 = vsub.f32 %v268_v10, %v272_v5  ;;  %v273_v13 = vmul.f32 %v249_v9, %v249_v9  ;;  %v281_v35 = vsub.f32 %v5308_v44, %v249_v9 }
 0x199   :  { %v265_v12 = vpop.xlane.xlu1 %264 }
 0x19a   :  { %v284_v14 = vadd.f32 1e-06, %v276_v11  ;;  %v269_v15 = vmul.f32 0.03125, %v265_v12 }
 0x19c   :  { %4956 = vrsqrt.f32 %v284_v14  ;;  %v277_v16 = vsub.f32 %v269_v15, %v273_v13 }
 0x19e   :  { %v285_v17 = vadd.f32 1e-06, %v277_v16 }
 0x1a0   :  { %v4953_v19 = vpop.eup %4952  ;;  %4958 = vrsqrt.f32 %v285_v17 }
 0x1a1   :  { %v291_v22 = vmul.f32 %v4953_v19, %v279_v18 }
 0x1a2   :  { %v4955_v23 = vpop.eup %4954 }
 0x1a3   :  { %v299_v24 = vmul.f32 %v4262_v20, %v291_v22  ;;  %v290_v25 = vmul.f32 %v4955_v23, %v278_v21 }
 0x1a5   :  { %v298_v30 = vmul.f32 %v4262_v20, %v290_v25  ;;  %v307_v34 = vadd.f32 %v4263_v26, %v299_v24 }
 0x1a6   :  { %v4957_v31 = vpop.eup %4956 }
 0x1a7   :  { %v292_v32 = vmul.f32 %v4957_v31, %v280_v28  ;;  %v306_v33 = vadd.f32 %v4263_v26, %v298_v30 }
 0x1a9   :  { %v310_v36 = vpack.c.bf16 %v307_v34, %v306_v33  ;;  %v300_v38 = vmul.f32 %v4262_v20, %v292_v32 }
 0x1aa   :  { %v4959_v37 = vpop.eup %4958 }
 0x1ab   :  { %v293_v39 = vmul.f32 %v4959_v37, %v281_v35  ;;  %4540 = vmatprep.mubr.msk.bf16.mxu0 %vm232_vm0, %v310_v36  ;;  %v308_v41 = vadd.f32 %v4263_v26, %v300_v38 }
 0x1ad   :  { %v301_v40 = vmul.f32 %v4262_v20, %v293_v39 }
 0x1af   :  { %v309_v43 = vadd.f32 %v4263_v26, %v301_v40 }
 0x1b1   :  { %v311_v45 = vpack.c.bf16 %v309_v43, %v308_v41 }
 0x1b3   :  { %4541 = vmatmul.mubr.msk.bf16.vlgmr.msra.gmra.mrb[8].mxu0 %vm232_vm0, %v311_v45 }
 0x1b4   :  { %4570 = vmatprep.mubr.msk.bf16.mxu0 %vm5179_vm1, %v5176_v53 }
 0x286   :  { %v4542_v46 = vpop.f32.mrb[8].mxu0 }
 0x287   :  { %v373_v48 = vpop.f32.mrb[9].mxu0  ;;  %v382_v50 = vadd.f32 %v4542_v46, %v4264_v47 }
 0x288   :  { %v4543_v49 = vpop.f32.mrb[10].mxu0  ;;  %v374_v54 = vadd.f32 %v4264_v47, %v373_v48 }
 0x289   :  { %v385_v51 = vadd.f32 %v4543_v49, %v4264_v47  ;;  %v376_v52 = vpop.f32.mrb[11].mxu0 }
 0x28a   :  { %v377_v55 = vadd.f32 %v4264_v47, %v376_v52 }
 0x28b   :  { %v5344_v56 = vpack.c.bf16 %v385_v51, %v382_v50 }
 0x28c   :  { %v5346_v57 = vpack.c.bf16 %v377_v55, %v374_v54 }
 0x28e   :  { %393 = vrot.lane.b32.xlu1 %v5346_v57, %s5177_s30  ;;  %391 = vrot.lane.b32.xlu0 %v5346_v57, %s5178_s7 }
 0x292   :  { %395 = vrot.lane.b32.xlu1 %v5346_v57, %s5180_s8  ;;  %400 = vrot.lane.b32.xlu0 %v5344_v56, %s5177_s30 }
 0x296   :  { %398 = vrot.lane.b32.xlu1 %v5344_v56, %s5178_s7  ;;  %404 = vrot.lane.b32.xlu0 %v5346_v57, %s5181_s9 }
 0x29a   :  { %402 = vrot.lane.b32.xlu1 %v5344_v56, %s5180_s8 }
 0x300   :  { %v5366_v58 = vpop.permute.xlu1 %393  ;;  %v5368_v59 = vpop.permute.xlu0 %391 }
 0x301   :  { %503 = vrot.lane.b32.xlu0 %v5366_v58, %s5181_s9  ;;  %454 = vrot.lane.b32.xlu1 %v5368_v59, %s5181_s9 }
 0x304   :  { %v5374_v60 = vpop.permute.xlu1 %395  ;;  %v5376_v61 = vpop.permute.xlu0 %400 }
 0x305   :  { %601 = vrot.lane.b32.xlu0 %v5344_v56, %s5181_s9  ;;  %552 = vrot.lane.b32.xlu1 %v5374_v60, %s5181_s9 }
 0x308   :  { %v5382_v62 = vpop.permute.xlu1 %398  ;;  %v405_v63 = vpop.permute.xlu0 %404 }
 0x309   :  { %650 = vrot.lane.b32.xlu1 %v5382_v62, %s5181_s9  ;;  %699 = vrot.lane.b32.xlu0 %v5376_v61, %s5181_s9  ;;  %v411_v0 = vsel %vm406_vm2, %v405_v63, 0 }
 0x30a   :  { %4545 = vmatpush3.bf16.xpose.msra.mxu1 %v411_v0 }
 0x30b   :  { %4550 = vmatprep.subr.bf16.mxu1 %v5176_v53 }
 0x30c   :  { %v5390_v1 = vpop.permute.xlu1 %402 }
 0x30d   :  { %748 = vrot.lane.b32.xlu1 %v5390_v1, %s5181_s9 }
 0x311   :  { %4547 = vmatmul.mubr.msk.bf16.vlgmr.msra.gmra.mrb[0].mxu1 %vm406_vm2, %v5346_v57 }
 0x312   :  { %4552 = vmatprep.mubr.msk.bf16.mxu1 %vm5179_vm1, %v5176_v53 }
 0x373   :  { %v455_v2 = vpop.permute.xlu1 %454  ;;  %v504_v3 = vpop.permute.xlu0 %503 }
 0x374   :  { %v460_v4 = vsel %vm406_vm2, %v455_v2, 0  ;;  %v509_v7 = vsel %vm406_vm2, %v504_v3, 0 }
 0x375   :  { %4551 = vmatpush3.bf16.xpose.msra.mxu1 %v460_v4 }
 0x376   :  { %4556 = vmatprep.subr.bf16.mxu1 %v5176_v53 }
 0x377   :  { %v602_v5 = vpop.permute.xlu0 %601  ;;  %v553_v10 = vpop.permute.xlu1 %552 }
 0x378   :  { %v607_v6 = vsel %vm406_vm2, %v602_v5, 0  ;;  %v558_v11 = vsel %vm406_vm2, %v553_v10, 0 }
 0x379   :  { %4569 = vmatpush3.bf16.xpose.msra.mxu0 %v607_v6 }
 0x37a   :  { %4580 = vmatprep.subr.bf16.mxu0 %v5176_v53 }
 0x37b   :  { %v700_v8 = vpop.permute.xlu0 %699  ;;  %v651_v12 = vpop.permute.xlu1 %650 }
 0x37c   :  { %4553 = vmatmul.mubr.msk.bf16.vlgmr.msra.gmra.mrb[4].mxu1 %vm406_vm2, %v5368_v59  ;;  %v705_v9 = vsel %vm406_vm2, %v700_v8, 0  ;;  %v656_v13 = vsel %vm406_vm2, %v651_v12, 0 }
 0x37d   :  { %4557 = vmatpush3.bf16.xpose.msra.mxu1 %v509_v7  ;;  %4558 = vmatprep.mubr.msk.bf16.mxu1 %vm5179_vm1, %v5176_v53 }
 0x37e   :  { %4562 = vmatprep.subr.bf16.mxu1 %v5176_v53 }
 0x37f   :  { %v749_v14 = vpop.permute.xlu1 %748 }
 0x380   :  { %4571 = vmatmul.mubr.msk.bf16.vlgmr.msra.gmra.mrb[12].mxu0 %vm406_vm2, %v5344_v56  ;;  %v754_v15 = vsel %vm406_vm2, %v749_v14, 0 }
 0x381   :  { %4581 = vmatpush3.bf16.xpose.msra.mxu0 %v705_v9  ;;  %4582 = vmatprep.mubr.msk.bf16.mxu0 %vm5179_vm1, %v5176_v53 }
 0x382   :  { %4592 = vmatprep.subr.bf16.mxu0 %v5176_v53 }
 0x384   :  { %4559 = vmatmul.mubr.msk.bf16.vlgmr.msra.gmra.mrb[8].mxu1 %vm406_vm2, %v5366_v58 }
 0x385   :  { %4563 = vmatpush3.bf16.xpose.msra.mxu1 %v558_v11  ;;  %4564 = vmatprep.mubr.msk.bf16.mxu1 %vm5179_vm1, %v5176_v53 }
 0x386   :  { %4574 = vmatprep.subr.bf16.mxu1 %v5176_v53 }
 0x388   :  { %4583 = vmatmul.mubr.msk.bf16.vlgmr.msra.gmra.mrb[16].mxu0 %vm406_vm2, %v5376_v61 }
 0x389   :  { %4594 = vmatprep.mubr.msk.bf16.mxu0 %vm5179_vm1, %v5176_v53 }
 0x38c   :  { %4565 = vmatmul.mubr.msk.bf16.vlgmr.msra.gmra.mrb[12].mxu1 %vm406_vm2, %v5374_v60 }
 0x38d   :  { %4575 = vmatpush3.bf16.xpose.msra.mxu1 %v656_v13  ;;  %4576 = vmatprep.mubr.msk.bf16.mxu1 %vm5179_vm1, %v5176_v53 }
 0x38e   :  { %4586 = vmatprep.subr.bf16.mxu1 %v5176_v53 }
 0x394   :  { %4577 = vmatmul.mubr.msk.bf16.vlgmr.msra.gmra.mrb[16].mxu1 %vm406_vm2, %v5382_v62 }
 0x395   :  { %4587 = vmatpush3.bf16.xpose.msra.mxu1 %v754_v15  ;;  %4588 = vmatprep.mubr.msk.bf16.mxu1 %vm5179_vm1, %v5176_v53 }
 0x396   :  { %4598 = vmatprep.subr.bf16.mxu1 %v5176_v53 }
 0x39c   :  { %4589 = vmatmul.mubr.msk.bf16.vlgmr.msra.gmra.mrb[20].mxu1 %vm406_vm2, %v5390_v1 }
 0x39d   :  { %4600 = vmatprep.mubr.msk.bf16.mxu1 %vm5179_vm1, %v5176_v53 }
 0x3e4   :  { %v5440_v16 = vpop.f32.mrb[0].mxu1 }
 0x3e5   :  { %v4548_v17 = vpop.f32.mrb[1].mxu1  ;;  %v798_v34 = vsel %vm797_vm3, %v5440_v16, -inf }
 0x3e6   :  { %v5442_v18 = vpop.f32.mrb[2].mxu1 }
 0x3e7   :  { %v4549_v19 = vpop.f32.mrb[3].mxu1  ;;  %v801_v37 = vsel %vm797_vm3, %v5442_v18, -inf }
 0x44f   :  { %v5444_v20 = vpop.f32.mrb[4].mxu1 }
 0x450   :  { %v4554_v21 = vpop.f32.mrb[5].mxu1  ;;  %v804_v48 = vsel %vm797_vm3, %v5444_v20, -inf }
 0x451   :  { %v5446_v22 = vpop.f32.mrb[6].mxu1 }
 0x452   :  { %v4555_v23 = vpop.f32.mrb[7].mxu1  ;;  %v807_v52 = vsel %vm797_vm3, %v5446_v22, -inf }
 0x453   :  { %v5448_v24 = vpop.f32.mrb[12].mxu0 }
 0x454   :  { %v4572_v25 = vpop.f32.mrb[13].mxu0  ;;  %v822_v26 = vsel %vm797_vm3, %v5448_v24, -inf }
 0x455   :  { %823 = vmax.xlane.f32.xlu0 %v822_v26  ;;  %v5452_v28 = vpop.f32.mrb[14].mxu0 }
 0x456   :  { %v4573_v30 = vpop.f32.mrb[15].mxu0  ;;  %v825_v31 = vsel %vm797_vm3, %v5452_v28, -inf }
 0x457   :  { %v5456_v32 = vpop.f32.mrb[8].mxu1  ;;  %826 = vmax.xlane.f32.xlu1 %v825_v31 }
 0x458   :  { %v4560_v33 = vpop.f32.mrb[9].mxu1  ;;  %v810_v0 = vsel %vm797_vm3, %v5456_v32, -inf }
 0x459   :  { %v5460_v35 = vpop.f32.mrb[10].mxu1  ;;  %799 = vmax.xlane.f32.xlu0 %v798_v34 }
 0x45a   :  { %v4561_v36 = vpop.f32.mrb[11].mxu1  ;;  %v813_v51 = vsel %vm797_vm3, %v5460_v35, -inf }
 0x45b   :  { %802 = vmax.xlane.f32.xlu1 %v801_v37  ;;  %v5464_v38 = vpop.f32.mrb[16].mxu0 }
 0x45c   :  { %v4584_v39 = vpop.f32.mrb[17].mxu0  ;;  %v834_v40 = vsel %vm797_vm3, %v5464_v38, -inf }
 0x45d   :  { %835 = vmax.xlane.f32.xlu0 %v834_v40  ;;  %v5468_v41 = vpop.f32.mrb[18].mxu0 }
 0x45e   :  { %v4585_v43 = vpop.f32.mrb[19].mxu0  ;;  %v837_v45 = vsel %vm797_vm3, %v5468_v41, -inf }
 0x45f   :  { %v5472_v46 = vpop.f32.mrb[12].mxu1  ;;  %838 = vmax.xlane.f32.xlu1 %v837_v45 }
 0x460   :  { %v4566_v47 = vpop.f32.mrb[13].mxu1  ;;  %v816_v4 = vsel %vm797_vm3, %v5472_v46, -inf }
 0x461   :  { %v5476_v49 = vpop.f32.mrb[14].mxu1  ;;  %805 = vmax.xlane.f32.xlu0 %v804_v48 }
 0x462   :  { %v4567_v50 = vpop.f32.mrb[15].mxu1  ;;  %v819_v54 = vsel %vm797_vm3, %v5476_v49, -inf }
 0x463   :  { %814 = vmax.xlane.f32.xlu1 %v813_v51 }
 0x465   :  { %808 = vmax.xlane.f32.xlu0 %v807_v52 }
 0x467   :  { %v5484_v55 = vpop.f32.mrb[16].mxu1  ;;  %820 = vmax.xlane.f32.xlu1 %v819_v54 }
 0x468   :  { %v4578_v63 = vpop.f32.mrb[17].mxu1  ;;  %v828_v7 = vsel %vm797_vm3, %v5484_v55, -inf }
 0x469   :  { %v5488_v2 = vpop.f32.mrb[18].mxu1  ;;  %811 = vmax.xlane.f32.xlu0 %v810_v0 }
 0x46a   :  { %v4579_v3 = vpop.f32.mrb[19].mxu1  ;;  %v831_v10 = vsel %vm797_vm3, %v5488_v2, -inf }
 0x46d   :  { %817 = vmax.xlane.f32.xlu0 %v816_v4 }
 0x46f   :  { %v5492_v5 = vpop.f32.mrb[20].mxu1 }
 0x470   :  { %v4590_v6 = vpop.f32.mrb[21].mxu1  ;;  %v840_v11 = vsel %vm797_vm3, %v5492_v5, -inf }
 0x471   :  { %v5496_v8 = vpop.f32.mrb[22].mxu1  ;;  %829 = vmax.xlane.f32.xlu0 %v828_v7 }
 0x472   :  { %v4591_v9 = vpop.f32.mrb[23].mxu1 }
 0x478   :  { %1029 = vrot.lane.b32.xlu1 %v5368_v59, %s5182_s10  ;;  %v843_v59 = vsel %vm797_vm3, %v5496_v8, -inf }
 0x47c   :  { %1076 = vrot.lane.b32.xlu1 %v5366_v58, %s5182_s10 }
 0x487   :  { %982 = vrot.lane.b32.xlu0 %v5346_v57, %s5182_s10 }
 0x4a0   :  { %832 = vmax.xlane.f32.xlu1 %v831_v10 }
 0x4a6   :  { %841 = vmax.xlane.f32.xlu0 %v840_v11 }
 0x4b1   :  { %1123 = vrot.lane.b32.xlu1 %v5374_v60, %s5182_s10 }
 0x4d5   :  { %844 = vmax.xlane.f32.xlu1 %v843_v59 }
 0x4e2   :  { %v824_v12 = vpop.xlane.xlu0 %823 }
 0x4e3   :  { %v854_v58 = vsub.f32 %v5448_v24, %v824_v12 }
 0x4e4   :  { %v827_v13 = vpop.xlane.xlu1 %826 }
 0x4e5   :  { %v878_v57 = vmul.f32 1.442695, %v854_v58  ;;  %v855_v14 = vsub.f32 %v5452_v28, %v827_v13 }
 0x4e6   :  { %v800_v15 = vpop.xlane.xlu0 %799 }
 0x4e7   :  { %4960 = vpow2.f32 %v878_v57  ;;  %v880_v17 = vmul.f32 1.442695, %v855_v14  ;;  %v846_v19 = vsub.f32 %v5440_v16, %v800_v15 }
 0x4e8   :  { %v803_v21 = vpop.xlane.xlu1 %802 }
 0x4e9   :  { %4962 = vpow2.f32 %v880_v17  ;;  %v862_v23 = vmul.f32 1.442695, %v846_v19  ;;  %v847_v60 = vsub.f32 %v5442_v18, %v803_v21 }
 0x4ea   :  { %v836_v25 = vpop.xlane.xlu0 %835 }
 0x4eb   :  { %4964 = vpow2.f32 %v862_v23  ;;  %v864_v26 = vmul.f32 1.442695, %v847_v60  ;;  %v858_v30 = vsub.f32 %v5464_v38, %v836_v25 }
 0x4ec   :  { %v839_v24 = vpop.xlane.xlu1 %838 }
 0x4ed   :  { %4966 = vpow2.f32 %v864_v26  ;;  %v886_v31 = vmul.f32 1.442695, %v858_v30  ;;  %v859_v28 = vsub.f32 %v5468_v41, %v839_v24 }
 0x4ee   :  { %v806_v33 = vpop.xlane.xlu0 %805 }
 0x4ef   :  { %4968 = vpow2.f32 %v886_v31  ;;  %v888_v34 = vmul.f32 1.442695, %v859_v28  ;;  %v848_v16 = vsub.f32 %v5444_v20, %v806_v33 }
 0x4f0   :  { %v815_v36 = vpop.xlane.xlu1 %814 }
 0x4f1   :  { %v5519_v37 = vpop.eup %4960  ;;  %4970 = vpow2.f32 %v888_v34  ;;  %v866_v18 = vmul.f32 1.442695, %v848_v16  ;;  %v851_v39 = vsub.f32 %v5460_v35, %v815_v36 }
 0x4f2   :  { %v809_v40 = vpop.xlane.xlu0 %808  ;;  %v918_v38 = vsel %vm797_vm3, %v5519_v37, 0.0 }
 0x4f3   :  { %v5524_v43 = vpop.eup %4962  ;;  %4972 = vpow2.f32 %v866_v18  ;;  %v849_v41 = vsub.f32 %v5446_v22, %v809_v40  ;;  %919 = vadd.xlane.f32.xlu0 %v918_v38  ;;  %v872_v48 = vmul.f32 1.442695, %v851_v39 }
 0x4f4   :  { %v821_v45 = vpop.xlane.xlu1 %820  ;;  %v921_v20 = vsel %vm797_vm3, %v5524_v43, 0.0 }
 0x4f5   :  { %v5529_v47 = vpop.eup %4964  ;;  %v868_v50 = vmul.f32 1.442695, %v849_v41  ;;  %922 = vadd.xlane.f32.xlu1 %v921_v20  ;;  %v853_v23 = vsub.f32 %v5476_v49, %v821_v45 }
 0x4f6   :  { %v812_v35 = vpop.xlane.xlu0 %811  ;;  %v894_v51 = vsel %vm797_vm3, %v5529_v47, 0.0 }
 0x4f7   :  { %v5533_v52 = vpop.eup %4966  ;;  %4974 = vpow2.f32 %v868_v50  ;;  %v850_v54 = vsub.f32 %v5456_v32, %v812_v35  ;;  %895 = vadd.xlane.f32.xlu0 %v894_v51  ;;  %v876_v26 = vmul.f32 1.442695, %v853_v23 }
 0x4f8   :  { %v1030_v22 = vpop.permute.xlu1 %1029  ;;  %v897_v63 = vsel %vm797_vm3, %v5533_v52, 0.0  ;;  %4976 = vpow2.f32 %v872_v48 }
 0x4f9   :  { %v5538_v0 = vpop.eup %4968  ;;  %v870_v3 = vmul.f32 1.442695, %v850_v54  ;;  %898 = vadd.xlane.f32.xlu1 %v897_v63  ;;  %4599 = vmatpush3.bf16.msra.mxu1 %v1030_v22 }
 0x4fa   :  { %v818_v4 = vpop.xlane.xlu0 %817  ;;  %v930_v6 = vsel %vm797_vm3, %v5538_v0, 0.0  ;;  %4610 = vmatprep.subr.bf16.mxu1 %v5176_v53 }
 0x4fb   :  { %v5543_v7 = vpop.eup %4970  ;;  %4978 = vpow2.f32 %v870_v3  ;;  %v852_v32 = vsub.f32 %v5472_v46, %v818_v4  ;;  %931 = vadd.xlane.f32.xlu0 %v930_v6 }
 0x4fc   :  { %v933_v9 = vsel %vm797_vm3, %v5543_v7, 0.0  ;;  %v1077_v60 = vpop.permute.xlu1 %1076 }
 0x4fd   :  { %v5548_v10 = vpop.eup %4972  ;;  %v874_v11 = vmul.f32 1.442695, %v852_v32  ;;  %934 = vadd.xlane.f32.xlu1 %v933_v9 }
 0x4fe   :  { %v830_v59 = vpop.xlane.xlu0 %829  ;;  %v900_v12 = vsel %vm797_vm3, %v5548_v10, 0.0 }
 0x4ff   :  { %4980 = vpow2.f32 %v874_v11  ;;  %901 = vadd.xlane.f32.xlu0 %v900_v12  ;;  %v856_v25 = vsub.f32 %v5484_v55, %v830_v59 }
 0x500   :  { %4982 = vpow2.f32 %v876_v26 }
 0x501   :  { %v5552_v58 = vpop.eup %4974  ;;  %v882_v30 = vmul.f32 1.442695, %v856_v25 }
 0x502   :  { %v983_v13 = vpop.permute.xlu0 %982  ;;  %v903_v46 = vsel %vm797_vm3, %v5552_v58, 0.0  ;;  %v5556_v57 = vpop.eup %4976 }
 0x503   :  { %904 = vadd.xlane.f32.xlu1 %v903_v46  ;;  %4593 = vmatpush3.bf16.msra.mxu0 %v983_v13  ;;  %v909_v15 = vsel %vm797_vm3, %v5556_v57, 0.0  ;;  %4984 = vpow2.f32 %v882_v30 }
 0x504   :  { %4604 = vmatprep.subr.bf16.mxu0 %v5176_v53 }
 0x505   :  { %v5559_v14 = vpop.eup %4978 }
 0x506   :  { %v906_v17 = vsel %vm797_vm3, %v5559_v14, 0.0 }
 0x507   :  { %910 = vadd.xlane.f32.xlu1 %v909_v15  ;;  %907 = vadd.xlane.f32.xlu0 %v906_v17 }
 0x509   :  { %v5565_v19 = vpop.eup %4980 }
 0x50a   :  { %v912_v21 = vsel %vm797_vm3, %v5565_v19, 0.0  ;;  %v5577_v16 = vpop.eup %4982 }
 0x50b   :  { %913 = vadd.xlane.f32.xlu0 %v912_v21  ;;  %v915_v49 = vsel %vm797_vm3, %v5577_v16, 0.0 }
 0x518   :  { %1217 = vrot.lane.b32.xlu1 %v5382_v62, %s5182_s10 }
 0x521   :  { %1170 = vrot.lane.b32.xlu0 %v5344_v56, %s5182_s10  ;;  %v5579_v56 = vpop.eup %4984 }
 0x522   :  { %v924_v36 = vsel %vm797_vm3, %v5579_v56, 0.0 }
 0x52d   :  { %v833_v24 = vpop.xlane.xlu1 %832 }
 0x52e   :  { %v857_v31 = vsub.f32 %v5488_v2, %v833_v24 }
 0x530   :  { %v884_v28 = vmul.f32 1.442695, %v857_v31 }
 0x531   :  { %v1124_v39 = vpop.permute.xlu1 %1123 }
 0x532   :  { %4986 = vpow2.f32 %v884_v28 }
 0x533   :  { %v842_v33 = vpop.xlane.xlu0 %841 }
 0x534   :  { %v860_v62 = vsub.f32 %v5492_v5, %v842_v33 }
 0x536   :  { %v890_v34 = vmul.f32 1.442695, %v860_v62 }
 0x538   :  { %4988 = vpow2.f32 %v890_v34 }
 0x53c   :  { %v5583_v55 = vpop.eup %4986  ;;  %916 = vadd.xlane.f32.xlu1 %v915_v49 }
 0x53d   :  { %v927_v2 = vsel %vm797_vm3, %v5583_v55, 0.0 }
 0x540   :  { %928 = vadd.xlane.f32.xlu1 %v927_v2  ;;  %925 = vadd.xlane.f32.xlu0 %v924_v36 }
 0x542   :  { %v5589_v5 = vpop.eup %4988 }
 0x543   :  { %v936_v18 = vsel %vm797_vm3, %v5589_v5, 0.0 }
 0x544   :  { %937 = vadd.xlane.f32.xlu0 %v936_v18 }
 0x55a   :  { %1264 = vrot.lane.b32.xlu0 %v5376_v61, %s5182_s10 }
 0x562   :  { %v845_v40 = vpop.xlane.xlu1 %844 }
 0x563   :  { %v861_v38 = vsub.f32 %v5496_v8, %v845_v40 }
 0x565   :  { %v892_v41 = vmul.f32 1.442695, %v861_v38 }
 0x567   :  { %4990 = vpow2.f32 %v892_v41 }
 0x571   :  { %v5596_v45 = vpop.eup %4990 }
 0x572   :  { %v939_v20 = vsel %vm797_vm3, %v5596_v45, 0.0 }
 0x573   :  { %940 = vadd.xlane.f32.xlu1 %v939_v20 }
 0x580   :  { %v920_v48 = vpop.xlane.xlu0 %919 }
 0x582   :  { %v923_v50 = vpop.xlane.xlu1 %922 }
 0x584   :  { %1311 = vrot.lane.b32.xlu1 %v5390_v1, %s5182_s10  ;;  %v896_v35 = vpop.xlane.xlu0 %895 }
 0x585   :  { %4992 = vrcp.f32 %v896_v35  ;;  %v1367_v35 = vld [vmem:[%s6443_s4 + $0x4] sm:$0xf] }
 0x586   :  { %v899_v61 = vpop.xlane.xlu1 %898 }
 0x587   :  { %4994 = vrcp.f32 %v899_v61 }
 0x588   :  { %v932_v51 = vpop.xlane.xlu0 %931 }
 0x58a   :  { %v935_v54 = vpop.xlane.xlu1 %934 }
 0x58c   :  { %v902_v8 = vpop.xlane.xlu0 %901 }
 0x58d   :  { %4996 = vrcp.f32 %v902_v8  ;;  %v1426_v8 = vsel %vm1377_vm4, %v1367_v35, 0 }
 0x58f   :  { %v4993_v22 = vpop.eup %4992 }
 0x590   :  { %v905_v63 = vpop.xlane.xlu1 %904  ;;  %v958_v4 = vmul.f32 %v4993_v22, %v5529_v47 }
 0x591   :  { %v4995_v3 = vpop.eup %4994  ;;  %4998 = vrcp.f32 %v905_v63  ;;  %v1368_v63 = vld [vmem:[%s6443_s4 + $0x8] sm:$0xf] }
 0x592   :  { %v959_v6 = vmul.f32 %v4995_v3, %v5533_v52 }
 0x594   :  { %v911_v32 = vpop.xlane.xlu1 %910  ;;  %v908_v9 = vpop.xlane.xlu0 %907  ;;  %v974_v11 = vpack.c.bf16 %v959_v6, %v958_v4  ;;  %v1473_v6 = vsel %vm1377_vm4, %v1368_v63, 0 }
 0x595   :  { %5000 = vrcp.f32 %v911_v32 }
 0x596   :  { %5002 = vrcp.f32 %v908_v9  ;;  %4595 = vmatmul.mubr.msk.bf16.vlgmr.msra.gmra.mrb[20].mxu0 %vm797_vm3, %v974_v11  ;;  %v1369_v9 = vld [vmem:[%s6443_s4 + $0xc] sm:$0xf] }
 0x597   :  { %4605 = vmatpush3.bf16.msra.mxu0 %v1077_v60  ;;  %4606 = vmatprep.mubr.msk.bf16.mxu0 %vm5179_vm1, %v5176_v53  ;;  %v4997_v1 = vpop.eup %4996  ;;  %5004 = vrcp.f32 %v923_v50 }
 0x598   :  { %4616 = vmatprep.subr.bf16.mxu0 %v5176_v53  ;;  %5006 = vrcp.f32 %v920_v48  ;;  %v960_v47 = vmul.f32 %v4997_v1, %v5548_v10  ;;  %v914_v46 = vpop.xlane.xlu0 %913  ;;  %v1218_v26 = vpop.permute.xlu1 %1217 }
 0x599   :  { %5008 = vrcp.f32 %v935_v54 }
 0x59a   :  { %5010 = vrcp.f32 %v932_v51 }
 0x59b   :  { %v4999_v59 = vpop.eup %4998  ;;  %5012 = vrcp.f32 %v914_v46 }
 0x59c   :  { %v961_v52 = vmul.f32 %v4999_v59, %v5552_v58  ;;  %v1171_v60 = vpop.permute.xlu0 %1170 }
 0x59e   :  { %v975_v12 = vpack.c.bf16 %v961_v52, %v960_v47  ;;  %v1520_v52 = vsel %vm1377_vm4, %v1369_v9, 0 }
 0x59f   :  { %v5001_v13 = vpop.eup %5000 }
 0x5a0   :  { %v5003_v15 = vpop.eup %5002  ;;  %v963_v17 = vmul.f32 %v5001_v13, %v5556_v57  ;;  %4601 = vmatmul.mubr.msk.bf16.vlgmr.msra.gmra.mrb[24].mxu1 %vm797_vm3, %v975_v12  ;;  %v1370_v13 = vld [vmem:[%s6443_s4 + $0x10] sm:$0xf] }
 0x5a1   :  { %v962_v21 = vmul.f32 %v5003_v15, %v5559_v14  ;;  %4611 = vmatpush3.bf16.msra.mxu1 %v1124_v39  ;;  %4612 = vmatprep.mubr.msk.bf16.mxu1 %vm5179_vm1, %v5176_v53  ;;  %v5005_v10 = vpop.eup %5004 }
 0x5a2   :  { %4622 = vmatprep.subr.bf16.mxu1 %v5176_v53  ;;  %v5007_v58 = vpop.eup %5006  ;;  %v967_v57 = vmul.f32 %v5005_v10, %v5524_v43 }
 0x5a3   :  { %v976_v23 = vpack.c.bf16 %v963_v17, %v962_v21  ;;  %v966_v14 = vmul.f32 %v5007_v58, %v5519_v37  ;;  %v5009_v43 = vpop.eup %5008 }
 0x5a4   :  { %v5011_v28 = vpop.eup %5010  ;;  %v971_v62 = vmul.f32 %v5009_v43, %v5543_v7 }
 0x5a5   :  { %4607 = vmatmul.mubr.msk.bf16.vlgmr.msra.gmra.mrb[24].mxu0 %vm797_vm3, %v976_v23  ;;  %v978_v25 = vpack.c.bf16 %v967_v57, %v966_v14  ;;  %v5013_v37 = vpop.eup %5012  ;;  %v970_v49 = vmul.f32 %v5011_v28, %v5538_v0  ;;  %v1567_v23 = vsel %vm1377_vm4, %v1370_v13, 0 }
 0x5a6   :  { %4617 = vmatpush3.bf16.msra.mxu0 %v1171_v60  ;;  %4618 = vmatprep.mubr.msk.bf16.mxu0 %vm5179_vm1, %v5176_v53  ;;  %v964_v2 = vmul.f32 %v5013_v37, %v5565_v19  ;;  %v1372_v60 = vld [vmem:[%s6443_s4 + $0x18] sm:$0xf] }
 0x5a7   :  { %4628 = vmatprep.subr.bf16.mxu0 %v5176_v53  ;;  %v980_v40 = vpack.c.bf16 %v971_v62, %v970_v49 }
 0x5ad   :  { %4619 = vmatmul.mubr.msk.bf16.vlgmr.msra.gmra.mrb[28].mxu0 %vm797_vm3, %v978_v25 }
 0x5ae   :  { %4630 = vmatprep.mubr.msk.bf16.mxu0 %vm5179_vm1, %v5176_v53 }
 0x5c9   :  { %v917_v30 = vpop.xlane.xlu1 %916 }
 0x5ca   :  { %5014 = vrcp.f32 %v917_v30 }
 0x5cd   :  { %v929_v24 = vpop.xlane.xlu1 %928  ;;  %v926_v31 = vpop.xlane.xlu0 %925 }
 0x5ce   :  { %5016 = vrcp.f32 %v929_v24 }
 0x5cf   :  { %5018 = vrcp.f32 %v926_v31  ;;  %v1371_v31 = vld [vmem:[%s6443_s4 + $0x14] sm:$0xf] }
 0x5d1   :  { %v938_v33 = vpop.xlane.xlu0 %937 }
 0x5d2   :  { %5020 = vrcp.f32 %v938_v33 }
 0x5d4   :  { %v5015_v34 = vpop.eup %5014 }
 0x5d5   :  { %v965_v36 = vmul.f32 %v5015_v34, %v5577_v16  ;;  %v1265_v18 = vpop.permute.xlu0 %1264  ;;  %v1366_v16 = vld [vmem:[%s6443_s4] sm:$0xf] }
 0x5d6   :  { %4629 = vmatpush3.bf16.msra.mxu0 %v1265_v18 }
 0x5d7   :  { %v977_v39 = vpack.c.bf16 %v965_v36, %v964_v2  ;;  %4640 = vmatprep.subr.bf16.mxu0 %v5176_v53  ;;  %v1614_v36 = vsel %vm1377_vm4, %v1371_v31, 0 }
 0x5d8   :  { %v5017_v38 = vpop.eup %5016 }
 0x5d9   :  { %v5019_v41 = vpop.eup %5018  ;;  %4613 = vmatmul.mubr.msk.bf16.vlgmr.msra.gmra.mrb[28].mxu1 %vm797_vm3, %v977_v39  ;;  %4631 = vmatmul.mubr.msk.bf16.vlgmr.msra.gmra.mrb[32].mxu0 %vm797_vm3, %v980_v40  ;;  %v969_v0 = vmul.f32 %v5017_v38, %v5583_v55  ;;  %v1379_v55 = vsel %vm1377_vm4, %v1366_v16, 0  ;;  %v1373_v39 = vld [vmem:[%s6443_s4 + $0x1c] sm:$0xf] }
 0x5da   :  { %4623 = vmatpush3.bf16.msra.mxu1 %v1218_v26  ;;  %4624 = vmatprep.mubr.msk.bf16.mxu1 %vm5179_vm1, %v5176_v53  ;;  %v968_v7 = vmul.f32 %v5019_v41, %v5579_v56  ;;  %v1661_v26 = vsel %vm1377_vm4, %v1372_v60, 0 }
 0x5db   :  { %4634 = vmatprep.subr.bf16.mxu1 %v5176_v53  ;;  %4642 = vmatprep.mubr.msk.bf16.mxu0 %vm5179_vm1, %v5176_v53 }
 0x5dc   :  { %v979_v19 = vpack.c.bf16 %v969_v0, %v968_v7  ;;  %4641 = vmatpush3.bf16.msra.mxu0 %v1379_v55  ;;  %v5021_v48 = vpop.eup %5020  ;;  %v1708_v7 = vsel %vm1377_vm4, %v1373_v39, 0 }
 0x5dd   :  { %4652 = vmatprep.subr.bf16.mxu0 %v5176_v53  ;;  %v972_v61 = vmul.f32 %v5021_v48, %v5589_v5 }
 0x5e1   :  { %4625 = vmatmul.mubr.msk.bf16.vlgmr.msra.gmra.mrb[32].mxu1 %vm797_vm3, %v979_v19 }
 0x5e2   :  { %4636 = vmatprep.mubr.msk.bf16.mxu1 %vm5179_vm1, %v5176_v53 }
 0x600   :  { %v941_v56 = vpop.xlane.xlu1 %940 }
 0x601   :  { %5022 = vrcp.f32 %v941_v56 }
 0x604   :  { %v1312_v20 = vpop.permute.xlu1 %1311 }
 0x605   :  { %4635 = vmatpush3.bf16.msra.mxu1 %v1312_v20 }
 0x606   :  { %4646 = vmatprep.subr.bf16.mxu1 %v5176_v53 }
 0x60b   :  { %v5023_v50 = vpop.eup %5022 }
 0x60c   :  { %v973_v51 = vmul.f32 %v5023_v50, %v5596_v45 }
 0x60e   :  { %v981_v54 = vpack.c.bf16 %v973_v51, %v972_v61 }
 0x610   :  { %4637 = vmatmul.mubr.msk.bf16.vlgmr.msra.gmra.mrb[36].mxu1 %vm797_vm3, %v981_v54 }
 0x611   :  { %4647 = vmatpush3.bf16.msra.mxu1 %v1426_v8  ;;  %4648 = vmatprep.mubr.msk.bf16.mxu1 %vm5179_vm1, %v5176_v53 }
 0x612   :  { %4658 = vmatprep.subr.bf16.mxu1 %v5176_v53 }
 0x669   :  { %v1022_v22 = vpop.f32.mrb[20].mxu0 }
 0x66a   :  { %v4596_v3 = vpop.f32.mrb[21].mxu0 }
 0x66b   :  { %v1025_v5 = vpop.f32.mrb[22].mxu0 }
 0x66c   :  { %v1358_v4 = vpack.c.bf16 %v1025_v5, %v1022_v22  ;;  %v4597_v45 = vpop.f32.mrb[23].mxu0 }
 0x66e   :  { %4643 = vmatmul.mubr.msk.bf16.vlgmr.msra.gmra.mrb[36].mxu0 %vm406_vm2, %v1358_v4 }
 0x66f   :  { %4653 = vmatpush3.bf16.msra.mxu0 %v1473_v6  ;;  %4654 = vmatprep.mubr.msk.bf16.mxu0 %vm5179_vm1, %v5176_v53 }
 0x670   :  { %4664 = vmatprep.subr.bf16.mxu0 %v5176_v53 }
 0x673   :  { %v1069_v32 = vpop.f32.mrb[24].mxu1 }
 0x674   :  { %v4602_v11 = vpop.f32.mrb[25].mxu1 }
 0x675   :  { %v1072_v1 = vpop.f32.mrb[26].mxu1 }
 0x676   :  { %v1359_v59 = vpack.c.bf16 %v1072_v1, %v1069_v32  ;;  %v4603_v47 = vpop.f32.mrb[27].mxu1 }
 0x678   :  { %v1116_v12 = vpop.f32.mrb[24].mxu0  ;;  %4649 = vmatmul.mubr.msk.bf16.vlgmr.msra.gmra.mrb[40].mxu1 %vm406_vm2, %v1359_v59 }
 0x679   :  { %v4608_v46 = vpop.f32.mrb[25].mxu0  ;;  %4659 = vmatpush3.bf16.msra.mxu1 %v1520_v52  ;;  %4660 = vmatprep.mubr.msk.bf16.mxu1 %vm5179_vm1, %v5176_v53 }
 0x67a   :  { %v1119_v15 = vpop.f32.mrb[26].mxu0  ;;  %4670 = vmatprep.subr.bf16.mxu1 %v5176_v53 }
 0x67b   :  { %v1360_v17 = vpack.c.bf16 %v1119_v15, %v1116_v12  ;;  %v4609_v21 = vpop.f32.mrb[27].mxu0 }
 0x67d   :  { %4655 = vmatmul.mubr.msk.bf16.vlgmr.msra.gmra.mrb[40].mxu0 %vm406_vm2, %v1360_v17 }
 0x67e   :  { %4665 = vmatpush3.bf16.msra.mxu0 %v1567_v23  ;;  %4666 = vmatprep.mubr.msk.bf16.mxu0 %vm5179_vm1, %v5176_v53 }
 0x67f   :  { %4676 = vmatprep.subr.bf16.mxu0 %v5176_v53 }
 0x680   :  { %v1210_v10 = vpop.f32.mrb[28].mxu0 }
 0x681   :  { %v4620_v58 = vpop.f32.mrb[29].mxu0 }
 0x682   :  { %v1213_v57 = vpop.f32.mrb[30].mxu0 }
 0x683   :  { %v1362_v14 = vpack.c.bf16 %v1213_v57, %v1210_v10  ;;  %v4621_v25 = vpop.f32.mrb[31].mxu0 }
 0x685   :  { %4667 = vmatmul.mubr.msk.bf16.vlgmr.msra.gmra.mrb[44].mxu0 %vm406_vm2, %v1362_v14 }
 0x686   :  { %4677 = vmatpush3.bf16.msra.mxu0 %v1661_v26  ;;  %4678 = vmatprep.mubr.msk.bf16.mxu0 %vm5179_vm1, %v5176_v53  ;;  %v4293_v26 = vld [vmem:[%s6444_s5 + $0x23] ss:$0 sm:$0xff] }
 0x6ac   :  { %v1163_v30 = vpop.f32.mrb[28].mxu1  ;;  %v1304_v24 = vpop.f32.mrb[32].mxu0 }
 0x6ad   :  { %v4614_v43 = vpop.f32.mrb[29].mxu1  ;;  %v4632_v28 = vpop.f32.mrb[33].mxu0 }
 0x6ae   :  { %v1166_v33 = vpop.f32.mrb[30].mxu1  ;;  %v1307_v37 = vpop.f32.mrb[34].mxu0 }
 0x6af   :  { %v1361_v62 = vpack.c.bf16 %v1166_v33, %v1163_v30  ;;  %v1364_v34 = vpack.c.bf16 %v1307_v37, %v1304_v24  ;;  %v4615_v49 = vpop.f32.mrb[31].mxu1  ;;  %v4633_v2 = vpop.f32.mrb[35].mxu0 }
 0x6b1   :  { %4661 = vmatmul.mubr.msk.bf16.vlgmr.msra.gmra.mrb[44].mxu1 %vm406_vm2, %v1361_v62  ;;  %4679 = vmatmul.mubr.msk.bf16.vlgmr.msra.gmra.mrb[48].mxu0 %vm406_vm2, %v1364_v34 }
 0x6b2   :  { %4671 = vmatpush3.bf16.msra.mxu1 %v1614_v36  ;;  %4672 = vmatprep.mubr.msk.bf16.mxu1 %vm5179_vm1, %v5176_v53 }
 0x6b3   :  { %4682 = vmatprep.subr.bf16.mxu1 %v5176_v53 }
 0x6b4   :  { %v1257_v18 = vpop.f32.mrb[32].mxu1 }
 0x6b5   :  { %v4626_v40 = vpop.f32.mrb[33].mxu1 }
 0x6b6   :  { %v1260_v38 = vpop.f32.mrb[34].mxu1 }
 0x6b7   :  { %v1363_v41 = vpack.c.bf16 %v1260_v38, %v1257_v18  ;;  %v4627_v0 = vpop.f32.mrb[35].mxu1 }
 0x6b9   :  { %4673 = vmatmul.mubr.msk.bf16.vlgmr.msra.gmra.mrb[48].mxu1 %vm406_vm2, %v1363_v41 }
 0x6ba   :  { %4683 = vmatpush3.bf16.msra.mxu1 %v1708_v7  ;;  %4684 = vmatprep.mubr.msk.bf16.mxu1 %vm5179_vm1, %v5176_v53 }
 0x6e3   :  { %v1351_v19 = vpop.f32.mrb[36].mxu1 }
 0x6e4   :  { %v4638_v16 = vpop.f32.mrb[37].mxu1 }
 0x6e5   :  { %v1354_v55 = vpop.f32.mrb[38].mxu1 }
 0x6e6   :  { %v1365_v56 = vpack.c.bf16 %v1354_v55, %v1351_v19  ;;  %v4639_v20 = vpop.f32.mrb[39].mxu1 }
 0x6e8   :  { %4685 = vmatmul.mubr.msk.bf16.vlgmr.msra.gmra.mrb[52].mxu1 %vm406_vm2, %v1365_v56 }
 0x741   :  { %v1415_v48 = vpop.f32.mrb[36].mxu0 }
 0x742   :  { %v4644_v50 = vpop.f32.mrb[37].mxu0  ;;  %v1751_v54 = vsel %vm232_vm0, %v1415_v48, 0.0 }
 0x743   :  { %v1418_v35 = vpop.f32.mrb[38].mxu0 }
 0x744   :  { %v4645_v61 = vpop.f32.mrb[39].mxu0  ;;  %v1758_v5 = vsel %vm232_vm0, %v1418_v35, 0.0 }
 0x74b   :  { %v1462_v51 = vpop.f32.mrb[40].mxu1 }
 0x74c   :  { %v1752_v8 = vsel %vm232_vm0, %v1462_v51, 0.0  ;;  %v4650_v22 = vpop.f32.mrb[41].mxu1 }
 0x74d   :  { %v1753_v63 = vadd.f32 %v1752_v8, %v1751_v54  ;;  %v1465_v3 = vpop.f32.mrb[42].mxu1 }
 0x74e   :  { %v1759_v4 = vsel %vm232_vm0, %v1465_v3, 0.0  ;;  %v4651_v45 = vpop.f32.mrb[43].mxu1 }
 0x74f   :  { %v1760_v6 = vadd.f32 %v1759_v4, %v1758_v5 }
 0x750   :  { %v1509_v32 = vpop.f32.mrb[40].mxu0 }
 0x751   :  { %v1754_v9 = vsel %vm232_vm0, %v1509_v32, 0.0  ;;  %v4656_v11 = vpop.f32.mrb[41].mxu0 }
 0x752   :  { %v1755_v1 = vadd.f32 %v1754_v9, %v1753_v63  ;;  %v1512_v59 = vpop.f32.mrb[42].mxu0 }
 0x753   :  { %v1761_v47 = vsel %vm232_vm0, %v1512_v59, 0.0  ;;  %v4657_v52 = vpop.f32.mrb[43].mxu0  ;;  %v4930_v59 = vld [vmem:[%s6442_s3] sm:$0xff]  }
 0x754   :  { %v1762_v12 = vadd.f32 %v1761_v47, %v1760_v6  ;;  %4688 = vmatprep.subr.bf16.mxu0 %v4930_v59  ;;  %v4931_v47 = vld [vmem:[%s6442_s3 + $0x8] sm:$0xff]  }
 0x755   :  { %4689 = vmatpush3.bf16.msra.mxu0 %v4930_v59  ;;  %v4937_v59 = vld [vmem:[%s6440_s1 + $0xa8] sm:$0xff]  }
 0x756   :  { %4690 = vmatprep.subr.bf16.mxu0 %v4931_v47 }
 0x758   :  { %v1603_v13 = vpop.f32.mrb[44].mxu0 }
 0x759   :  { %v4668_v46 = vpop.f32.mrb[45].mxu0  ;;  %v1765_v36 = vsel %vm232_vm0, %v1603_v13, 0.0  ;;  %4691 = vmatpush3.bf16.msra.mxu0 %v4931_v47  ;;  %v4938_v47 = vld [vmem:[%s6440_s1 + $0xb0] sm:$0xff]  }
 0x75a   :  { %v1606_v15 = vpop.f32.mrb[46].mxu0 }
 0x75b   :  { %v4669_v17 = vpop.f32.mrb[47].mxu0  ;;  %v1772_v41 = vsel %vm232_vm0, %v1606_v15, 0.0 }
 0x784   :  { %v1556_v21 = vpop.f32.mrb[44].mxu1  ;;  %v1697_v23 = vpop.f32.mrb[48].mxu0 }
 0x785   :  { %v1756_v10 = vsel %vm232_vm0, %v1556_v21, 0.0  ;;  %v4662_v60 = vpop.f32.mrb[45].mxu1  ;;  %v4680_v58 = vpop.f32.mrb[49].mxu0  ;;  %v1768_v0 = vsel %vm232_vm0, %v1697_v23, 0.0 }
 0x786   :  { %v1757_v57 = vadd.f32 %v1756_v10, %v1755_v1  ;;  %v1559_v14 = vpop.f32.mrb[46].mxu1  ;;  %v1700_v25 = vpop.f32.mrb[50].mxu0 }
 0x787   :  { %v1763_v30 = vsel %vm232_vm0, %v1559_v14, 0.0  ;;  %v4663_v24 = vpop.f32.mrb[47].mxu1  ;;  %v4681_v31 = vpop.f32.mrb[51].mxu0  ;;  %v1775_v20 = vsel %vm232_vm0, %v1700_v25, 0.0 }
 0x788   :  { %v1779_v43 = vadd.f32 %v1757_v57, %v5287_v27  ;;  %v1764_v28 = vadd.f32 %v1763_v30, %v1762_v12  ;;  %v4294_v24 = vld [vmem:[%s6444_s5 + $0x24] ss:$0 sm:$0xff] }
 0x78a   :  { %v5718_v33 = vadd.f32 %v4293_v26, %v1779_v43  ;;  %v1780_v37 = vadd.f32 %v1764_v28, %v5289_v29 }
 0x78c   :  { %v5721_v62 = vadd.f32 %v4293_v26, %v1780_v37  ;;  %v1650_v34 = vpop.f32.mrb[48].mxu1  ;;  %v1794_v49 = vsel %vm232_vm0, %v5718_v33, 0.0  ;;  %v1810_v2 = vmul.f32 %v5718_v33, %v5718_v33 }
 0x78d   :  { %v1766_v18 = vsel %vm232_vm0, %v1650_v34, 0.0  ;;  %v4674_v39 = vpop.f32.mrb[49].mxu1  ;;  %1795 = vadd.xlane.f32.xlu0 %v1794_v49  ;;  %v4295_v49 = vld [vmem:[%s6444_s5 + $0x25] ss:$0 sm:$0xff] }
 0x78e   :  { %v1767_v27 = vadd.f32 %v1766_v18, %v1765_v36  ;;  %v1653_v40 = vpop.f32.mrb[50].mxu1  ;;  %v1797_v29 = vsel %vm232_vm0, %v5721_v62, 0.0  ;;  %v1811_v38 = vmul.f32 %v5721_v62, %v5721_v62  ;;  %v1814_v55 = vsel %vm232_vm0, %v1810_v2, 0.0 }
 0x78f   :  { %v1773_v7 = vsel %vm232_vm0, %v1653_v40, 0.0  ;;  %v4675_v19 = vpop.f32.mrb[51].mxu1  ;;  %1798 = vadd.xlane.f32.xlu1 %v1797_v29 }
 0x790   :  { %v1774_v16 = vadd.f32 %v1773_v7, %v1772_v41  ;;  %v1769_v56 = vadd.f32 %v1768_v0, %v1767_v27  ;;  %v1817_v48 = vsel %vm232_vm0, %v1811_v38, 0.0 }
 0x791   :  { %1815 = vadd.xlane.f32.xlu0 %v1814_v55 }
 0x792   :  { %v1776_v50 = vadd.f32 %v1775_v20, %v1774_v16 }
 0x793   :  { %1818 = vadd.xlane.f32.xlu1 %v1817_v48 }
 0x7bb   :  { %v1744_v35 = vpop.f32.mrb[52].mxu1 }
 0x7bc   :  { %v1770_v61 = vsel %vm232_vm0, %v1744_v35, 0.0  ;;  %v4686_v51 = vpop.f32.mrb[53].mxu1 }
 0x7bd   :  { %v1771_v54 = vadd.f32 %v1770_v61, %v1769_v56  ;;  %v1747_v8 = vpop.f32.mrb[54].mxu1 }
 0x7be   :  { %v1777_v22 = vsel %vm232_vm0, %v1747_v8, 0.0  ;;  %v4687_v63 = vpop.f32.mrb[55].mxu1 }
 0x7bf   :  { %v1781_v3 = vadd.f32 %v1771_v54, %v5306_v42  ;;  %v1778_v5 = vadd.f32 %v1777_v22, %v1776_v50 }
 0x7c1   :  { %v5742_v4 = vadd.f32 %v4293_v26, %v1781_v3  ;;  %v1782_v45 = vadd.f32 %v1778_v5, %v5308_v44 }
 0x7c3   :  { %v5745_v6 = vadd.f32 %v4293_v26, %v1782_v45  ;;  %v1800_v32 = vsel %vm232_vm0, %v5742_v4, 0.0  ;;  %v1812_v42 = vmul.f32 %v5742_v4, %v5742_v4 }
 0x7c4   :  { %1801 = vadd.xlane.f32.xlu0 %v1800_v32 }
 0x7c5   :  { %v1813_v9 = vmul.f32 %v5745_v6, %v5745_v6  ;;  %v1803_v1 = vsel %vm232_vm0, %v5745_v6, 0.0  ;;  %v1820_v44 = vsel %vm232_vm0, %v1812_v42, 0.0  ;;  %v4935_v42 = vld [vmem:[%s6440_s1 + $0x98] sm:$0xff]  }
 0x7c7   :  { %v1823_v11 = vsel %vm232_vm0, %v1813_v9, 0.0  ;;  %v4932_v9 = vld [vmem:[%s6440_s1 + $0x80] sm:$0xff]  }
 0x7c8   :  { %1824 = vadd.xlane.f32.xlu1 %v1823_v11  ;;  %1804 = vadd.xlane.f32.xlu0 %v1803_v1  ;;  %v4933_v11 = vld [vmem:[%s6440_s1 + $0x88] sm:$0xff]   ;;  %v4934_v1 = vld [vmem:[%s6440_s1 + $0x90] sm:$0xff]  }
 0x7c9   :  { %4696 = vmatprep.subr.bf16.mxu1 %v4932_v9 }
 0x7ca   :  { %4697 = vmatpush3.bf16.msra.mxu1 %v4932_v9 }
 0x7cb   :  { %4698 = vmatprep.subr.bf16.mxu1 %v4933_v11 }
 0x7cc   :  { %1821 = vadd.xlane.f32.xlu0 %v1820_v44  ;;  %v4936_v44 = vld [vmem:[%s6440_s1 + $0xa0] sm:$0xff]  }
 0x7ce   :  { %4699 = vmatpush3.bf16.msra.mxu1 %v4933_v11 }
 0x7cf   :  { %4700 = vmatprep.subr.bf16.mxu1 %v4934_v1 }
 0x7d2   :  { %4701 = vmatpush3.bf16.msra.mxu1 %v4934_v1 }
 0x7d3   :  { %4702 = vmatprep.subr.bf16.mxu1 %v4935_v42 }
 0x7d6   :  { %4703 = vmatpush3.bf16.msra.mxu1 %v4935_v42 }
 0x7d7   :  { %4704 = vmatprep.subr.bf16.mxu1 %v4936_v44 }
 0x7da   :  { %4705 = vmatpush3.bf16.msra.mxu1 %v4936_v44 }
 0x7db   :  { %4706 = vmatprep.subr.bf16.mxu1 %v4937_v59 }
 0x7de   :  { %4707 = vmatpush3.bf16.msra.mxu1 %v4937_v59 }
 0x7df   :  { %4708 = vmatprep.subr.bf16.mxu1 %v4938_v47 }
 0x7e2   :  { %4709 = vmatpush3.bf16.msra.mxu1 %v4938_v47 }
 0x81a   :  { %v1796_v52 = vpop.xlane.xlu0 %1795 }
 0x81b   :  { %v1806_v12 = vmul.f32 0.03125, %v1796_v52  ;;  %v4939_v52 = vld [vmem:[%s6440_s1 + $0xb8] sm:$0xff]  }
 0x81c   :  { %v1799_v13 = vpop.xlane.xlu1 %1798  ;;  %4710 = vmatprep.subr.bf16.mxu1 %v4939_v52 }
 0x81d   :  { %v1807_v46 = vmul.f32 0.03125, %v1799_v13  ;;  %v1830_v17 = vmul.f32 %v1806_v12, %v1806_v12  ;;  %v1838_v26 = vsub.f32 %v5718_v33, %v1806_v12  ;;  %4711 = vmatpush3.bf16.msra.mxu1 %v4939_v52  ;;  %v4296_v12 = vld [vmem:[%s6444_s5 + $0x26] ss:$0 sm:$0xff] }
 0x81e   :  { %v1816_v15 = vpop.xlane.xlu0 %1815  ;;  %4742 = vmatprep.subr.bf16.mxu1 %v5176_v53 }
 0x81f   :  { %v1826_v21 = vmul.f32 0.03125, %v1816_v15  ;;  %v1831_v10 = vmul.f32 %v1807_v46, %v1807_v46  ;;  %v1839_v31 = vsub.f32 %v5721_v62, %v1807_v46 }
 0x820   :  { %v1819_v23 = vpop.xlane.xlu1 %1818 }
 0x821   :  { %v1834_v60 = vsub.f32 %v1826_v21, %v1830_v17  ;;  %v1827_v58 = vmul.f32 0.03125, %v1819_v23 }
 0x823   :  { %v1842_v57 = vadd.f32 1e-06, %v1834_v60  ;;  %v1835_v14 = vsub.f32 %v1827_v58, %v1831_v10 }
 0x825   :  { %5024 = vrsqrt.f32 %v1842_v57  ;;  %v1843_v25 = vadd.f32 1e-06, %v1835_v14 }
 0x827   :  { %5026 = vrsqrt.f32 %v1843_v25 }
 0x82f   :  { %v5025_v30 = vpop.eup %5024 }
 0x830   :  { %v1850_v43 = vmul.f32 %v5025_v30, %v1838_v26 }
 0x831   :  { %v5027_v28 = vpop.eup %5026 }
 0x832   :  { %v1851_v37 = vmul.f32 %v5027_v28, %v1839_v31  ;;  %v1858_v34 = vmul.f32 %v4294_v24, %v1850_v43 }
 0x834   :  { %v1859_v2 = vmul.f32 %v4294_v24, %v1851_v37  ;;  %v1866_v36 = vadd.f32 %v4295_v49, %v1858_v34 }
 0x836   :  { %v1867_v18 = vadd.f32 %v4295_v49, %v1859_v2 }
 0x838   :  { %v1870_v39 = vpack.c.bf16 %v1867_v18, %v1866_v36 }
 0x83a   :  { %4692 = vmatprep.mubr.msk.bf16.mxu0 %vm232_vm0, %v1870_v39 }
 0x851   :  { %v1802_v27 = vpop.xlane.xlu0 %1801 }
 0x852   :  { %v1808_v38 = vmul.f32 0.03125, %v1802_v27 }
 0x854   :  { %v1832_v16 = vmul.f32 %v1808_v38, %v1808_v38  ;;  %v1840_v51 = vsub.f32 %v5742_v4, %v1808_v38 }
 0x855   :  { %v1825_v40 = vpop.xlane.xlu1 %1824  ;;  %v1805_v29 = vpop.xlane.xlu0 %1804 }
 0x856   :  { %v1809_v41 = vmul.f32 0.03125, %v1805_v29  ;;  %v1829_v0 = vmul.f32 0.03125, %v1825_v40 }
 0x858   :  { %v1833_v7 = vmul.f32 %v1809_v41, %v1809_v41  ;;  %v1841_v35 = vsub.f32 %v5745_v6, %v1809_v41 }
 0x859   :  { %v1822_v19 = vpop.xlane.xlu0 %1821 }
 0x85a   :  { %v1837_v55 = vsub.f32 %v1829_v0, %v1833_v7  ;;  %v1828_v56 = vmul.f32 0.03125, %v1822_v19 }
 0x85c   :  { %v1845_v20 = vadd.f32 1e-06, %v1837_v55  ;;  %v1836_v48 = vsub.f32 %v1828_v56, %v1832_v16 }
 0x85e   :  { %5028 = vrsqrt.f32 %v1845_v20  ;;  %v1844_v50 = vadd.f32 1e-06, %v1836_v48 }
 0x860   :  { %5030 = vrsqrt.f32 %v1844_v50 }
 0x868   :  { %v5029_v61 = vpop.eup %5028 }
 0x869   :  { %v1853_v54 = vmul.f32 %v5029_v61, %v1841_v35 }
 0x86a   :  { %v5031_v8 = vpop.eup %5030 }
 0x86b   :  { %v1861_v22 = vmul.f32 %v4294_v24, %v1853_v54  ;;  %v1852_v63 = vmul.f32 %v5031_v8, %v1840_v51 }
 0x86d   :  { %v1860_v3 = vmul.f32 %v4294_v24, %v1852_v63  ;;  %v1869_v5 = vadd.f32 %v4295_v49, %v1861_v22 }
 0x86f   :  { %v1868_v45 = vadd.f32 %v4295_v49, %v1860_v3 }
 0x871   :  { %v1871_v32 = vpack.c.bf16 %v1869_v5, %v1868_v45 }
 0x873   :  { %4693 = vmatmul.mubr.msk.bf16.vlgmr.msra.gmra.mrb[52].mxu0 %vm232_vm0, %v1871_v32 }
 0x946   :  { %v4694_v13 = vpop.f32.mrb[52].mxu0 }
 0x947   :  { %v5803_v46 = vadd.f32 %v4694_v13, %v4296_v12  ;;  %v1933_v15 = vpop.f32.mrb[53].mxu0 }
 0x948   :  { %v5805_v17 = vadd.f32 %v4296_v12, %v1933_v15  ;;  %v4695_v21 = vpop.f32.mrb[54].mxu0 }
 0x949   :  { %v5808_v23 = vmul.f32 0.70710677, %v5803_v46  ;;  %v5810_v10 = vadd.f32 %v4695_v21, %v4296_v12  ;;  %v1936_v60 = vpop.f32.mrb[55].mxu0 }
 0x94a   :  { %v5813_v58 = vmul.f32 0.70710677, %v5805_v17  ;;  %v5815_v57 = vadd.f32 %v4296_v12, %v1936_v60 }
 0x94b   :  { %v1954_v14 = vsub.f32 0.0, %v5808_v23  ;;  %v5819_v25 = vmul.f32 0.70710677, %v5810_v10  ;;  %vm2038_vm5 = vcmp.lt.f32.partialorder %v5808_v23, 0.0 }
 0x94c   :  { %v1952_v26 = vsub.f32 0.0, %v5813_v58  ;;  %v5823_v30 = vmul.f32 0.70710677, %v5815_v57  ;;  %vm2036_vm6 = vcmp.lt.f32.partialorder %v5813_v58, 0.0 }
 0x94d   :  { %v1958_v24 = vmax.f32 %v5808_v23, %v1954_v14  ;;  %v1955_v31 = vsub.f32 0.0, %v5819_v25  ;;  %vm2039_vm7 = vcmp.lt.f32.partialorder %v5819_v25, 0.0 }
 0x94e   :  { %v1956_v43 = vmax.f32 %v5813_v58, %v1952_v26  ;;  %v1953_v28 = vsub.f32 0.0, %v5823_v30  ;;  %vm2037_vm8 = vcmp.lt.f32.partialorder %v5823_v30, 0.0 }
 0x94f   :  { %v1962_v37 = vmul.f32 0.3275911, %v1958_v24  ;;  %v1959_v34 = vmax.f32 %v5819_v25, %v1955_v31  ;;  %v2014_v38 = vmul.f32 %v1958_v24, %v1958_v24 }
 0x950   :  { %v1960_v49 = vmul.f32 0.3275911, %v1956_v43  ;;  %v1957_v2 = vmax.f32 %v5823_v30, %v1953_v28  ;;  %v2012_v41 = vmul.f32 %v1956_v43, %v1956_v43 }
 0x951   :  { %v1966_v36 = vadd.f32 1.0, %v1962_v37  ;;  %v1963_v18 = vmul.f32 0.3275911, %v1959_v34  ;;  %v2018_v7 = vsub.f32 0.0, %v2014_v38  ;;  %v2015_v19 = vmul.f32 %v1959_v34, %v1959_v34 }
 0x952   :  { %v1964_v39 = vadd.f32 1.0, %v1960_v49  ;;  %v1961_v27 = vmul.f32 0.3275911, %v1957_v2  ;;  %v2016_v56 = vsub.f32 0.0, %v2012_v41  ;;  %v2013_v48 = vmul.f32 %v1957_v2, %v1957_v2 }
 0x953   :  { %5032 = vrcp.f32 %v1966_v36  ;;  %v1967_v40 = vadd.f32 1.0, %v1963_v18  ;;  %v2024_v61 = vmul.f32 1.442695, %v2018_v7  ;;  %v2019_v54 = vsub.f32 0.0, %v2015_v19 }
 0x954   :  { %5034 = vrcp.f32 %v1964_v39  ;;  %v1965_v29 = vadd.f32 1.0, %v1961_v27  ;;  %v2020_v22 = vmul.f32 1.442695, %v2016_v56  ;;  %v2017_v45 = vsub.f32 0.0, %v2013_v48 }
 0x955   :  { %5036 = vrcp.f32 %v1967_v40  ;;  %v2026_v42 = vmul.f32 1.442695, %v2019_v54 }
 0x956   :  { %5038 = vrcp.f32 %v1965_v29  ;;  %v2022_v12 = vmul.f32 1.442695, %v2017_v45 }
 0x957   :  { %5040 = vpow2.f32 %v2024_v61 }
 0x958   :  { %5042 = vpow2.f32 %v2020_v22 }
 0x959   :  { %5044 = vpow2.f32 %v2026_v42 }
 0x95a   :  { %5046 = vpow2.f32 %v2022_v12 }
 0x95d   :  { %v5033_v0 = vpop.eup %5032 }
 0x95e   :  { %v5035_v16 = vpop.eup %5034  ;;  %v1978_v55 = vmul.f32 1.0614054, %v5033_v0 }
 0x95f   :  { %v1976_v20 = vmul.f32 1.0614054, %v5035_v16  ;;  %v5037_v35 = vpop.eup %5036 }
 0x960   :  { %v1982_v50 = vadd.f32 -1.4531521, %v1978_v55  ;;  %v1979_v63 = vmul.f32 1.0614054, %v5037_v35  ;;  %v5039_v3 = vpop.eup %5038 }
 0x961   :  { %v1980_v51 = vadd.f32 -1.4531521, %v1976_v20  ;;  %v1977_v11 = vmul.f32 1.0614054, %v5039_v3  ;;  %v5041_v18 = vpop.eup %5040 }
 0x962   :  { %v1986_v8 = vmul.f32 %v5033_v0, %v1982_v50  ;;  %v1983_v9 = vadd.f32 -1.4531521, %v1979_v63  ;;  %v5043_v27 = vpop.eup %5042 }
 0x963   :  { %v1984_v5 = vmul.f32 %v5035_v16, %v1980_v51  ;;  %v1981_v47 = vadd.f32 -1.4531521, %v1977_v11  ;;  %v5045_v56 = vpop.eup %5044  ;;  %v2051_v11 = vmul.f32 0.5, %v5810_v10 }
 0x964   :  { %v1990_v32 = vadd.f32 1.4214138, %v1986_v8  ;;  %v1987_v59 = vmul.f32 %v5037_v35, %v1983_v9  ;;  %v5047_v51 = vpop.eup %5046 }
 0x965   :  { %v1988_v1 = vadd.f32 1.4214138, %v1984_v5  ;;  %v1985_v21 = vmul.f32 %v5039_v3, %v1981_v47 }
 0x966   :  { %v1994_v44 = vmul.f32 %v5033_v0, %v1990_v32  ;;  %v1991_v15 = vadd.f32 1.4214138, %v1987_v59  ;;  %v2049_v59 = vmul.f32 0.5, %v5815_v57 }
 0x967   :  { %v1992_v52 = vmul.f32 %v5035_v16, %v1988_v1  ;;  %v1989_v24 = vadd.f32 1.4214138, %v1985_v21  ;;  %v2048_v1 = vmul.f32 0.5, %v5805_v17  ;;  %v4309_v17 = vld [vmem:[%s6444_s5 + $0x27] ss:$0 sm:$0xff] }
 0x968   :  { %v1998_v13 = vadd.f32 -0.28449672, %v1994_v44  ;;  %v1995_v26 = vmul.f32 %v5037_v35, %v1991_v15 }
 0x969   :  { %v1996_v60 = vadd.f32 -0.28449672, %v1992_v52  ;;  %v1993_v37 = vmul.f32 %v5039_v3, %v1989_v24 }
 0x96a   :  { %v2002_v14 = vmul.f32 %v5033_v0, %v1998_v13  ;;  %v1999_v28 = vadd.f32 -0.28449672, %v1995_v26 }
 0x96b   :  { %v2000_v31 = vmul.f32 %v5035_v16, %v1996_v60  ;;  %v1997_v36 = vadd.f32 -0.28449672, %v1993_v37 }
 0x96c   :  { %v2006_v43 = vadd.f32 0.2548296, %v2002_v14  ;;  %v2003_v2 = vmul.f32 %v5037_v35, %v1999_v28 }
 0x96d   :  { %v2004_v34 = vadd.f32 0.2548296, %v2000_v31  ;;  %v2001_v38 = vmul.f32 %v5039_v3, %v1997_v36 }
 0x96e   :  { %v2010_v49 = vmul.f32 %v5033_v0, %v2006_v43  ;;  %v2007_v29 = vadd.f32 0.2548296, %v2003_v2 }
 0x96f   :  { %v2008_v39 = vmul.f32 %v5035_v16, %v2004_v34  ;;  %v2005_v55 = vadd.f32 0.2548296, %v2001_v38 }
 0x970   :  { %v2030_v40 = vmul.f32 %v5041_v18, %v2010_v49  ;;  %v2011_v19 = vmul.f32 %v5037_v35, %v2007_v29  ;;  %v2050_v35 = vmul.f32 0.5, %v5803_v46 }
 0x971   :  { %v2028_v41 = vmul.f32 %v5043_v27, %v2008_v39  ;;  %v2009_v61 = vmul.f32 %v5039_v3, %v2005_v55  ;;  %v4940_v27 = vld [vmem:[%s6441_s2 + $0x10] sm:$0xff]  }
 0x972   :  { %v2034_v7 = vsub.f32 1.0, %v2030_v40  ;;  %v2031_v50 = vmul.f32 %v5045_v56, %v2011_v19  ;;  %4716 = vmatprep.subr.bf16.mxu0 %v4940_v27  ;;  %v4941_v40 = vld [vmem:[%s6441_s2 + $0x18] sm:$0xff]   ;;  %s5183_s2 = smov [#allocation2]  }
 0x973   :  { %v2032_v20 = vsub.f32 1.0, %v2028_v41  ;;  %v2029_v16 = vmul.f32 %v5047_v51, %v2009_v61  ;;  %4717 = vmatpush3.bf16.msra.mxu0 %v4940_v27 }
 0x974   :  { %v2042_v48 = vsub.f32 0.0, %v2034_v7  ;;  %v2035_v8 = vsub.f32 1.0, %v2031_v50  ;;  %4718 = vmatprep.subr.bf16.mxu0 %v4941_v40 }
 0x975   :  { %v2040_v0 = vsub.f32 0.0, %v2032_v20  ;;  %v2033_v5 = vsub.f32 1.0, %v2029_v16 }
 0x976   :  { %v2046_v54 = vsel %vm2038_vm5, %v2042_v48, %v2034_v7  ;;  %v2043_v63 = vsub.f32 0.0, %v2035_v8 }
 0x977   :  { %v2044_v22 = vsel %vm2036_vm6, %v2040_v0, %v2032_v20  ;;  %v2054_v45 = vadd.f32 1.0, %v2046_v54  ;;  %v2041_v9 = vsub.f32 0.0, %v2033_v5  ;;  %4719 = vmatpush3.bf16.msra.mxu0 %v4941_v40 }
 0x978   :  { %v2047_v32 = vsel %vm2039_vm7, %v2043_v63, %v2035_v8  ;;  %v2052_v3 = vadd.f32 1.0, %v2044_v22  ;;  %4724 = vmatprep.subr.bf16.mxu0 %v5176_v53 }
 0x979   :  { %v2055_v23 = vadd.f32 1.0, %v2047_v32  ;;  %v2045_v42 = vsel %vm2037_vm8, %v2041_v9, %v2033_v5  ;;  %v2058_v58 = vmul.f32 %v2054_v45, %v2050_v35 }
 0x97a   :  { %v2053_v47 = vadd.f32 1.0, %v2045_v42  ;;  %v2056_v52 = vmul.f32 %v2052_v3, %v2048_v1 }
 0x97b   :  { %v2059_v44 = vmul.f32 %v2055_v23, %v2051_v11 }
 0x97c   :  { %v2057_v12 = vmul.f32 %v2053_v47, %v2049_v59  ;;  %v4310_v59 = vld [vmem:[%s6444_s5 + $0x28] ss:$0 sm:$0xff] }
 0x97d   :  { %v2061_v25 = vpack.c.bf16 %v2059_v44, %v2058_v58 }
 0x97e   :  { %v2060_v46 = vpack.c.bf16 %v2057_v12, %v2056_v52 }
 0x980   :  { %4712 = vmatprep.mubr.bf16.mxu1 %v2060_v46 }
 0x981   :  { %4713 = vmatmul.mubr.bf16.vlgmr.msra.gmra.mrb[56].mxu1 %v2061_v25 }
 0x982   :  { %4744 = vmatprep.mubr.msk.bf16.mxu1 %vm5179_vm1, %v5176_v53 }
 0xa54   :  { %v4714_v10 = vpop.f32.mrb[56].mxu1 }
 0xa55   :  { %v2177_v30 = vadd.f32 %v4714_v10, %v5742_v4  ;;  %v2160_v13 = vpop.f32.mrb[57].mxu1 }
 0xa56   :  { %v2175_v57 = vadd.f32 %v2160_v13, %v5718_v33  ;;  %v4715_v15 = vpop.f32.mrb[58].mxu1 }
 0xa57   :  { %v5846_v21 = vadd.f32 %v4309_v17, %v2177_v30  ;;  %v2178_v60 = vadd.f32 %v4715_v15, %v5745_v6  ;;  %v2163_v14 = vpop.f32.mrb[59].mxu1  ;;  %v4311_v30 = vld [vmem:[%s6444_s5 + $0x29] ss:$0 sm:$0xff] }
 0xa58   :  { %v2176_v26 = vadd.f32 %v2163_v14, %v5721_v62  ;;  %v5850_v24 = vadd.f32 %v4309_v17, %v2175_v57 }
 0xa59   :  { %v5852_v31 = vadd.f32 %v4309_v17, %v2178_v60  ;;  %v2196_v43 = vsel %vm232_vm0, %v5846_v21, 0.0  ;;  %v2208_v49 = vmul.f32 %v5846_v21, %v5846_v21 }
 0xa5a   :  { %2197 = vadd.xlane.f32.xlu0 %v2196_v43  ;;  %v5856_v4 = vadd.f32 %v4309_v17, %v2176_v26  ;;  %v2190_v6 = vsel %vm232_vm0, %v5850_v24, 0.0  ;;  %v2206_v62 = vmul.f32 %v5850_v24, %v5850_v24 }
 0xa5b   :  { %v2199_v33 = vsel %vm232_vm0, %v5852_v31, 0.0  ;;  %v2209_v36 = vmul.f32 %v5852_v31, %v5852_v31  ;;  %v2216_v18 = vsel %vm232_vm0, %v2208_v49, 0.0 }
 0xa5c   :  { %2200 = vadd.xlane.f32.xlu1 %v2199_v33  ;;  %v2193_v28 = vsel %vm232_vm0, %v5856_v4, 0.0  ;;  %v2207_v37 = vmul.f32 %v5856_v4, %v5856_v4  ;;  %v2210_v34 = vsel %vm232_vm0, %v2206_v62, 0.0 }
 0xa5d   :  { %v2219_v39 = vsel %vm232_vm0, %v2209_v36, 0.0 }
 0xa5e   :  { %2191 = vadd.xlane.f32.xlu0 %v2190_v6  ;;  %v2213_v2 = vsel %vm232_vm0, %v2207_v37, 0.0 }
 0xa60   :  { %2194 = vadd.xlane.f32.xlu1 %v2193_v28 }
 0xa62   :  { %2211 = vadd.xlane.f32.xlu0 %v2210_v34 }
 0xa64   :  { %2214 = vadd.xlane.f32.xlu1 %v2213_v2  ;;  %v4316_v2 = vld [vmem:[%s6444_s5 + $0x2a] ss:$0 sm:$0xff] }
 0xa66   :  { %2217 = vadd.xlane.f32.xlu0 %v2216_v18 }
 0xa68   :  { %2220 = vadd.xlane.f32.xlu1 %v2219_v39 }
 0xae7   :  { %v2198_v29 = vpop.xlane.xlu0 %2197 }
 0xae8   :  { %v2204_v20 = vmul.f32 0.03125, %v2198_v29 }
 0xae9   :  { %v2201_v38 = vpop.xlane.xlu1 %2200 }
 0xaea   :  { %v2205_v61 = vmul.f32 0.03125, %v2201_v38  ;;  %v2228_v22 = vmul.f32 %v2204_v20, %v2204_v20  ;;  %v2236_v12 = vsub.f32 %v5846_v21, %v2204_v20 }
 0xaeb   :  { %v2192_v41 = vpop.xlane.xlu0 %2191 }
 0xaec   :  { %v2202_v7 = vmul.f32 0.03125, %v2192_v41  ;;  %v2229_v35 = vmul.f32 %v2205_v61, %v2205_v61  ;;  %v2237_v13 = vsub.f32 %v5852_v31, %v2205_v61 }
 0xaed   :  { %v2195_v19 = vpop.xlane.xlu1 %2194 }
 0xaee   :  { %v2203_v55 = vmul.f32 0.03125, %v2195_v19  ;;  %v2226_v48 = vmul.f32 %v2202_v7, %v2202_v7  ;;  %v2234_v58 = vsub.f32 %v5850_v24, %v2202_v7 }
 0xaef   :  { %v2212_v56 = vpop.xlane.xlu0 %2211 }
 0xaf0   :  { %v2222_v50 = vmul.f32 0.03125, %v2212_v56  ;;  %v2227_v0 = vmul.f32 %v2203_v55, %v2203_v55  ;;  %v2235_v47 = vsub.f32 %v5856_v4, %v2203_v55 }
 0xaf1   :  { %v2215_v51 = vpop.xlane.xlu1 %2214 }
 0xaf2   :  { %v2230_v54 = vsub.f32 %v2222_v50, %v2226_v48  ;;  %v2223_v8 = vmul.f32 0.03125, %v2215_v51 }
 0xaf3   :  { %v2218_v16 = vpop.xlane.xlu0 %2217 }
 0xaf4   :  { %v2238_v63 = vadd.f32 1e-06, %v2230_v54  ;;  %v2231_v5 = vsub.f32 %v2223_v8, %v2227_v0  ;;  %v2224_v45 = vmul.f32 0.03125, %v2218_v16 }
 0xaf5   :  { %v2221_v32 = vpop.xlane.xlu1 %2220 }
 0xaf6   :  { %5048 = vrsqrt.f32 %v2238_v63  ;;  %v2239_v9 = vadd.f32 1e-06, %v2231_v5  ;;  %v2232_v3 = vsub.f32 %v2224_v45, %v2228_v22  ;;  %v2225_v11 = vmul.f32 0.03125, %v2221_v32 }
 0xaf8   :  { %5050 = vrsqrt.f32 %v2239_v9  ;;  %v2240_v23 = vadd.f32 1e-06, %v2232_v3  ;;  %v2233_v1 = vsub.f32 %v2225_v11, %v2229_v35 }
 0xafa   :  { %5052 = vrsqrt.f32 %v2240_v23  ;;  %v2241_v42 = vadd.f32 1e-06, %v2233_v1 }
 0xafc   :  { %5054 = vrsqrt.f32 %v2241_v42 }
 0xb00   :  { %v5049_v44 = vpop.eup %5048 }
 0xb01   :  { %v2246_v52 = vmul.f32 %v5049_v44, %v2234_v58 }
 0xb02   :  { %v5051_v25 = vpop.eup %5050 }
 0xb03   :  { %v2247_v46 = vmul.f32 %v5051_v25, %v2235_v47  ;;  %v2254_v10 = vmul.f32 %v4310_v59, %v2246_v52 }
 0xb04   :  { %v5053_v17 = vpop.eup %5052 }
 0xb05   :  { %v2248_v57 = vmul.f32 %v5053_v17, %v2236_v12  ;;  %v2255_v15 = vmul.f32 %v4310_v59, %v2247_v46  ;;  %v2262_v26 = vadd.f32 %v4311_v30, %v2254_v10 }
 0xb06   :  { %v5055_v60 = vpop.eup %5054 }
 0xb07   :  { %v2249_v14 = vmul.f32 %v5055_v60, %v2237_v13  ;;  %v2263_v43 = vadd.f32 %v4311_v30, %v2255_v15  ;;  %v2256_v33 = vmul.f32 %v4310_v59, %v2248_v57 }
 0xb09   :  { %v2266_v6 = vpack.c.bf16 %v2263_v43, %v2262_v26  ;;  %v2257_v62 = vmul.f32 %v4310_v59, %v2249_v14  ;;  %v2264_v28 = vadd.f32 %v4311_v30, %v2256_v33 }
 0xb0b   :  { %4720 = vmatprep.mubr.msk.bf16.mxu0 %vm232_vm0, %v2266_v6  ;;  %v2265_v37 = vadd.f32 %v4311_v30, %v2257_v62 }
 0xb0d   :  { %v2267_v34 = vpack.c.bf16 %v2265_v37, %v2264_v28 }
 0xb0f   :  { %4721 = vmatmul.mubr.msk.bf16.vlgmr.msra.gmra.mrb[56].mxu0 %vm232_vm0, %v2267_v34 }
 0xb10   :  { %4726 = vmatprep.mubr.msk.bf16.mxu0 %vm5179_vm1, %v5176_v53 }
 0xbe2   :  { %v4722_v49 = vpop.f32.mrb[56].mxu0 }
 0xbe3   :  { %v2330_v36 = vpop.f32.mrb[57].mxu0  ;;  %v2339_v39 = vadd.f32 %v4722_v49, %v4316_v2 }
 0xbe4   :  { %v4723_v18 = vpop.f32.mrb[58].mxu0  ;;  %v2331_v29 = vadd.f32 %v4316_v2, %v2330_v36 }
 0xbe5   :  { %v2342_v27 = vadd.f32 %v4723_v18, %v4316_v2  ;;  %v2333_v40 = vpop.f32.mrb[59].mxu0 }
 0xbe6   :  { %v2334_v38 = vadd.f32 %v4316_v2, %v2333_v40 }
 0xbe7   :  { %v5900_v41 = vpack.c.bf16 %v2342_v27, %v2339_v39 }
 0xbe8   :  { %v5902_v7 = vpack.c.bf16 %v2334_v38, %v2331_v29 }
 0xbea   :  { %2350 = vrot.lane.b32.xlu1 %v5902_v7, %s5177_s30  ;;  %2348 = vrot.lane.b32.xlu0 %v5902_v7, %s5178_s7 }
 0xbee   :  { %2352 = vrot.lane.b32.xlu1 %v5902_v7, %s5180_s8  ;;  %2357 = vrot.lane.b32.xlu0 %v5900_v41, %s5177_s30 }
 0xbf2   :  { %2355 = vrot.lane.b32.xlu1 %v5900_v41, %s5178_s7  ;;  %2361 = vrot.lane.b32.xlu0 %v5902_v7, %s5181_s9 }
 0xbf6   :  { %2359 = vrot.lane.b32.xlu1 %v5900_v41, %s5180_s8 }
 0xc5c   :  { %v5918_v19 = vpop.permute.xlu1 %2350  ;;  %v5920_v55 = vpop.permute.xlu0 %2348 }
 0xc5d   :  { %2459 = vrot.lane.b32.xlu0 %v5918_v19, %s5181_s9  ;;  %2410 = vrot.lane.b32.xlu1 %v5920_v55, %s5181_s9 }
 0xc60   :  { %v5926_v56 = vpop.permute.xlu1 %2352  ;;  %v5928_v20 = vpop.permute.xlu0 %2357 }
 0xc61   :  { %2557 = vrot.lane.b32.xlu0 %v5900_v41, %s5181_s9  ;;  %2508 = vrot.lane.b32.xlu1 %v5926_v56, %s5181_s9 }
 0xc64   :  { %v5934_v48 = vpop.permute.xlu1 %2355  ;;  %v2362_v50 = vpop.permute.xlu0 %2361 }
 0xc65   :  { %v2367_v61 = vsel %vm406_vm2, %v2362_v50, 0  ;;  %2606 = vrot.lane.b32.xlu1 %v5934_v48, %s5181_s9  ;;  %2655 = vrot.lane.b32.xlu0 %v5928_v20, %s5181_s9 }
 0xc66   :  { %4725 = vmatpush3.bf16.xpose.msra.mxu0 %v2367_v61 }
 0xc67   :  { %4730 = vmatprep.subr.bf16.mxu0 %v5176_v53 }
 0xc68   :  { %v5942_v51 = vpop.permute.xlu1 %2359 }
 0xc69   :  { %2704 = vrot.lane.b32.xlu1 %v5942_v51, %s5181_s9 }
 0xc6d   :  { %4727 = vmatmul.mubr.msk.bf16.vlgmr.msra.gmra.mrb[60].mxu0 %vm406_vm2, %v5902_v7 }
 0xc6e   :  { %4732 = vmatprep.mubr.msk.bf16.mxu0 %vm5179_vm1, %v5176_v53 }
 0xccf   :  { %v2411_v0 = vpop.permute.xlu1 %2410  ;;  %v2460_v22 = vpop.permute.xlu0 %2459 }
 0xcd0   :  { %v2416_v54 = vsel %vm406_vm2, %v2411_v0, 0  ;;  %v2465_v63 = vsel %vm406_vm2, %v2460_v22, 0 }
 0xcd1   :  { %4731 = vmatpush3.bf16.xpose.msra.mxu0 %v2416_v54 }
 0xcd2   :  { %4736 = vmatprep.subr.bf16.mxu0 %v5176_v53 }
 0xcd3   :  { %v2509_v8 = vpop.permute.xlu1 %2508  ;;  %v2558_v35 = vpop.permute.xlu0 %2557 }
 0xcd4   :  { %v2514_v16 = vsel %vm406_vm2, %v2509_v8, 0  ;;  %v2563_v32 = vsel %vm406_vm2, %v2558_v35, 0 }
 0xcd5   :  { %4743 = vmatpush3.bf16.xpose.msra.mxu1 %v2514_v16 }
 0xcd6   :  { %4754 = vmatprep.subr.bf16.mxu1 %v5176_v53 }
 0xcd7   :  { %v2607_v5 = vpop.permute.xlu1 %2606  ;;  %v2656_v11 = vpop.permute.xlu0 %2655 }
 0xcd8   :  { %4733 = vmatmul.mubr.msk.bf16.vlgmr.msra.gmra.mrb[64].mxu0 %vm406_vm2, %v5920_v55  ;;  %v2612_v45 = vsel %vm406_vm2, %v2607_v5, 0  ;;  %v2661_v23 = vsel %vm406_vm2, %v2656_v11, 0 }
 0xcd9   :  { %4737 = vmatpush3.bf16.xpose.msra.mxu0 %v2465_v63  ;;  %4738 = vmatprep.mubr.msk.bf16.mxu0 %vm5179_vm1, %v5176_v53 }
 0xcda   :  { %4748 = vmatprep.subr.bf16.mxu0 %v5176_v53 }
 0xcdb   :  { %v2705_v9 = vpop.permute.xlu1 %2704 }
 0xcdc   :  { %4745 = vmatmul.mubr.msk.bf16.vlgmr.msra.gmra.mrb[60].mxu1 %vm406_vm2, %v5926_v56  ;;  %v2710_v3 = vsel %vm406_vm2, %v2705_v9, 0 }
 0xcdd   :  { %4755 = vmatpush3.bf16.xpose.msra.mxu1 %v2612_v45  ;;  %4756 = vmatprep.mubr.msk.bf16.mxu1 %vm5179_vm1, %v5176_v53 }
 0xcde   :  { %4766 = vmatprep.subr.bf16.mxu1 %v5176_v53 }
 0xce0   :  { %4739 = vmatmul.mubr.msk.bf16.vlgmr.msra.gmra.mrb[68].mxu0 %vm406_vm2, %v5918_v19 }
 0xce1   :  { %4749 = vmatpush3.bf16.xpose.msra.mxu0 %v2563_v32  ;;  %4750 = vmatprep.mubr.msk.bf16.mxu0 %vm5179_vm1, %v5176_v53 }
 0xce2   :  { %4760 = vmatprep.subr.bf16.mxu0 %v5176_v53 }
 0xce4   :  { %4757 = vmatmul.mubr.msk.bf16.vlgmr.msra.gmra.mrb[64].mxu1 %vm406_vm2, %v5934_v48 }
 0xce5   :  { %4767 = vmatpush3.bf16.xpose.msra.mxu1 %v2710_v3  ;;  %4768 = vmatprep.mubr.msk.bf16.mxu1 %vm5179_vm1, %v5176_v53 }
 0xce6   :  { %4778 = vmatprep.subr.bf16.mxu1 %v5176_v53 }
 0xce8   :  { %4751 = vmatmul.mubr.msk.bf16.vlgmr.msra.gmra.mrb[72].mxu0 %vm406_vm2, %v5900_v41 }
 0xce9   :  { %4761 = vmatpush3.bf16.xpose.msra.mxu0 %v2661_v23  ;;  %4762 = vmatprep.mubr.msk.bf16.mxu0 %vm5179_vm1, %v5176_v53 }
 0xcea   :  { %4772 = vmatprep.subr.bf16.mxu0 %v5176_v53 }
 0xcec   :  { %4769 = vmatmul.mubr.msk.bf16.vlgmr.msra.gmra.mrb[68].mxu1 %vm406_vm2, %v5942_v51 }
 0xced   :  { %4780 = vmatprep.mubr.msk.bf16.mxu1 %vm5179_vm1, %v5176_v53 }
 0xcf0   :  { %4763 = vmatmul.mubr.msk.bf16.vlgmr.msra.gmra.mrb[76].mxu0 %vm406_vm2, %v5928_v20 }
 0xcf1   :  { %4774 = vmatprep.mubr.msk.bf16.mxu0 %vm5179_vm1, %v5176_v53 }
 0xd40   :  { %v5992_v1 = vpop.f32.mrb[60].mxu0 }
 0xd41   :  { %v4728_v42 = vpop.f32.mrb[61].mxu0  ;;  %v2753_v58 = vsel %vm797_vm3, %v5992_v1, -inf }
 0xd42   :  { %2754 = vmax.xlane.f32.xlu0 %v2753_v58  ;;  %v5996_v44 = vpop.f32.mrb[62].mxu0 }
 0xd43   :  { %v4729_v59 = vpop.f32.mrb[63].mxu0  ;;  %v2756_v47 = vsel %vm797_vm3, %v5996_v44, -inf }
 0xd44   :  { %2757 = vmax.xlane.f32.xlu1 %v2756_v47 }
 0xdab   :  { %v6000_v52 = vpop.f32.mrb[64].mxu0 }
 0xdac   :  { %v4734_v25 = vpop.f32.mrb[65].mxu0  ;;  %v2759_v12 = vsel %vm797_vm3, %v6000_v52, -inf }
 0xdad   :  { %2760 = vmax.xlane.f32.xlu0 %v2759_v12  ;;  %v6004_v46 = vpop.f32.mrb[66].mxu0 }
 0xdae   :  { %v4735_v10 = vpop.f32.mrb[67].mxu0  ;;  %v2762_v43 = vsel %vm797_vm3, %v6004_v46, -inf }
 0xdaf   :  { %v6006_v17 = vpop.f32.mrb[60].mxu1 }
 0xdb0   :  { %v4746_v30 = vpop.f32.mrb[61].mxu1  ;;  %v2771_v13 = vsel %vm797_vm3, %v6006_v17, -inf }
 0xdb1   :  { %v6010_v57 = vpop.f32.mrb[62].mxu1  ;;  %2772 = vmax.xlane.f32.xlu0 %v2771_v13 }
 0xdb2   :  { %v4747_v15 = vpop.f32.mrb[63].mxu1  ;;  %v2774_v60 = vsel %vm797_vm3, %v6010_v57, -inf }
 0xdb3   :  { %2775 = vmax.xlane.f32.xlu1 %v2774_v60  ;;  %v6014_v14 = vpop.f32.mrb[68].mxu0 }
 0xdb4   :  { %v4740_v26 = vpop.f32.mrb[69].mxu0  ;;  %v2765_v34 = vsel %vm797_vm3, %v6014_v14, -inf }
 0xdb5   :  { %2763 = vmax.xlane.f32.xlu0 %v2762_v43  ;;  %v6018_v33 = vpop.f32.mrb[70].mxu0 }
 0xdb6   :  { %v4741_v6 = vpop.f32.mrb[71].mxu0  ;;  %v2768_v62 = vsel %vm797_vm3, %v6018_v33, -inf }
 0xdb7   :  { %v6022_v28 = vpop.f32.mrb[64].mxu1  ;;  %2769 = vmax.xlane.f32.xlu1 %v2768_v62 }
 0xdb8   :  { %v4758_v37 = vpop.f32.mrb[65].mxu1  ;;  %v2783_v27 = vsel %vm797_vm3, %v6022_v28, -inf }
 0xdb9   :  { %v6026_v49 = vpop.f32.mrb[66].mxu1  ;;  %2766 = vmax.xlane.f32.xlu0 %v2765_v34 }
 0xdba   :  { %v4759_v2 = vpop.f32.mrb[67].mxu1  ;;  %v2786_v36 = vsel %vm797_vm3, %v6026_v49, -inf }
 0xdbb   :  { %2787 = vmax.xlane.f32.xlu1 %v2786_v36  ;;  %v6030_v18 = vpop.f32.mrb[72].mxu0 }
 0xdbc   :  { %v4752_v39 = vpop.f32.mrb[73].mxu0  ;;  %v2777_v0 = vsel %vm797_vm3, %v6030_v18, -inf }
 0xdbd   :  { %2784 = vmax.xlane.f32.xlu0 %v2783_v27  ;;  %v6034_v40 = vpop.f32.mrb[74].mxu0 }
 0xdbe   :  { %v4753_v29 = vpop.f32.mrb[75].mxu0  ;;  %v2780_v38 = vsel %vm797_vm3, %v6034_v40, -inf }
 0xdbf   :  { %v6038_v50 = vpop.f32.mrb[68].mxu1  ;;  %2781 = vmax.xlane.f32.xlu1 %v2780_v38 }
 0xdc0   :  { %v4770_v61 = vpop.f32.mrb[69].mxu1  ;;  %v2795_v5 = vsel %vm797_vm3, %v6038_v50, -inf }
 0xdc1   :  { %v6042_v54 = vpop.f32.mrb[70].mxu1  ;;  %2778 = vmax.xlane.f32.xlu0 %v2777_v0 }
 0xdc2   :  { %v4771_v8 = vpop.f32.mrb[71].mxu1  ;;  %v2798_v16 = vsel %vm797_vm3, %v6042_v54, -inf }
 0xdc3   :  { %2799 = vmax.xlane.f32.xlu1 %v2798_v16  ;;  %v6046_v22 = vpop.f32.mrb[76].mxu0 }
 0xdc4   :  { %v4764_v63 = vpop.f32.mrb[77].mxu0  ;;  %v2789_v32 = vsel %vm797_vm3, %v6046_v22, -inf }
 0xdc5   :  { %2796 = vmax.xlane.f32.xlu0 %v2795_v5  ;;  %v6050_v45 = vpop.f32.mrb[78].mxu0 }
 0xdc6   :  { %v4765_v35 = vpop.f32.mrb[79].mxu0 }
 0xdc9   :  { %2790 = vmax.xlane.f32.xlu0 %v2789_v32 }
 0xdcf   :  { %v2755_v9 = vpop.xlane.xlu0 %2754 }
 0xdd0   :  { %v2801_v3 = vsub.f32 %v5992_v1, %v2755_v9 }
 0xdd2   :  { %v2817_v11 = vmul.f32 1.442695, %v2801_v3 }
 0xdd4   :  { %2984 = vrot.lane.b32.xlu1 %v5920_v55, %s5182_s10  ;;  %5056 = vpow2.f32 %v2817_v11  ;;  %v2792_v55 = vsel %vm797_vm3, %v6050_v45, -inf }
 0xdd8   :  { %3031 = vrot.lane.b32.xlu1 %v5918_v19, %s5182_s10 }
 0xddc   :  { %3078 = vrot.lane.b32.xlu1 %v5926_v56, %s5182_s10 }
 0xdde   :  { %v6065_v23 = vpop.eup %5056 }
 0xddf   :  { %2937 = vrot.lane.b32.xlu0 %v5902_v7, %s5182_s10  ;;  %v2849_v19 = vsel %vm797_vm3, %v6065_v23, 0.0  ;;  %v2758_v7 = vpop.xlane.xlu1 %2757 }
 0xde3   :  { %3125 = vrot.lane.b32.xlu0 %v5900_v41, %s5182_s10  ;;  %v2802_v41 = vsub.f32 %v5996_v44, %v2758_v7 }
 0xde5   :  { %v2819_v56 = vmul.f32 1.442695, %v2802_v41 }
 0xde7   :  { %5058 = vpow2.f32 %v2819_v56 }
 0xdf1   :  { %v6074_v1 = vpop.eup %5058 }
 0xdf2   :  { %v2852_v42 = vsel %vm797_vm3, %v6074_v1, 0.0 }
 0xe00   :  { %2793 = vmax.xlane.f32.xlu1 %v2792_v55 }
 0xe02   :  { %2850 = vadd.xlane.f32.xlu0 %v2849_v19 }
 0xe11   :  { %3172 = vrot.lane.b32.xlu1 %v5934_v48, %s5182_s10 }
 0xe35   :  { %2853 = vadd.xlane.f32.xlu1 %v2852_v42 }
 0xe3a   :  { %v2761_v58 = vpop.xlane.xlu0 %2760 }
 0xe3b   :  { %v2803_v59 = vsub.f32 %v6000_v52, %v2761_v58 }
 0xe3d   :  { %v2821_v47 = vmul.f32 1.442695, %v2803_v59 }
 0xe3e   :  { %v2773_v25 = vpop.xlane.xlu0 %2772 }
 0xe3f   :  { %5060 = vpow2.f32 %v2821_v47  ;;  %v2807_v12 = vsub.f32 %v6006_v17, %v2773_v25 }
 0xe40   :  { %v2776_v48 = vpop.xlane.xlu1 %2775 }
 0xe41   :  { %v2829_v10 = vmul.f32 1.442695, %v2807_v12  ;;  %v2808_v44 = vsub.f32 %v6010_v57, %v2776_v48 }
 0xe42   :  { %v2764_v30 = vpop.xlane.xlu0 %2763 }
 0xe43   :  { %5062 = vpow2.f32 %v2829_v10  ;;  %v2804_v13 = vsub.f32 %v6004_v46, %v2764_v30  ;;  %v2831_v60 = vmul.f32 1.442695, %v2808_v44 }
 0xe44   :  { %v2770_v15 = vpop.xlane.xlu1 %2769 }
 0xe45   :  { %v2823_v26 = vmul.f32 1.442695, %v2804_v13  ;;  %v2806_v43 = vsub.f32 %v6018_v33, %v2770_v15 }
 0xe46   :  { %v2767_v6 = vpop.xlane.xlu0 %2766 }
 0xe47   :  { %5064 = vpow2.f32 %v2823_v26  ;;  %v2805_v52 = vsub.f32 %v6014_v14, %v2767_v6  ;;  %v2827_v17 = vmul.f32 1.442695, %v2806_v43 }
 0xe48   :  { %v2788_v62 = vpop.xlane.xlu1 %2787  ;;  %5066 = vpow2.f32 %v2831_v60 }
 0xe49   :  { %v6084_v37 = vpop.eup %5060  ;;  %v2825_v34 = vmul.f32 1.442695, %v2805_v52  ;;  %v2812_v57 = vsub.f32 %v6026_v49, %v2788_v62 }
 0xe4a   :  { %v2785_v2 = vpop.xlane.xlu0 %2784  ;;  %v2855_v46 = vsel %vm797_vm3, %v6084_v37, 0.0 }
 0xe4b   :  { %5068 = vpow2.f32 %v2825_v34  ;;  %v2811_v36 = vsub.f32 %v6022_v28, %v2785_v2  ;;  %2856 = vadd.xlane.f32.xlu0 %v2855_v46  ;;  %v2839_v14 = vmul.f32 1.442695, %v2812_v57 }
 0xe4c   :  { %v2782_v33 = vpop.xlane.xlu1 %2781  ;;  %5070 = vpow2.f32 %v2827_v17 }
 0xe4d   :  { %v6090_v39 = vpop.eup %5062  ;;  %v2837_v27 = vmul.f32 1.442695, %v2811_v36  ;;  %v2810_v29 = vsub.f32 %v6034_v40, %v2782_v33 }
 0xe4e   :  { %v2779_v38 = vpop.xlane.xlu0 %2778  ;;  %v2867_v49 = vsel %vm797_vm3, %v6090_v39, 0.0 }
 0xe4f   :  { %5072 = vpow2.f32 %v2837_v27  ;;  %v2809_v61 = vsub.f32 %v6030_v18, %v2779_v38  ;;  %2868 = vadd.xlane.f32.xlu0 %v2867_v49  ;;  %v2835_v28 = vmul.f32 1.442695, %v2810_v29 }
 0xe50   :  { %v2800_v0 = vpop.xlane.xlu1 %2799  ;;  %5074 = vpow2.f32 %v2839_v14 }
 0xe51   :  { %v6096_v8 = vpop.eup %5064  ;;  %v2833_v16 = vmul.f32 1.442695, %v2809_v61  ;;  %v2816_v63 = vsub.f32 %v6042_v54, %v2800_v0 }
 0xe52   :  { %v2797_v5 = vpop.xlane.xlu0 %2796  ;;  %v2858_v40 = vsel %vm797_vm3, %v6096_v8, 0.0  ;;  %v6101_v35 = vpop.eup %5066 }
 0xe53   :  { %5076 = vpow2.f32 %v2833_v16  ;;  %v2815_v32 = vsub.f32 %v6038_v50, %v2797_v5  ;;  %2859 = vadd.xlane.f32.xlu1 %v2858_v40  ;;  %v2847_v3 = vmul.f32 1.442695, %v2816_v63  ;;  %v2870_v54 = vsel %vm797_vm3, %v6101_v35, 0.0 }
 0xe54   :  { %v2985_v18 = vpop.permute.xlu1 %2984  ;;  %5078 = vpow2.f32 %v2835_v28 }
 0xe55   :  { %v6104_v9 = vpop.eup %5068  ;;  %v2845_v11 = vmul.f32 1.442695, %v2815_v32  ;;  %4779 = vmatpush3.bf16.msra.mxu1 %v2985_v18 }
 0xe56   :  { %v2791_v55 = vpop.xlane.xlu0 %2790  ;;  %v2861_v19 = vsel %vm797_vm3, %v6104_v9, 0.0  ;;  %4790 = vmatprep.subr.bf16.mxu1 %v5176_v53  ;;  %v6111_v7 = vpop.eup %5070 }
 0xe57   :  { %5080 = vpow2.f32 %v2845_v11  ;;  %v2813_v50 = vsub.f32 %v6046_v22, %v2791_v55  ;;  %2871 = vadd.xlane.f32.xlu1 %v2870_v54  ;;  %2862 = vadd.xlane.f32.xlu0 %v2861_v19  ;;  %v2864_v58 = vsel %vm797_vm3, %v6111_v7, 0.0 }
 0xe58   :  { %5082 = vpow2.f32 %v2847_v3  ;;  %v3032_v43 = vpop.permute.xlu1 %3031 }
 0xe59   :  { %v6114_v41 = vpop.eup %5072  ;;  %v2841_v56 = vmul.f32 1.442695, %v2813_v50 }
 0xe5a   :  { %v2938_v42 = vpop.permute.xlu0 %2937  ;;  %v2879_v59 = vsel %vm797_vm3, %v6114_v41, 0.0  ;;  %v6120_v47 = vpop.eup %5074 }
 0xe5b   :  { %5084 = vpow2.f32 %v2841_v56  ;;  %2865 = vadd.xlane.f32.xlu1 %v2864_v58  ;;  %2880 = vadd.xlane.f32.xlu0 %v2879_v59  ;;  %v2882_v25 = vsel %vm797_vm3, %v6120_v47, 0.0 }
 0xe5c   :  { %4773 = vmatpush3.bf16.msra.mxu0 %v2938_v42  ;;  %v3079_v6 = vpop.permute.xlu1 %3078 }
 0xe5d   :  { %v6122_v22 = vpop.eup %5076  ;;  %4784 = vmatprep.subr.bf16.mxu0 %v5176_v53 }
 0xe5e   :  { %v2873_v12 = vsel %vm797_vm3, %v6122_v22, 0.0  ;;  %v6129_v48 = vpop.eup %5078  ;;  %v3126_v2 = vpop.permute.xlu0 %3125 }
 0xe5f   :  { %2883 = vadd.xlane.f32.xlu1 %v2882_v25  ;;  %2874 = vadd.xlane.f32.xlu0 %v2873_v12  ;;  %v2876_v44 = vsel %vm797_vm3, %v6129_v48, 0.0 }
 0xe61   :  { %v6131_v10 = vpop.eup %5080 }
 0xe62   :  { %v2891_v30 = vsel %vm797_vm3, %v6131_v10, 0.0  ;;  %v6137_v13 = vpop.eup %5082 }
 0xe63   :  { %2877 = vadd.xlane.f32.xlu1 %v2876_v44  ;;  %2892 = vadd.xlane.f32.xlu0 %v2891_v30  ;;  %v2894_v60 = vsel %vm797_vm3, %v6137_v13, 0.0 }
 0xe65   :  { %v6139_v15 = vpop.eup %5084 }
 0xe66   :  { %v2885_v26 = vsel %vm797_vm3, %v6139_v15, 0.0 }
 0xe67   :  { %2895 = vadd.xlane.f32.xlu1 %v2894_v60  ;;  %2886 = vadd.xlane.f32.xlu0 %v2885_v26 }
 0xe7d   :  { %3219 = vrot.lane.b32.xlu0 %v5928_v20, %s5182_s10 }
 0xe8d   :  { %v2794_v52 = vpop.xlane.xlu1 %2793 }
 0xe8e   :  { %v2814_v62 = vsub.f32 %v6050_v45, %v2794_v52 }
 0xe8f   :  { %v2851_v46 = vpop.xlane.xlu0 %2850 }
 0xe90   :  { %v2843_v17 = vmul.f32 1.442695, %v2814_v62 }
 0xe91   :  { %v3173_v36 = vpop.permute.xlu1 %3172 }
 0xe92   :  { %5086 = vpow2.f32 %v2843_v17 }
 0xe93   :  { %5088 = vrcp.f32 %v2851_v46 }
 0xe9c   :  { %v6148_v34 = vpop.eup %5086 }
 0xe9d   :  { %v2888_v57 = vsel %vm797_vm3, %v6148_v34, 0.0  ;;  %v5089_v33 = vpop.eup %5088 }
 0xe9e   :  { %2889 = vadd.xlane.f32.xlu1 %v2888_v57  ;;  %v2913_v45 = vmul.f32 %v5089_v33, %v6065_v23 }
 0xeaf   :  { %3266 = vrot.lane.b32.xlu1 %v5942_v51, %s5182_s10 }
 0xec2   :  { %v2854_v20 = vpop.xlane.xlu1 %2853 }
 0xec3   :  { %5090 = vrcp.f32 %v2854_v20 }
 0xecd   :  { %v5091_v14 = vpop.eup %5090 }
 0xece   :  { %v2914_v27 = vmul.f32 %v5091_v14, %v6074_v1  ;;  %v4338_v14 = vld [vmem:[%s6443_s4 + $0x24] sm:$0xf] }
 0xed0   :  { %v2929_v29 = vpack.c.bf16 %v2914_v27, %v2913_v45  ;;  %v3381_v45 = vsel %vm1377_vm4, %v4338_v14, 0 }
 0xed2   :  { %4775 = vmatmul.mubr.msk.bf16.vlgmr.msra.gmra.mrb[80].mxu0 %vm797_vm3, %v2929_v29 }
 0xed3   :  { %4785 = vmatpush3.bf16.msra.mxu0 %v3032_v43  ;;  %4786 = vmatprep.mubr.msk.bf16.mxu0 %vm5179_vm1, %v5176_v53 }
 0xed4   :  { %4796 = vmatprep.subr.bf16.mxu0 %v5176_v53 }
 0xed8   :  { %v2857_v51 = vpop.xlane.xlu0 %2856 }
 0xed9   :  { %5092 = vrcp.f32 %v2857_v51 }
 0xedc   :  { %v2869_v38 = vpop.xlane.xlu0 %2868 }
 0xee0   :  { %v2860_v49 = vpop.xlane.xlu1 %2859 }
 0xee1   :  { %5094 = vrcp.f32 %v2860_v49 }
 0xee3   :  { %v5093_v28 = vpop.eup %5092 }
 0xee4   :  { %v2872_v61 = vpop.xlane.xlu1 %2871  ;;  %v2863_v0 = vpop.xlane.xlu0 %2862  ;;  %v2915_v63 = vmul.f32 %v5093_v28, %v6084_v37 }
 0xee5   :  { %5096 = vrcp.f32 %v2872_v61 }
 0xee6   :  { %5098 = vrcp.f32 %v2869_v38 }
 0xee7   :  { %5100 = vrcp.f32 %v2863_v0  ;;  %v4340_v0 = vld [vmem:[%s6443_s4 + $0x2c] sm:$0xf] }
 0xee8   :  { %v2866_v23 = vpop.xlane.xlu1 %2865  ;;  %v2881_v1 = vpop.xlane.xlu0 %2880 }
 0xee9   :  { %5102 = vrcp.f32 %v2866_v23 }
 0xeeb   :  { %v5095_v16 = vpop.eup %5094 }
 0xeec   :  { %v2916_v5 = vmul.f32 %v5095_v16, %v6096_v8  ;;  %v2884_v40 = vpop.xlane.xlu1 %2883  ;;  %v2875_v32 = vpop.xlane.xlu0 %2874 }
 0xeed   :  { %5104 = vrcp.f32 %v2884_v40 }
 0xeee   :  { %5106 = vrcp.f32 %v2881_v1  ;;  %v2930_v18 = vpack.c.bf16 %v2916_v5, %v2915_v63  ;;  %v3475_v63 = vsel %vm1377_vm4, %v4340_v0, 0 }
 0xeef   :  { %v5097_v3 = vpop.eup %5096  ;;  %5108 = vrcp.f32 %v2875_v32  ;;  %v4341_v32 = vld [vmem:[%s6443_s4 + $0x30] sm:$0xf] }
 0xef0   :  { %v5099_v11 = vpop.eup %5098  ;;  %v2878_v55 = vpop.xlane.xlu1 %2877  ;;  %4781 = vmatmul.mubr.msk.bf16.vlgmr.msra.gmra.mrb[72].mxu1 %vm797_vm3, %v2930_v18  ;;  %v2920_v37 = vmul.f32 %v5097_v3, %v6101_v35  ;;  %v4342_v18 = vld [vmem:[%s6443_s4 + $0x34] sm:$0xf] }
 0xef1   :  { %v5101_v54 = vpop.eup %5100  ;;  %5110 = vrcp.f32 %v2878_v55  ;;  %4791 = vmatpush3.bf16.msra.mxu1 %v3079_v6  ;;  %4792 = vmatprep.mubr.msk.bf16.mxu1 %vm5179_vm1, %v5176_v53  ;;  %v2919_v19 = vmul.f32 %v5099_v11, %v6090_v39  ;;  %v2893_v42 = vpop.xlane.xlu0 %2892 }
 0xef2   :  { %4802 = vmatprep.subr.bf16.mxu1 %v5176_v53  ;;  %v2917_v50 = vmul.f32 %v5101_v54, %v6104_v9 }
 0xef3   :  { %v5103_v8 = vpop.eup %5102  ;;  %v2932_v59 = vpack.c.bf16 %v2920_v37, %v2919_v19 }
 0xef4   :  { %v2918_v56 = vmul.f32 %v5103_v8, %v6111_v7 }
 0xef5   :  { %v2887_v30 = vpop.xlane.xlu0 %2886 }
 0xef6   :  { %v2931_v58 = vpack.c.bf16 %v2918_v56, %v2917_v50  ;;  %v3522_v56 = vsel %vm1377_vm4, %v4341_v32, 0 }
 0xef7   :  { %v5105_v25 = vpop.eup %5104 }
 0xef8   :  { %v5107_v12 = vpop.eup %5106  ;;  %4787 = vmatmul.mubr.msk.bf16.vlgmr.msra.gmra.mrb[84].mxu0 %vm797_vm3, %v2931_v58  ;;  %4793 = vmatmul.mubr.msk.bf16.vlgmr.msra.gmra.mrb[76].mxu1 %vm797_vm3, %v2932_v59  ;;  %v2924_v35 = vmul.f32 %v5105_v25, %v6120_v47  ;;  %v4344_v25 = vld [vmem:[%s6443_s4 + $0x3c] sm:$0xf] }
 0xef9   :  { %v5109_v44 = vpop.eup %5108  ;;  %4797 = vmatpush3.bf16.msra.mxu0 %v3126_v2  ;;  %4803 = vmatpush3.bf16.msra.mxu1 %v3173_v36  ;;  %v2923_v9 = vmul.f32 %v5107_v12, %v6114_v41  ;;  %v3220_v43 = vpop.permute.xlu0 %3219  ;;  %v4337_v36 = vld [vmem:[%s6443_s4 + $0x20] sm:$0xf] }
 0xefa   :  { %4798 = vmatprep.mubr.msk.bf16.mxu0 %vm5179_vm1, %v5176_v53  ;;  %4804 = vmatprep.mubr.msk.bf16.mxu1 %vm5179_vm1, %v5176_v53  ;;  %v2921_v7 = vmul.f32 %v5109_v44, %v6122_v22  ;;  %v2896_v41 = vpop.xlane.xlu1 %2895  ;;  %v3334_v33 = vsel %vm1377_vm4, %v4337_v36, 0 }
 0xefb   :  { %v5111_v39 = vpop.eup %5110  ;;  %4808 = vmatprep.subr.bf16.mxu0 %v5176_v53  ;;  %4814 = vmatprep.subr.bf16.mxu1 %v5176_v53  ;;  %v2934_v47 = vpack.c.bf16 %v2924_v35, %v2923_v9  ;;  %5112 = vrcp.f32 %v2896_v41  ;;  %v4343_v35 = vld [vmem:[%s6443_s4 + $0x38] sm:$0xf] }
 0xefc   :  { %v2922_v60 = vmul.f32 %v5111_v39, %v6129_v48  ;;  %5114 = vrcp.f32 %v2893_v42  ;;  %v3569_v42 = vsel %vm1377_vm4, %v4342_v18, 0 }
 0xefd   :  { %5116 = vrcp.f32 %v2887_v30 }
 0xefe   :  { %v2933_v26 = vpack.c.bf16 %v2922_v60, %v2921_v7 }
 0xf00   :  { %4799 = vmatmul.mubr.msk.bf16.vlgmr.msra.gmra.mrb[88].mxu0 %vm797_vm3, %v2933_v26  ;;  %4805 = vmatmul.mubr.msk.bf16.vlgmr.msra.gmra.mrb[80].mxu1 %vm797_vm3, %v2934_v47  ;;  %v3663_v47 = vsel %vm1377_vm4, %v4344_v25, 0 }
 0xf01   :  { %4809 = vmatpush3.bf16.msra.mxu0 %v3220_v43  ;;  %4816 = vmatprep.mubr.msk.bf16.mxu1 %vm5179_vm1, %v5176_v53  ;;  %v3616_v43 = vsel %vm1377_vm4, %v4343_v35, 0 }
 0xf02   :  { %4810 = vmatprep.mubr.msk.bf16.mxu0 %vm5179_vm1, %v5176_v53  ;;  %4820 = vmatprep.subr.bf16.mxu0 %v5176_v53 }
 0xf05   :  { %v5113_v22 = vpop.eup %5112 }
 0xf06   :  { %v5115_v6 = vpop.eup %5114  ;;  %v2928_v52 = vmul.f32 %v5113_v22, %v6137_v13 }
 0xf07   :  { %v2927_v62 = vmul.f32 %v5115_v6, %v6131_v10  ;;  %v5117_v2 = vpop.eup %5116 }
 0xf08   :  { %v2925_v13 = vmul.f32 %v5117_v2, %v6139_v15 }
 0xf09   :  { %v2936_v57 = vpack.c.bf16 %v2928_v52, %v2927_v62 }
 0xf2b   :  { %v2890_v48 = vpop.xlane.xlu1 %2889 }
 0xf2c   :  { %5118 = vrcp.f32 %v2890_v48 }
 0xf2f   :  { %v3267_v17 = vpop.permute.xlu1 %3266 }
 0xf30   :  { %4815 = vmatpush3.bf16.msra.mxu1 %v3267_v17 }
 0xf31   :  { %4826 = vmatprep.subr.bf16.mxu1 %v5176_v53 }
 0xf33   :  { %4817 = vmatmul.mubr.msk.bf16.vlgmr.msra.gmra.mrb[84].mxu1 %vm797_vm3, %v2936_v57 }
 0xf34   :  { %4828 = vmatprep.mubr.msk.bf16.mxu1 %vm5179_vm1, %v5176_v53  ;;  %4827 = vmatpush3.bf16.msra.mxu1 %v3381_v45 }
 0xf35   :  { %4838 = vmatprep.subr.bf16.mxu1 %v5176_v53 }
 0xf36   :  { %v5119_v46 = vpop.eup %5118 }
 0xf37   :  { %v2926_v10 = vmul.f32 %v5119_v46, %v6148_v34  ;;  %v4339_v34 = vld [vmem:[%s6443_s4 + $0x28] sm:$0xf] }
 0xf38   :  { %v3428_v49 = vsel %vm1377_vm4, %v4339_v34, 0 }
 0xf39   :  { %v2935_v20 = vpack.c.bf16 %v2926_v10, %v2925_v13 }
 0xf3b   :  { %4811 = vmatmul.mubr.msk.bf16.vlgmr.msra.gmra.mrb[92].mxu0 %vm797_vm3, %v2935_v20 }
 0xf3c   :  { %4821 = vmatpush3.bf16.msra.mxu0 %v3334_v33  ;;  %4822 = vmatprep.mubr.msk.bf16.mxu0 %vm5179_vm1, %v5176_v53 }
 0xf3d   :  { %4832 = vmatprep.subr.bf16.mxu0 %v5176_v53 }
 0xfa5   :  { %v2977_v15 = vpop.f32.mrb[80].mxu0 }
 0xfa6   :  { %v4776_v27 = vpop.f32.mrb[81].mxu0 }
 0xfa7   :  { %v2980_v29 = vpop.f32.mrb[82].mxu0 }
 0xfa8   :  { %v3313_v51 = vpack.c.bf16 %v2980_v29, %v2977_v15  ;;  %v4777_v38 = vpop.f32.mrb[83].mxu0 }
 0xfaa   :  { %4823 = vmatmul.mubr.msk.bf16.vlgmr.msra.gmra.mrb[96].mxu0 %vm406_vm2, %v3313_v51 }
 0xfab   :  { %4833 = vmatpush3.bf16.msra.mxu0 %v3428_v49  ;;  %4834 = vmatprep.mubr.msk.bf16.mxu0 %vm5179_vm1, %v5176_v53 }
 0xfac   :  { %4844 = vmatprep.subr.bf16.mxu0 %v5176_v53 }
 0xfc3   :  { %v3024_v61 = vpop.f32.mrb[72].mxu1 }
 0xfc4   :  { %v4782_v23 = vpop.f32.mrb[73].mxu1 }
 0xfc5   :  { %v3027_v1 = vpop.f32.mrb[74].mxu1 }
 0xfc6   :  { %v3314_v28 = vpack.c.bf16 %v3027_v1, %v3024_v61  ;;  %v4783_v16 = vpop.f32.mrb[75].mxu1 }
 0xfc8   :  { %4829 = vmatmul.mubr.msk.bf16.vlgmr.msra.gmra.mrb[88].mxu1 %vm406_vm2, %v3314_v28 }
 0xfc9   :  { %4839 = vmatpush3.bf16.msra.mxu1 %v3475_v63  ;;  %4840 = vmatprep.mubr.msk.bf16.mxu1 %vm5179_vm1, %v5176_v53 }
 0xfca   :  { %4850 = vmatprep.subr.bf16.mxu1 %v5176_v53 }
 0xfcb   :  { %v3071_v5 = vpop.f32.mrb[84].mxu0  ;;  %v3118_v40 = vpop.f32.mrb[76].mxu1 }
 0xfcc   :  { %v4788_v3 = vpop.f32.mrb[85].mxu0  ;;  %v4794_v11 = vpop.f32.mrb[77].mxu1 }
 0xfcd   :  { %v3074_v55 = vpop.f32.mrb[86].mxu0  ;;  %v3121_v54 = vpop.f32.mrb[78].mxu1 }
 0xfce   :  { %v3315_v37 = vpack.c.bf16 %v3074_v55, %v3071_v5  ;;  %v3316_v8 = vpack.c.bf16 %v3121_v54, %v3118_v40  ;;  %v4789_v19 = vpop.f32.mrb[87].mxu0  ;;  %v4795_v50 = vpop.f32.mrb[79].mxu1  ;;  %v4353_v55 = vld [vmem:[%s6444_s5 + $0x2b] ss:$0 sm:$0xff] }
 0xfd0   :  { %4835 = vmatmul.mubr.msk.bf16.vlgmr.msra.gmra.mrb[100].mxu0 %vm406_vm2, %v3315_v37  ;;  %4841 = vmatmul.mubr.msk.bf16.vlgmr.msra.gmra.mrb[92].mxu1 %vm406_vm2, %v3316_v8 }
 0xfd1   :  { %4845 = vmatpush3.bf16.msra.mxu0 %v3522_v56  ;;  %4851 = vmatpush3.bf16.msra.mxu1 %v3569_v42 }
 0xfd2   :  { %4846 = vmatprep.mubr.msk.bf16.mxu0 %vm5179_vm1, %v5176_v53  ;;  %4852 = vmatprep.mubr.msk.bf16.mxu1 %vm5179_vm1, %v5176_v53 }
 0xfd3   :  { %v3165_v58 = vpop.f32.mrb[88].mxu0  ;;  %v3212_v59 = vpop.f32.mrb[80].mxu1  ;;  %4862 = vmatprep.subr.bf16.mxu1 %v5176_v53  ;;  %4856 = vmatprep.subr.bf16.mxu0 %v5176_v53 }
 0xfd4   :  { %v4800_v12 = vpop.f32.mrb[89].mxu0  ;;  %v4806_v44 = vpop.f32.mrb[81].mxu1 }
 0xfd5   :  { %v3168_v30 = vpop.f32.mrb[90].mxu0  ;;  %v3215_v39 = vpop.f32.mrb[82].mxu1 }
 0xfd6   :  { %v3317_v9 = vpack.c.bf16 %v3168_v30, %v3165_v58  ;;  %v3318_v7 = vpack.c.bf16 %v3215_v39, %v3212_v59  ;;  %v4801_v60 = vpop.f32.mrb[91].mxu0  ;;  %v4807_v26 = vpop.f32.mrb[83].mxu1 }
 0xfd8   :  { %4847 = vmatmul.mubr.msk.bf16.vlgmr.msra.gmra.mrb[104].mxu0 %vm406_vm2, %v3317_v9  ;;  %4853 = vmatmul.mubr.msk.bf16.vlgmr.msra.gmra.mrb[96].mxu1 %vm406_vm2, %v3318_v7 }
 0xfd9   :  { %4863 = vmatpush3.bf16.msra.mxu1 %v3663_v47  ;;  %4864 = vmatprep.mubr.msk.bf16.mxu1 %vm5179_vm1, %v5176_v53 }
 0xfda   :  { %4857 = vmatpush3.bf16.msra.mxu0 %v3616_v43  ;;  %4858 = vmatprep.mubr.msk.bf16.mxu0 %vm5179_vm1, %v5176_v53 }
0x1006   :  { %v3306_v41 = vpop.f32.mrb[84].mxu1 }
0x1007   :  { %v4818_v22 = vpop.f32.mrb[85].mxu1 }
0x1008   :  { %v3309_v48 = vpop.f32.mrb[86].mxu1 }
0x1009   :  { %v3320_v6 = vpack.c.bf16 %v3309_v48, %v3306_v41  ;;  %v4819_v52 = vpop.f32.mrb[87].mxu1 }
0x100b   :  { %4865 = vmatmul.mubr.msk.bf16.vlgmr.msra.gmra.mrb[100].mxu1 %vm406_vm2, %v3320_v6 }
0x100e   :  { %v3259_v62 = vpop.f32.mrb[92].mxu0 }
0x100f   :  { %v4812_v17 = vpop.f32.mrb[93].mxu0 }
0x1010   :  { %v3262_v57 = vpop.f32.mrb[94].mxu0 }
0x1011   :  { %v3319_v2 = vpack.c.bf16 %v3262_v57, %v3259_v62  ;;  %v4813_v46 = vpop.f32.mrb[95].mxu0 }
0x1013   :  { %4859 = vmatmul.mubr.msk.bf16.vlgmr.msra.gmra.mrb[108].mxu0 %vm406_vm2, %v3319_v2 }
0x107d   :  { %v3370_v36 = vpop.f32.mrb[96].mxu0 }
0x107e   :  { %v4824_v13 = vpop.f32.mrb[97].mxu0  ;;  %v3706_v53 = vsel %vm232_vm0, %v3370_v36, 0.0 }
0x107f   :  { %v3373_v10 = vpop.f32.mrb[98].mxu0 }
0x1080   :  { %v4825_v20 = vpop.f32.mrb[99].mxu0  ;;  %v3713_v27 = vsel %vm232_vm0, %v3373_v10, 0.0 }
0x109b   :  { %v3417_v33 = vpop.f32.mrb[88].mxu1 }
0x109c   :  { %v3707_v14 = vsel %vm232_vm0, %v3417_v33, 0.0  ;;  %v4830_v45 = vpop.f32.mrb[89].mxu1 }
0x109d   :  { %v3708_v15 = vadd.f32 %v3707_v14, %v3706_v53  ;;  %v3420_v34 = vpop.f32.mrb[90].mxu1 }
0x109e   :  { %v3714_v29 = vsel %vm232_vm0, %v3420_v34, 0.0  ;;  %v4831_v51 = vpop.f32.mrb[91].mxu1 }
0x109f   :  { %v3715_v38 = vadd.f32 %v3714_v29, %v3713_v27 }
0x10a3   :  { %v3464_v49 = vpop.f32.mrb[100].mxu0  ;;  %v3511_v61 = vpop.f32.mrb[92].mxu1 }
0x10a4   :  { %v3709_v0 = vsel %vm232_vm0, %v3464_v49, 0.0  ;;  %v4836_v23 = vpop.f32.mrb[101].mxu0  ;;  %v4842_v1 = vpop.f32.mrb[93].mxu1  ;;  %v3711_v5 = vsel %vm232_vm0, %v3511_v61, 0.0 }
0x10a5   :  { %v3710_v28 = vadd.f32 %v3709_v0, %v3708_v15  ;;  %v3467_v16 = vpop.f32.mrb[102].mxu0  ;;  %v3514_v63 = vpop.f32.mrb[94].mxu1  ;;  %v4942_v23 = vld [vmem:[%s6442_s3 + $0x10] sm:$0xff]   ;;  %v4943_v1 = vld [vmem:[%s6442_s3 + $0x18] sm:$0xff]   ;;  %s4231_s3 = sshll.u32 %s5183_s2, 4  ;;  %s4232_s3 = int_to_ptr.vmem [resolvable:$true] %s4231_s3 }
0x10a6   :  { %v3716_v40 = vsel %vm232_vm0, %v3467_v16, 0.0  ;;  %v4837_v32 = vpop.f32.mrb[103].mxu0  ;;  %v4843_v18 = vpop.f32.mrb[95].mxu1  ;;  %v3718_v54 = vsel %vm232_vm0, %v3514_v63, 0.0  ;;  %4868 = vmatprep.subr.bf16.mxu0 %v4942_v23  ;;  %p5157_p1 = scmp.lt.s32.totalorder %s4232_s3, %s4232_s3 }
0x10a7   :  { %v3712_v3 = vadd.f32 %v3711_v5, %v3710_v28  ;;  %v3717_v11 = vadd.f32 %v3716_v40, %v3715_v38  ;;  %4869 = vmatpush3.bf16.msra.mxu0 %v4942_v23  ;;  %v4950_v23 = vld [vmem:[%s6440_s1 + $0xf0] sm:$0xff]  }
0x10a8   :  { %4870 = vmatprep.subr.bf16.mxu0 %v4943_v1 }
0x10a9   :  { %v3734_v37 = vadd.f32 %v3712_v3, %v5850_v24  ;;  %v3719_v8 = vadd.f32 %v3718_v54, %v3717_v11 }
0x10ab   :  { %v6270_v19 = vadd.f32 %v4353_v55, %v3734_v37  ;;  %v3735_v50 = vadd.f32 %v3719_v8, %v5856_v4  ;;  %v3558_v56 = vpop.f32.mrb[104].mxu0  ;;  %v3605_v42 = vpop.f32.mrb[96].mxu1  ;;  %4871 = vmatpush3.bf16.msra.mxu0 %v4943_v1  ;;  %v4951_v1 = vld [vmem:[%s6440_s1 + $0xf8] sm:$0xff]  }
0x10ac   :  { %v3720_v58 = vsel %vm232_vm0, %v3558_v56, 0.0  ;;  %v3721_v59 = vsel %vm232_vm0, %v3605_v42, 0.0  ;;  %v4848_v25 = vpop.f32.mrb[105].mxu0  ;;  %v4854_v12 = vpop.f32.mrb[97].mxu1 }
0x10ad   :  { %v6275_v44 = vadd.f32 %v4353_v55, %v3735_v50  ;;  %v3722_v35 = vadd.f32 %v3721_v59, %v3720_v58  ;;  %v3561_v30 = vpop.f32.mrb[106].mxu0  ;;  %v3608_v39 = vpop.f32.mrb[98].mxu1  ;;  %v3749_v24 = vsel %vm232_vm0, %v6270_v19, 0.0  ;;  %v3765_v9 = vmul.f32 %v6270_v19, %v6270_v19  ;;  %v4354_v58 = vld [vmem:[%s6444_s5 + $0x2c] ss:$0 sm:$0xff] }
0x10ae   :  { %v3727_v4 = vsel %vm232_vm0, %v3561_v30, 0.0  ;;  %v3728_v7 = vsel %vm232_vm0, %v3608_v39, 0.0  ;;  %v4855_v60 = vpop.f32.mrb[99].mxu1  ;;  %3750 = vadd.xlane.f32.xlu0 %v3749_v24  ;;  %v4849_v26 = vpop.f32.mrb[107].mxu0  ;;  %v4355_v39 = vld [vmem:[%s6444_s5 + $0x2d] ss:$0 sm:$0xff] }
0x10af   :  { %v3729_v47 = vadd.f32 %v3728_v7, %v3727_v4  ;;  %v3752_v43 = vsel %vm232_vm0, %v6275_v44, 0.0  ;;  %v3766_v41 = vmul.f32 %v6275_v44, %v6275_v44  ;;  %v3769_v22 = vsel %vm232_vm0, %v3765_v9, 0.0 }
0x10b0   :  { %3753 = vadd.xlane.f32.xlu1 %v3752_v43 }
0x10b1   :  { %v3772_v48 = vsel %vm232_vm0, %v3766_v41, 0.0 }
0x10b2   :  { %3770 = vadd.xlane.f32.xlu0 %v3769_v22 }
0x10b4   :  { %3773 = vadd.xlane.f32.xlu1 %v3772_v48 }
0x10de   :  { %v3699_v6 = vpop.f32.mrb[100].mxu1 }
0x10df   :  { %v4866_v52 = vpop.f32.mrb[101].mxu1  ;;  %v3725_v10 = vsel %vm232_vm0, %v3699_v6, 0.0 }
0x10e0   :  { %v3702_v62 = vpop.f32.mrb[102].mxu1 }
0x10e1   :  { %v4867_v17 = vpop.f32.mrb[103].mxu1  ;;  %v3732_v45 = vsel %vm232_vm0, %v3702_v62, 0.0 }
0x10e6   :  { %v3652_v57 = vpop.f32.mrb[108].mxu0 }
0x10e7   :  { %v3723_v2 = vsel %vm232_vm0, %v3652_v57, 0.0  ;;  %v4860_v46 = vpop.f32.mrb[109].mxu0 }
0x10e8   :  { %v3724_v36 = vadd.f32 %v3723_v2, %v3722_v35  ;;  %v3655_v13 = vpop.f32.mrb[110].mxu0 }
0x10e9   :  { %v3730_v20 = vsel %vm232_vm0, %v3655_v13, 0.0  ;;  %v4861_v33 = vpop.f32.mrb[111].mxu0 }
0x10ea   :  { %v3726_v53 = vadd.f32 %v3725_v10, %v3724_v36  ;;  %v3731_v14 = vadd.f32 %v3730_v20, %v3729_v47 }
0x10ec   :  { %v3736_v15 = vadd.f32 %v3726_v53, %v5846_v21  ;;  %v3733_v34 = vadd.f32 %v3732_v45, %v3731_v14 }
0x10ee   :  { %v6294_v27 = vadd.f32 %v4353_v55, %v3736_v15  ;;  %v3737_v29 = vadd.f32 %v3733_v34, %v5852_v31 }
0x10f0   :  { %v6297_v51 = vadd.f32 %v4353_v55, %v3737_v29  ;;  %v3755_v38 = vsel %vm232_vm0, %v6294_v27, 0.0  ;;  %v3767_v21 = vmul.f32 %v6294_v27, %v6294_v27 }
0x10f1   :  { %3756 = vadd.xlane.f32.xlu0 %v3755_v38  ;;  %v4944_v38 = vld [vmem:[%s6440_s1 + $0xc0] sm:$0xff]  }
0x10f2   :  { %v3768_v49 = vmul.f32 %v6297_v51, %v6297_v51  ;;  %v3758_v0 = vsel %vm232_vm0, %v6297_v51, 0.0  ;;  %v3775_v31 = vsel %vm232_vm0, %v3767_v21, 0.0  ;;  %4876 = vmatprep.subr.bf16.mxu1 %v4944_v38  ;;  %v4948_v21 = vld [vmem:[%s6440_s1 + $0xe0] sm:$0xff]  }
0x10f3   :  { %4877 = vmatpush3.bf16.msra.mxu1 %v4944_v38 }
0x10f4   :  { %v3778_v61 = vsel %vm232_vm0, %v3768_v49, 0.0  ;;  %v4945_v49 = vld [vmem:[%s6440_s1 + $0xc8] sm:$0xff]  }
0x10f5   :  { %3779 = vadd.xlane.f32.xlu1 %v3778_v61  ;;  %3759 = vadd.xlane.f32.xlu0 %v3758_v0  ;;  %v4946_v61 = vld [vmem:[%s6440_s1 + $0xd0] sm:$0xff]   ;;  %v4947_v0 = vld [vmem:[%s6440_s1 + $0xd8] sm:$0xff]  }
0x10f6   :  { %4878 = vmatprep.subr.bf16.mxu1 %v4945_v49 }
0x10f7   :  { %4879 = vmatpush3.bf16.msra.mxu1 %v4945_v49 }
0x10f8   :  { %4880 = vmatprep.subr.bf16.mxu1 %v4946_v61 }
0x10f9   :  { %3776 = vadd.xlane.f32.xlu0 %v3775_v31  ;;  %v4949_v31 = vld [vmem:[%s6440_s1 + $0xe8] sm:$0xff]  }
0x10fb   :  { %4881 = vmatpush3.bf16.msra.mxu1 %v4946_v61 }
0x10fc   :  { %4882 = vmatprep.subr.bf16.mxu1 %v4947_v0 }
0x10ff   :  { %4883 = vmatpush3.bf16.msra.mxu1 %v4947_v0 }
0x1100   :  { %4884 = vmatprep.subr.bf16.mxu1 %v4948_v21 }
0x1103   :  { %4885 = vmatpush3.bf16.msra.mxu1 %v4948_v21 }
0x1104   :  { %4886 = vmatprep.subr.bf16.mxu1 %v4949_v31 }
0x1107   :  { %4887 = vmatpush3.bf16.msra.mxu1 %v4949_v31 }
0x1108   :  { %4888 = vmatprep.subr.bf16.mxu1 %v4950_v23 }
0x110b   :  { %4889 = vmatpush3.bf16.msra.mxu1 %v4950_v23 }
0x110c   :  { %4890 = vmatprep.subr.bf16.mxu1 %v4951_v1 }
0x110f   :  { %4891 = vmatpush3.bf16.msra.mxu1 %v4951_v1 }
0x113b   :  { %v3751_v28 = vpop.xlane.xlu0 %3750 }
0x113c   :  { %v3761_v16 = vmul.f32 0.03125, %v3751_v28  ;;  %v4360_v28 = vld [vmem:[%s6444_s5 + $0x2e] ss:$0 sm:$0xff] }
0x113d   :  { %v3754_v63 = vpop.xlane.xlu1 %3753 }
0x113e   :  { %v3762_v5 = vmul.f32 0.03125, %v3754_v63  ;;  %v3785_v32 = vmul.f32 %v3761_v16, %v3761_v16  ;;  %v3793_v56 = vsub.f32 %v6270_v19, %v3761_v16 }
0x113f   :  { %v3771_v40 = vpop.xlane.xlu0 %3770 }
0x1140   :  { %v3781_v18 = vmul.f32 0.03125, %v3771_v40  ;;  %v3786_v11 = vmul.f32 %v3762_v5, %v3762_v5  ;;  %v3794_v59 = vsub.f32 %v6275_v44, %v3762_v5 }
0x1141   :  { %v3774_v3 = vpop.xlane.xlu1 %3773 }
0x1142   :  { %v3789_v55 = vsub.f32 %v3781_v18, %v3785_v32  ;;  %v3782_v54 = vmul.f32 0.03125, %v3774_v3 }
0x1144   :  { %v3797_v37 = vadd.f32 1e-06, %v3789_v55  ;;  %v3790_v8 = vsub.f32 %v3782_v54, %v3786_v11 }
0x1146   :  { %5120 = vrsqrt.f32 %v3797_v37  ;;  %v3798_v50 = vadd.f32 1e-06, %v3790_v8 }
0x1148   :  { %5122 = vrsqrt.f32 %v3798_v50 }
0x1150   :  { %v5121_v42 = vpop.eup %5120 }
0x1151   :  { %v3805_v25 = vmul.f32 %v5121_v42, %v3793_v56 }
0x1152   :  { %v5123_v12 = vpop.eup %5122 }
0x1153   :  { %v3806_v35 = vmul.f32 %v5123_v12, %v3794_v59  ;;  %v3813_v30 = vmul.f32 %v4354_v58, %v3805_v25 }
0x1155   :  { %v3814_v24 = vmul.f32 %v4354_v58, %v3806_v35  ;;  %v3821_v9 = vadd.f32 %v4355_v39, %v3813_v30 }
0x1157   :  { %v3822_v4 = vadd.f32 %v4355_v39, %v3814_v24 }
0x1159   :  { %v3825_v7 = vpack.c.bf16 %v3822_v4, %v3821_v9 }
0x115b   :  { %4872 = vmatprep.mubr.msk.bf16.mxu0 %vm232_vm0, %v3825_v7 }
0x117e   :  { %v3757_v60 = vpop.xlane.xlu0 %3756 }
0x117f   :  { %v3763_v43 = vmul.f32 0.03125, %v3757_v60 }
0x1181   :  { %v3787_v52 = vmul.f32 %v3763_v43, %v3763_v43  ;;  %v3795_v10 = vsub.f32 %v6294_v27, %v3763_v43 }
0x1182   :  { %v3780_v26 = vpop.xlane.xlu1 %3779  ;;  %v3760_v47 = vpop.xlane.xlu0 %3759 }
0x1183   :  { %v3764_v41 = vmul.f32 0.03125, %v3760_v47  ;;  %v3784_v22 = vmul.f32 0.03125, %v3780_v26 }
0x1185   :  { %v3788_v48 = vmul.f32 %v3764_v41, %v3764_v41  ;;  %v3796_v36 = vsub.f32 %v6297_v51, %v3764_v41 }
0x1186   :  { %v3777_v6 = vpop.xlane.xlu0 %3776 }
0x1187   :  { %v3792_v62 = vsub.f32 %v3784_v22, %v3788_v48  ;;  %v3783_v17 = vmul.f32 0.03125, %v3777_v6 }
0x1189   :  { %v3800_v57 = vadd.f32 1e-06, %v3792_v62  ;;  %v3791_v2 = vsub.f32 %v3783_v17, %v3787_v52 }
0x118b   :  { %5124 = vrsqrt.f32 %v3800_v57  ;;  %v3799_v46 = vadd.f32 1e-06, %v3791_v2 }
0x118d   :  { %5126 = vrsqrt.f32 %v3799_v46 }
0x1195   :  { %v5125_v13 = vpop.eup %5124 }
0x1196   :  { %v3808_v20 = vmul.f32 %v5125_v13, %v3796_v36 }
0x1197   :  { %v5127_v33 = vpop.eup %5126 }
0x1198   :  { %v3816_v53 = vmul.f32 %v4354_v58, %v3808_v20  ;;  %v3807_v14 = vmul.f32 %v5127_v33, %v3795_v10 }
0x119a   :  { %v3815_v45 = vmul.f32 %v4354_v58, %v3807_v14  ;;  %v3824_v15 = vadd.f32 %v4355_v39, %v3816_v53 }
0x119c   :  { %v3823_v34 = vadd.f32 %v4355_v39, %v3815_v45 }
0x119e   :  { %v3826_v29 = vpack.c.bf16 %v3824_v15, %v3823_v34 }
0x11a0   :  { %4873 = vmatmul.mubr.msk.bf16.vlgmr.msra.gmra.mrb[112].mxu0 %vm232_vm0, %v3826_v29 }
0x1273   :  { %v4874_v16 = vpop.f32.mrb[112].mxu0 }
0x1274   :  { %v6354_v63 = vadd.f32 %v4874_v16, %v4360_v28  ;;  %v3889_v5 = vpop.f32.mrb[113].mxu0 }
0x1275   :  { %v6356_v40 = vadd.f32 %v4360_v28, %v3889_v5  ;;  %v4875_v32 = vpop.f32.mrb[114].mxu0 }
0x1276   :  { %v6359_v18 = vmul.f32 0.70710677, %v6354_v63  ;;  %v6361_v3 = vadd.f32 %v4875_v32, %v4360_v28  ;;  %v3892_v11 = vpop.f32.mrb[115].mxu0 }
0x1277   :  { %v6364_v55 = vmul.f32 0.70710677, %v6356_v40  ;;  %v6366_v54 = vadd.f32 %v4360_v28, %v3892_v11 }
0x1278   :  { %v3910_v37 = vsub.f32 0.0, %v6359_v18  ;;  %v6370_v8 = vmul.f32 0.70710677, %v6361_v3  ;;  %vm3994_vm9 = vcmp.lt.f32.partialorder %v6359_v18, 0.0 }
0x1279   :  { %v3908_v50 = vsub.f32 0.0, %v6364_v55  ;;  %v6374_v56 = vmul.f32 0.70710677, %v6366_v54  ;;  %vm3992_vm10 = vcmp.lt.f32.partialorder %v6364_v55, 0.0 }
0x127a   :  { %v3914_v42 = vmax.f32 %v6359_v18, %v3910_v37  ;;  %v3911_v58 = vsub.f32 0.0, %v6370_v8  ;;  %vm3995_vm11 = vcmp.lt.f32.partialorder %v6370_v8, 0.0 }
0x127b   :  { %v3912_v59 = vmax.f32 %v6364_v55, %v3908_v50  ;;  %v3909_v25 = vsub.f32 0.0, %v6374_v56  ;;  %vm3993_vm12 = vcmp.lt.f32.partialorder %v6374_v56, 0.0 }
0x127c   :  { %v3918_v12 = vmul.f32 0.3275911, %v3914_v42  ;;  %v3915_v35 = vmax.f32 %v6370_v8, %v3911_v58  ;;  %v3970_v47 = vmul.f32 %v3914_v42, %v3914_v42 }
0x127d   :  { %v3916_v30 = vmul.f32 0.3275911, %v3912_v59  ;;  %v3913_v39 = vmax.f32 %v6374_v56, %v3909_v25  ;;  %v3968_v43 = vmul.f32 %v3912_v59, %v3912_v59 }
0x127e   :  { %v3922_v24 = vadd.f32 1.0, %v3918_v12  ;;  %v3919_v9 = vmul.f32 0.3275911, %v3915_v35  ;;  %v3974_v22 = vsub.f32 0.0, %v3970_v47  ;;  %v3971_v48 = vmul.f32 %v3915_v35, %v3915_v35 }
0x127f   :  { %v3920_v4 = vadd.f32 1.0, %v3916_v30  ;;  %v3917_v7 = vmul.f32 0.3275911, %v3913_v39  ;;  %v3972_v62 = vsub.f32 0.0, %v3968_v43  ;;  %v3969_v57 = vmul.f32 %v3913_v39, %v3913_v39 }
0x1280   :  { %5128 = vrcp.f32 %v3922_v24  ;;  %v3923_v60 = vadd.f32 1.0, %v3919_v9  ;;  %v3980_v36 = vmul.f32 1.442695, %v3974_v22  ;;  %v3975_v10 = vsub.f32 0.0, %v3971_v48 }
0x1281   :  { %5130 = vrcp.f32 %v3920_v4  ;;  %v3921_v26 = vadd.f32 1.0, %v3917_v7  ;;  %v3976_v33 = vmul.f32 1.442695, %v3972_v62  ;;  %v3973_v15 = vsub.f32 0.0, %v3969_v57 }
0x1282   :  { %5132 = vrcp.f32 %v3923_v60  ;;  %v3982_v61 = vmul.f32 1.442695, %v3975_v10 }
0x1283   :  { %5134 = vrcp.f32 %v3921_v26  ;;  %v3978_v1 = vmul.f32 1.442695, %v3973_v15 }
0x1284   :  { %5136 = vpow2.f32 %v3980_v36 }
0x1285   :  { %5138 = vpow2.f32 %v3976_v33 }
0x1286   :  { %5140 = vpow2.f32 %v3982_v61 }
0x1287   :  { %5142 = vpow2.f32 %v3978_v1 }
0x128a   :  { %v5129_v41 = vpop.eup %5128 }
0x128b   :  { %v5131_v6 = vpop.eup %5130  ;;  %v3934_v52 = vmul.f32 1.0614054, %v5129_v41 }
0x128c   :  { %v3932_v17 = vmul.f32 1.0614054, %v5131_v6  ;;  %v5133_v46 = vpop.eup %5132 }
0x128d   :  { %v3938_v2 = vadd.f32 -1.4531521, %v3934_v52  ;;  %v3935_v53 = vmul.f32 1.0614054, %v5133_v46  ;;  %v5135_v14 = vpop.eup %5134 }
0x128e   :  { %v3936_v13 = vadd.f32 -1.4531521, %v3932_v17  ;;  %v3933_v38 = vmul.f32 1.0614054, %v5135_v14  ;;  %v5137_v24 = vpop.eup %5136 }
0x128f   :  { %v3942_v20 = vmul.f32 %v5129_v41, %v3938_v2  ;;  %v3939_v29 = vadd.f32 -1.4531521, %v3935_v53  ;;  %v5139_v4 = vpop.eup %5138 }
0x1290   :  { %v3940_v45 = vmul.f32 %v5131_v6, %v3936_v13  ;;  %v3937_v31 = vadd.f32 -1.4531521, %v3933_v38  ;;  %v5141_v52 = vpop.eup %5140  ;;  %v4004_v38 = vmul.f32 0.5, %v6356_v40 }
0x1291   :  { %v3946_v34 = vadd.f32 1.4214138, %v3942_v20  ;;  %v3943_v21 = vmul.f32 %v5133_v46, %v3939_v29  ;;  %v5143_v36 = vpop.eup %5142  ;;  %v4007_v29 = vmul.f32 0.5, %v6361_v3  ;;  %v4373_v3 = vld [vmem:[%s6444_s5 + $0x2f] ss:$0 sm:$0xff] }
0x1292   :  { %v3944_v49 = vadd.f32 1.4214138, %v3940_v45  ;;  %v3941_v5 = vmul.f32 %v5135_v14, %v3937_v31 }
0x1293   :  { %v3950_v0 = vmul.f32 %v5129_v41, %v3946_v34  ;;  %v3947_v16 = vadd.f32 1.4214138, %v3943_v21 }
0x1294   :  { %v3948_v23 = vmul.f32 %v5131_v6, %v3944_v49  ;;  %v3945_v50 = vadd.f32 1.4214138, %v3941_v5 }
0x1295   :  { %v3954_v28 = vadd.f32 -0.28449672, %v3950_v0  ;;  %v3951_v37 = vmul.f32 %v5133_v46, %v3947_v16  ;;  %v4005_v0 = vmul.f32 0.5, %v6366_v54 }
0x1296   :  { %v3952_v32 = vadd.f32 -0.28449672, %v3948_v23  ;;  %v3949_v25 = vmul.f32 %v5135_v14, %v3945_v50 }
0x1297   :  { %v3958_v11 = vmul.f32 %v5129_v41, %v3954_v28  ;;  %v3955_v59 = vadd.f32 -0.28449672, %v3951_v37 }
0x1298   :  { %v3956_v42 = vmul.f32 %v5131_v6, %v3952_v32  ;;  %v3953_v39 = vadd.f32 -0.28449672, %v3949_v25 }
0x1299   :  { %v3962_v58 = vadd.f32 0.2548296, %v3958_v11  ;;  %v3959_v30 = vmul.f32 %v5133_v46, %v3955_v59 }
0x129a   :  { %v3960_v12 = vadd.f32 0.2548296, %v3956_v42  ;;  %v3957_v26 = vmul.f32 %v5135_v14, %v3953_v39 }
0x129b   :  { %v3966_v35 = vmul.f32 %v5129_v41, %v3962_v58  ;;  %v3963_v60 = vadd.f32 0.2548296, %v3959_v30 }
0x129c   :  { %v3964_v9 = vmul.f32 %v5131_v6, %v3960_v12  ;;  %v3961_v48 = vadd.f32 0.2548296, %v3957_v26 }
0x129d   :  { %v3986_v7 = vmul.f32 %v5137_v24, %v3966_v35  ;;  %v3967_v22 = vmul.f32 %v5133_v46, %v3963_v60  ;;  %v4006_v46 = vmul.f32 0.5, %v6354_v63 }
0x129e   :  { %v3984_v47 = vmul.f32 %v5139_v4, %v3964_v9  ;;  %v3965_v2 = vmul.f32 %v5135_v14, %v3961_v48 }
0x129f   :  { %v3990_v43 = vsub.f32 1.0, %v3986_v7  ;;  %v3987_v57 = vmul.f32 %v5141_v52, %v3967_v22 }
0x12a0   :  { %v3988_v62 = vsub.f32 1.0, %v3984_v47  ;;  %v3985_v6 = vmul.f32 %v5143_v36, %v3965_v2 }
0x12a1   :  { %v3998_v17 = vsub.f32 0.0, %v3990_v43  ;;  %v3991_v10 = vsub.f32 1.0, %v3987_v57 }
0x12a2   :  { %v3996_v41 = vsub.f32 0.0, %v3988_v62  ;;  %v3989_v53 = vsub.f32 1.0, %v3985_v6 }
0x12a3   :  { %v4002_v13 = vsel %vm3994_vm9, %v3998_v17, %v3990_v43  ;;  %v3999_v33 = vsub.f32 0.0, %v3991_v10 }
0x12a4   :  { %v4000_v20 = vsel %vm3992_vm10, %v3996_v41, %v3988_v62  ;;  %v4010_v45 = vadd.f32 1.0, %v4002_v13  ;;  %v3997_v34 = vsub.f32 0.0, %v3989_v53 }
0x12a5   :  { %v4003_v15 = vsel %vm3995_vm11, %v3999_v33, %v3991_v10  ;;  %v4008_v14 = vadd.f32 1.0, %v4000_v20 }
0x12a6   :  { %v4011_v18 = vadd.f32 1.0, %v4003_v15  ;;  %v4001_v49 = vsel %vm3993_vm12, %v3997_v34, %v3989_v53  ;;  %v4014_v55 = vmul.f32 %v4010_v45, %v4006_v46 }
0x12a7   :  { %v4009_v21 = vadd.f32 1.0, %v4001_v49  ;;  %v4012_v31 = vmul.f32 %v4008_v14, %v4004_v38  ;;  %v4374_v49 = vld [vmem:[%s6444_s5 + $0x30] ss:$0 sm:$0xff] }
0x12a8   :  { %v4015_v61 = vmul.f32 %v4011_v18, %v4007_v29 }
0x12a9   :  { %v4013_v23 = vmul.f32 %v4009_v21, %v4005_v0  ;;  %v4375_v21 = vld [vmem:[%s6444_s5 + $0x31] ss:$0 sm:$0xff]  ;;  %s5152_s5 = scalar_lea.vmem %s4232_s3, 512 }
0x12aa   :  { %v4017_v8 = vpack.c.bf16 %v4015_v61, %v4014_v55  ;;  %p5153_p0 = scmp.ne.s32.totalorder %s4232_s3, %s5152_s5  ;;  %p5158_p2 = scmp.lt.s32.totalorder %s5152_s5, %s5152_s5 }
0x12ab   :  { %v4016_v63 = vpack.c.bf16 %v4013_v23, %v4012_v31 }
0x12ac   :  { %p5159_p3 = por %p5158_p2, %p5157_p1 }
0x12ad   :  { %4892 = vmatprep.mubr.bf16.mxu1 %v4016_v63 }
0x12ae   :  { %4893 = vmatmul.mubr.bf16.vlgmr.msra.gmra.mrb[104].mxu1 %v4017_v8  ;;  %p5160_p4 = pnand %p5159_p3, %p5153_p0 }
0x1381   :  { %v4894_v1 = vpop.f32.mrb[104].mxu1 }
0x1382   :  { %v4133_v56 = vadd.f32 %v4894_v1, %v6294_v27  ;;  %v4116_v40 = vpop.f32.mrb[105].mxu1 }
0x1383   :  { %v4131_v28 = vadd.f32 %v4116_v40, %v6270_v19  ;;  %v4895_v16 = vpop.f32.mrb[106].mxu1 }
0x1384   :  { %v6395_v5 = vadd.f32 %v4373_v3, %v4133_v56  ;;  %v4134_v54 = vadd.f32 %v4895_v16, %v6297_v51  ;;  %v4119_v32 = vpop.f32.mrb[107].mxu1 }
0x1385   :  { %v4132_v11 = vadd.f32 %v4119_v32, %v6275_v44  ;;  %v4140_v37 = vadd.f32 %v4373_v3, %v4131_v28 }
0x1386   :  { %v6399_v50 = vadd.f32 %v4373_v3, %v4134_v54  ;;  %v4152_v42 = vsel %vm232_vm0, %v6395_v5, 0.0  ;;  %v4164_v12 = vmul.f32 %v6395_v5, %v6395_v5 }
0x1387   :  { %4153 = vadd.xlane.f32.xlu0 %v4152_v42  ;;  %v4141_v58 = vadd.f32 %v4373_v3, %v4132_v11  ;;  %v4146_v19 = vsel %vm232_vm0, %v4140_v37, 0.0  ;;  %v4162_v59 = vmul.f32 %v4140_v37, %v4140_v37 }
0x1388   :  { %v4155_v27 = vsel %vm232_vm0, %v6399_v50, 0.0  ;;  %v4165_v30 = vmul.f32 %v6399_v50, %v6399_v50  ;;  %v4172_v39 = vsel %vm232_vm0, %v4164_v12, 0.0 }
0x1389   :  { %4156 = vadd.xlane.f32.xlu1 %v4155_v27  ;;  %v4149_v51 = vsel %vm232_vm0, %v4141_v58, 0.0  ;;  %v4163_v25 = vmul.f32 %v4141_v58, %v4141_v58  ;;  %v4166_v44 = vsel %vm232_vm0, %v4162_v59, 0.0 }
0x138a   :  { %v4175_v24 = vsel %vm232_vm0, %v4165_v30, 0.0 }
0x138b   :  { %4147 = vadd.xlane.f32.xlu0 %v4146_v19  ;;  %v4169_v35 = vsel %vm232_vm0, %v4163_v25, 0.0 }
0x138d   :  { %4150 = vadd.xlane.f32.xlu1 %v4149_v51 }
0x138f   :  { %4167 = vadd.xlane.f32.xlu0 %v4166_v44 }
0x1391   :  { %4170 = vadd.xlane.f32.xlu1 %v4169_v35 }
0x1393   :  { %4173 = vadd.xlane.f32.xlu0 %v4172_v39 }
0x1395   :  { %4176 = vadd.xlane.f32.xlu1 %v4175_v24 }
0x1414   :  { %v4154_v9 = vpop.xlane.xlu0 %4153 }
0x1415   :  { %v4160_v22 = vmul.f32 0.03125, %v4154_v9 }
0x1416   :  { %v4157_v4 = vpop.xlane.xlu1 %4156 }
0x1417   :  { %v4161_v62 = vmul.f32 0.03125, %v4157_v4  ;;  %v4184_v13 = vmul.f32 %v4160_v22, %v4160_v22  ;;  %v4192_v31 = vsub.f32 %v6395_v5, %v4160_v22 }
0x1418   :  { %v4148_v7 = vpop.xlane.xlu0 %4147 }
0x1419   :  { %v4158_v60 = vmul.f32 0.03125, %v4148_v7  ;;  %v4185_v33 = vmul.f32 %v4161_v62, %v4161_v62  ;;  %v4193_v1 = vsub.f32 %v6399_v50, %v4161_v62 }
0x141a   :  { %v4151_v26 = vpop.xlane.xlu1 %4150 }
0x141b   :  { %v4159_v47 = vmul.f32 0.03125, %v4151_v26  ;;  %v4182_v48 = vmul.f32 %v4158_v60, %v4158_v60  ;;  %v4190_v18 = vsub.f32 %v4140_v37, %v4158_v60 }
0x141c   :  { %v4168_v43 = vpop.xlane.xlu0 %4167 }
0x141d   :  { %v4178_v52 = vmul.f32 0.03125, %v4168_v43  ;;  %v4183_v57 = vmul.f32 %v4159_v47, %v4159_v47  ;;  %v4191_v55 = vsub.f32 %v4141_v58, %v4159_v47 }
0x141e   :  { %v4171_v17 = vpop.xlane.xlu1 %4170 }
0x141f   :  { %v4186_v2 = vsub.f32 %v4178_v52, %v4182_v48  ;;  %v4179_v36 = vmul.f32 0.03125, %v4171_v17 }
0x1420   :  { %v4174_v41 = vpop.xlane.xlu0 %4173 }
0x1421   :  { %v4194_v10 = vadd.f32 1e-06, %v4186_v2  ;;  %v4187_v6 = vsub.f32 %v4179_v36, %v4183_v57  ;;  %v4180_v20 = vmul.f32 0.03125, %v4174_v41 }
0x1422   :  { %v4177_v53 = vpop.xlane.xlu1 %4176 }
0x1423   :  { %5144 = vrsqrt.f32 %v4194_v10  ;;  %v4195_v45 = vadd.f32 1e-06, %v4187_v6  ;;  %v4188_v46 = vsub.f32 %v4180_v20, %v4184_v13  ;;  %v4181_v15 = vmul.f32 0.03125, %v4177_v53 }
0x1425   :  { %5146 = vrsqrt.f32 %v4195_v45  ;;  %v4196_v34 = vadd.f32 1e-06, %v4188_v46  ;;  %v4189_v14 = vsub.f32 %v4181_v15, %v4185_v33 }
0x1427   :  { %5148 = vrsqrt.f32 %v4196_v34  ;;  %v4197_v29 = vadd.f32 1e-06, %v4189_v14 }
0x1429   :  { %5150 = vrsqrt.f32 %v4197_v29 }
0x142d   :  { %v5145_v38 = vpop.eup %5144 }
0x142e   :  { %v4202_v61 = vmul.f32 %v5145_v38, %v4190_v18 }
0x142f   :  { %v5147_v0 = vpop.eup %5146 }
0x1430   :  { %v4210_v8 = vmul.f32 %v4374_v49, %v4202_v61  ;;  %v4203_v23 = vmul.f32 %v5147_v0, %v4191_v55 }
0x1431   :  { %v5149_v63 = vpop.eup %5148 }
0x1432   :  { %v4211_v3 = vmul.f32 %v4374_v49, %v4203_v23  ;;  %v4204_v56 = vmul.f32 %v5149_v63, %v4192_v31  ;;  %v4218_v40 = vadd.f32 %v4375_v21, %v4210_v8 }
0x1433   :  { %v5151_v28 = vpop.eup %5150 }
0x1434   :  { %v4212_v16 = vmul.f32 %v4374_v49, %v4204_v56  ;;  %v4205_v54 = vmul.f32 %v5151_v28, %v4193_v1  ;;  %v4219_v32 = vadd.f32 %v4375_v21, %v4211_v3  ;;  %4222 = vst.msk [vmem:[#allocation2] sm:$0xff] %vm232_vm0, %v4218_v40 }
0x1436   :  { %v4213_v11 = vmul.f32 %v4374_v49, %v4205_v54  ;;  %v4220_v37 = vadd.f32 %v4375_v21, %v4212_v16  ;;  %4223 = vst.msk [vmem:[#allocation2 + $0x8] sm:$0xff] %vm232_vm0, %v4219_v32 }
0x1438   :  { %v4221_v5 = vadd.f32 %v4375_v21, %v4213_v11  ;;  %4224 = vst.msk [vmem:[#allocation2 + $0x10] sm:$0xff] %vm232_vm0, %v4220_v37 }
0x143a   :  { %4225 = vst.msk [vmem:[#allocation2 + $0x18] sm:$0xff] %vm232_vm0, %v4221_v5 }
0x143b   :  { %5163 = shalt.err (!%p5160_p4)
}
0x143c   :  { %s5164_s22 = scalar_lea.hbm %s6445_s6, 512 }
0x143d   :  { %p5165_p5 = scmp.ne.s32.totalorder %s6445_s6, %s5164_s22  ;;  %p5168_p6 = scmp.lt.u32.totalorder %s5164_s22, %s6445_s6 }
0x143f   :  { %p5170_p7 = pnand %p5168_p6, %p5165_p5 }
0x1441   :  { %5173 = shalt.err (!%p5170_p7)
}
0x1442   :  { %s5184_s8 = smov 128   ;;  %s5185_s9 = smov 8  }
0x1443   :  { %4237 = dma.vmem_to_hbm [thread:$0]  %s4232_s3, 512, %s6445_s6, [#allocation3], %s5184_s8, %s5184_s8, %s5185_s9  }
0x1444   :  { %5174 = dma.done.wait [#allocation3], 512  }
0x1445   :  { %5175 = vsyncadd [#allocation3], 4294966784 }
0x1446   :  { %4241 = vsyncpa [#allocation3], 1 }

</bundles_post_ra>
